<compile_context>
chip_gen: v5e
topology: v5e:2x2
jax: 0.10.0
libtpu: 0.0.40
codegen_flags: <defaults>
</compile_context>

<pallas_src>
import functools

import jax
import jax.numpy as jnp
from jax import lax
from jax.experimental import pallas as pl
from jax.experimental.pallas import tpu as pltpu

N_EMBD = 384          # n_embd from the module
N_HEADS = 4
HEAD_SIZE = 96        # n_heads * head_size == n_embd
HEAD_PAD = 128        # head_size zero-padded to the 128-lane vreg width

NEG_BIG = -1e30       # large finite negative (avoids -inf - -inf NaNs)


# ---------------------------------------------------------------------------
# Weight re-packing (outside the kernels, traced under jit)
# ---------------------------------------------------------------------------
def _pack_qkv_weights(wq, wk, wv, head_pad, scale, dtype):
    """(H,C,hs) x3 -> (C, 3*H*head_pad); softmax scale folded into Q cols."""
    def pad(w):
        H, C, hs = w.shape
        wp = jnp.pad(w, ((0, 0), (0, 0), (0, head_pad - hs)))
        return jnp.transpose(wp, (1, 0, 2)).reshape(C, H * head_pad)
    return jnp.concatenate([pad(wq) * scale, pad(wk), pad(wv)],
                           axis=1).astype(dtype)


def _pack_proj_weights(w_proj, n_heads, head_size, head_pad, dtype):
    """(H*hs, C) -> (H, head_pad, C) with zero rows in the padded slots."""
    _, C = w_proj.shape
    wp = w_proj.reshape(n_heads, head_size, C)
    wp = jnp.pad(wp, ((0, 0), (0, head_pad - head_size), (0, 0)))
    return wp.astype(dtype)


def _vmem_limit(est_bytes):
    """Generous scoped-VMEM limit derived from the actual buffer sizes."""
    return int(min(max(2 * est_bytes, 16 * 1024 * 1024), 100 * 1024 * 1024))


# ---------------------------------------------------------------------------
# Path 1: fully fused kernel (scores materialized) -- small / medium T.
# ---------------------------------------------------------------------------
def _mha_fused_kernel(x_ref, wqkv_ref, wp_ref, b_ref, o_ref, *,
                      n_heads, head_pad, compute_dtype):
    Bb, T, C = x_ref.shape
    HP = n_heads * head_pad
    R = Bb * T

    # All-head Q/K/V in one lane-dense matmul (scale pre-folded into Q cols).
    x2 = x_ref[...].reshape(R, C)                 # already compute_dtype
    qkv = jnp.dot(x2, wqkv_ref[...],
                  preferred_element_type=jnp.float32).astype(compute_dtype)

    row = lax.broadcasted_iota(jnp.int32, (T, T), 0)
    col = lax.broadcasted_iota(jnp.int32, (T, T), 1)
    causal = (col <= row)[None]                   # (1, T, T)

    y = jnp.zeros((R, C), jnp.float32)            # f32 output accumulator
    for h in range(n_heads):
        lo = h * head_pad
        qh = qkv[:, lo:lo + head_pad].reshape(Bb, T, head_pad)
        kh = qkv[:, HP + lo:HP + lo + head_pad].reshape(Bb, T, head_pad)
        vh = qkv[:, 2 * HP + lo:2 * HP + lo + head_pad].reshape(Bb, T, head_pad)

        s = jnp.einsum('bqd,bkd->bqk', qh, kh,
                       preferred_element_type=jnp.float32)
        s = jnp.where(causal, s, NEG_BIG)         # causal (tril) mask
        m = jnp.max(s, axis=-1, keepdims=True)
        p = jnp.exp(s - m)                        # EUP
        p = p * pl.reciprocal(jnp.sum(p, axis=-1, keepdims=True), approx=True)
        # dropout(p=0.2) on `p` is identity in eval mode.
        ctx = jnp.einsum('bqk,bkd->bqd', p.astype(compute_dtype), vh,
                         preferred_element_type=jnp.float32)
        # Per-head slice of the output projection, accumulated (no concat).
        y = y + jnp.dot(ctx.reshape(R, head_pad).astype(compute_dtype),
                        wp_ref[h], preferred_element_type=jnp.float32)

    y = y + b_ref[...]                            # bias (f32, broadcast)
    # final dropout(p=0.2) is identity in eval mode.
    o_ref[...] = y.reshape(Bb, T, C).astype(o_ref.dtype)


def _pick_batch_fold(B, T):
    """Fold batches so the projection matmuls see >= ~128 rows per step."""
    if T >= 128:
        return 1
    bb = min(B, max(1, 128 // T))
    while B % bb:
        bb -= 1
    return bb


def _mha_fused(x, wqkv, wp, b2d, *, n_heads, head_pad, compute_dtype):
    B, T, C = x.shape
    HP = n_heads * head_pad
    Bb = _pick_batch_fold(B, T)
    itemsize = jnp.dtype(compute_dtype).itemsize

    est = (2 * Bb * T * C * itemsize              # x blocks (double-buffered)
           + 2 * Bb * T * C * 4                   # out blocks
           + 2 * (C * 3 * HP + n_heads * head_pad * C) * itemsize + 2 * C * 4
           + Bb * T * 3 * HP * (4 + itemsize)     # qkv (f32 acc + compute copy)
           + 3 * Bb * T * T * 4                   # scores / probs working set
           + 2 * Bb * T * C * 4)                  # y accumulator + headroom

    kernel = functools.partial(_mha_fused_kernel, n_heads=n_heads,
                               head_pad=head_pad, compute_dtype=compute_dtype)
    # NOTE: the constant-index weight blocks would ideally be single-buffered
    # (pipeline_mode=pl.Buffered(1)) to reclaim the dead second buffer on
    # VMEM-tight generations (v7x/v5e); left at the default for portability.
    return pl.pallas_call(
        kernel,
        out_shape=jax.ShapeDtypeStruct((B, T, C), x.dtype),
        grid_spec=pltpu.PrefetchScalarGridSpec(
            num_scalar_prefetch=0,
            grid=(B // Bb,),
            in_specs=[
                pl.BlockSpec((Bb, T, C), lambda b: (b, 0, 0)),       # x
                pl.BlockSpec((C, 3 * HP), lambda b: (0, 0)),         # wqkv
                pl.BlockSpec((n_heads, head_pad, C), lambda b: (0, 0, 0)),
                pl.BlockSpec((1, C), lambda b: (0, 0)),              # bias
            ],
            out_specs=pl.BlockSpec((Bb, T, C), lambda b: (b, 0, 0)),
        ),
        compiler_params=pltpu.CompilerParams(
            dimension_semantics=("parallel",),
            vmem_limit_bytes=_vmem_limit(est)),
    )(x.astype(compute_dtype), wqkv, wp, b2d)


# ---------------------------------------------------------------------------
# Path 2: flash-style kv-tiled online softmax -- large T (v7x 64 MiB VMEM).
# ---------------------------------------------------------------------------
def _qkv_proj_kernel(x_ref, wqkv_ref, qkv_ref):
    qkv_ref[...] = jnp.dot(x_ref[...], wqkv_ref[...],
                           preferred_element_type=jnp.float32
                           ).astype(qkv_ref.dtype)


def _flash_attn_kernel(q_ref, k_ref, v_ref, wp_ref, b_ref, o_ref,
                       m_sc, l_sc, acc_sc, *,
                       n_heads, head_pad, tq, tkv, compute_dtype):
    qi = pl.program_id(1)
    ki = pl.program_id(2)

    @pl.when(ki == 0)
    def _():
        m_sc[...] = jnp.full(m_sc.shape, -jnp.inf, jnp.float32)
        l_sc[...] = jnp.zeros(l_sc.shape, jnp.float32)
        acc_sc[...] = jnp.zeros(acc_sc.shape, jnp.float32)

    # Causal skip: kv tiles strictly above the diagonal contribute nothing.
    @pl.when(ki * tkv <= qi * tq + (tq - 1))
    def _():
        row = qi * tq + lax.broadcasted_iota(jnp.int32, (tq, tkv), 0)
        col = ki * tkv + lax.broadcasted_iota(jnp.int32, (tq, tkv), 1)
        causal = col <= row
        for h in range(n_heads):
            lo = h * head_pad
            qh = q_ref[0, :, lo:lo + head_pad]        # (tq, 128)
            kh = k_ref[0, :, lo:lo + head_pad]        # (tkv, 128)
            vh = v_ref[0, :, lo:lo + head_pad]
            s = lax.dot_general(qh, kh, (((1,), (1,)), ((), ())),
                                preferred_element_type=jnp.float32)
            s = jnp.where(causal, s, NEG_BIG)
            m_prev = m_sc[h]
            m_new = jnp.maximum(m_prev, jnp.max(s, axis=-1, keepdims=True))
            alpha = jnp.exp(m_prev - m_new)
            p = jnp.exp(s - m_new)
            l_sc[h] = alpha * l_sc[h] + jnp.sum(p, axis=-1, keepdims=True)
            acc_sc[h] = alpha * acc_sc[h] + jnp.dot(
                p.astype(compute_dtype), vh, preferred_element_type=jnp.float32)
            m_sc[h] = m_new

    @pl.when(ki == pl.num_programs(2) - 1)
    def _():
        C = o_ref.shape[2]
        y = jnp.zeros((tq, C), jnp.float32)
        for h in range(n_heads):
            ctx = acc_sc[h] * pl.reciprocal(l_sc[h], approx=True)
            y = y + jnp.dot(ctx.astype(compute_dtype), wp_ref[h],
                            preferred_element_type=jnp.float32)
        # dropout(p=0.2) layers are identity in eval mode.
        o_ref[0] = (y + b_ref[...]).astype(o_ref.dtype)


def _mha_flash(x, wqkv, wp, b2d, *, n_heads, head_pad, compute_dtype, q_block):
    B, T, C = x.shape
    HP = n_heads * head_pad
    tq = q_block
    assert T % tq == 0, "flash path requires T to be a multiple of q_block"
    itemsize = jnp.dtype(compute_dtype).itemsize

    # --- Pass 1: QKV projection over all B*T rows (scale folded into wq). ---
    rows = B * T
    tm = 256 if rows % 256 == 0 else (128 if rows % 128 == 0 else rows)
    est1 = (2 * tm * C * itemsize + 2 * C * 3 * HP * itemsize
            + 2 * tm * 3 * HP * itemsize + tm * 3 * HP * 4)
    qkv = pl.pallas_call(
        _qkv_proj_kernel,
        out_shape=jax.ShapeDtypeStruct((rows, 3 * HP), compute_dtype),
        grid_spec=pltpu.PrefetchScalarGridSpec(
            num_scalar_prefetch=0,
            grid=(rows // tm,),
            in_specs=[pl.BlockSpec((tm, C), lambda i: (i, 0)),
                      pl.BlockSpec((C, 3 * HP), lambda i: (0, 0))],
            out_specs=pl.BlockSpec((tm, 3 * HP), lambda i: (i, 0)),
        ),
        compiler_params=pltpu.CompilerParams(
            dimension_semantics=("parallel",),
            vmem_limit_bytes=_vmem_limit(est1)),
    )(x.reshape(rows, C).astype(compute_dtype), wqkv)
    qkv = qkv.reshape(B, T, 3 * HP)

    # --- Pass 2: online-softmax attention + fused output projection. -------
    tkv = tq
    nq, nk = T // tq, T // tkv
    est2 = (2 * 3 * tq * HP * itemsize + 2 * tq * C * 4
            + 2 * n_heads * head_pad * C * itemsize + 2 * C * 4
            + n_heads * tq * (head_pad + 2) * 4       # scratch
            + 4 * tq * tkv * 4 + 2 * tq * C * 4)      # s/p working set + y
    kernel = functools.partial(_flash_attn_kernel, n_heads=n_heads,
                               head_pad=head_pad, tq=tq, tkv=tkv,
                               compute_dtype=compute_dtype)
    return pl.pallas_call(
        kernel,
        out_shape=jax.ShapeDtypeStruct((B, T, C), x.dtype),
        grid_spec=pltpu.PrefetchScalarGridSpec(
            num_scalar_prefetch=0,
            grid=(B, nq, nk),
            in_specs=[
                # q tile: resident across the kv axis.
                pl.BlockSpec((1, tq, HP), lambda b, qi, ki: (b, qi, 0)),
                # k / v tiles: index clamped to the causal range so tiles
                # above the diagonal are not even DMA'd.
                pl.BlockSpec((1, tkv, HP),
                             lambda b, qi, ki: (b, jnp.minimum(ki, qi), 1)),
                pl.BlockSpec((1, tkv, HP),
                             lambda b, qi, ki: (b, jnp.minimum(ki, qi), 2)),
                pl.BlockSpec((n_heads, head_pad, C),
                             lambda b, qi, ki: (0, 0, 0)),
                pl.BlockSpec((1, C), lambda b, qi, ki: (0, 0)),
            ],
            out_specs=pl.BlockSpec((1, tq, C), lambda b, qi, ki: (b, qi, 0)),
            scratch_shapes=[
                pltpu.VMEM((n_heads, tq, 1), jnp.float32),         # running max
                pltpu.VMEM((n_heads, tq, 1), jnp.float32),         # running denom
                pltpu.VMEM((n_heads, tq, head_pad), jnp.float32),  # running ctx
            ],
        ),
        compiler_params=pltpu.CompilerParams(
            dimension_semantics=("parallel", "parallel", "arbitrary"),
            vmem_limit_bytes=_vmem_limit(est2)),
    )(qkv, qkv, qkv, wp, b2d)


# ---------------------------------------------------------------------------
# Full module forward
# ---------------------------------------------------------------------------
@functools.partial(jax.jit, static_argnames=("compute_dtype", "impl", "q_block"))
def multi_head_attention(x, wq, wk, wv, w_proj, b_proj, *,
                         compute_dtype=None, impl="auto", q_block=None):
    """Eval-mode MultiHeadAttention forward.

    x: (B,T,C); wq/wk/wv: (H,C,hs); w_proj: (H*hs,C); b_proj: (C,).
    compute_dtype=None -> bf16 MXU inputs (f32 accumulation / f32 softmax);
    pass jnp.float32 for a full-precision MXU path.
    """
    if compute_dtype is None:
        compute_dtype = jnp.bfloat16    # native bf16 MXU on v5e/v6e/v7x
    B, T, C = x.shape
    H, _, hs = wq.shape
    hp = HEAD_PAD
    # Matches the PyTorch module: scale = C ** -0.5 with C = n_embd (not hs).
    scale = float(C) ** -0.5

    wqkv = _pack_qkv_weights(wq, wk, wv, hp, scale, compute_dtype)  # (C,3*H*hp)
    wp = _pack_proj_weights(w_proj, H, hs, hp, compute_dtype)       # (H,hp,C)
    b2d = b_proj.reshape(1, C).astype(jnp.float32)

    if q_block is None:
        q_block = 256 if (T % 256 == 0 and T >= 1024) else \
                  (128 if T % 128 == 0 else T)
    if impl == "auto":
        impl = "flash" if (T >= 512 and T % q_block == 0 and T > q_block) \
            else "fused"

    if impl == "flash":
        return _mha_flash(x, wqkv, wp, b2d, n_heads=H, head_pad=hp,
                          compute_dtype=compute_dtype, q_block=q_block)
    return _mha_fused(x, wqkv, wp, b2d, n_heads=H, head_pad=hp,
                      compute_dtype=compute_dtype)


# ---------------------------------------------------------------------------
# Pure-JAX reference (mirrors the PyTorch module in eval mode)
# ---------------------------------------------------------------------------
def _reference(x, wq, wk, wv, w_proj, b_proj):
    B, T, C = x.shape
    H = wq.shape[0]
    mask = jnp.tril(jnp.ones((T, T), dtype=bool))
    outs = []
    for h in range(H):
        q = x @ wq[h]
        k = x @ wk[h]
        v = x @ wv[h]
        wei = jnp.einsum('btd,bsd->bts', q, k) * (float(C) ** -0.5)
        wei = jnp.where(mask[None], wei, -jnp.inf)
        wei = jax.nn.softmax(wei, axis=-1)
        outs.append(jnp.einsum('bts,bsd->btd', wei, v))
    return jnp.concatenate(outs, axis=-1) @ w_proj + b_proj.reshape(1, 1, C)


if __name__ == "__main__":
    key = jax.random.PRNGKey(0)
    kx, kx2, kq, kk, kv, kw, kb = jax.random.split(key, 7)

    B, T = 2, 8
    x = jax.random.normal(kx, (B, T, N_EMBD), dtype=jnp.float32)

    scale_in = 1.0 / (N_EMBD ** 0.5)
    wq = jax.random.uniform(kq, (N_HEADS, N_EMBD, HEAD_SIZE),
                            minval=-scale_in, maxval=scale_in, dtype=jnp.float32)
    wk = jax.random.uniform(kk, (N_HEADS, N_EMBD, HEAD_SIZE),
                            minval=-scale_in, maxval=scale_in, dtype=jnp.float32)
    wv = jax.random.uniform(kv, (N_HEADS, N_EMBD, HEAD_SIZE),
                            minval=-scale_in, maxval=scale_in, dtype=jnp.float32)
    scale_p = 1.0 / ((N_HEADS * HEAD_SIZE) ** 0.5)
    w_proj = jax.random.uniform(kw, (N_HEADS * HEAD_SIZE, N_EMBD),
                                minval=-scale_p, maxval=scale_p, dtype=jnp.float32)
    b_proj = jax.random.uniform(kb, (N_EMBD,),
                                minval=-scale_p, maxval=scale_p, dtype=jnp.float32)

    # --- fused path, f32 MXU, small T ---------------------------------------
    out = multi_head_attention(x, wq, wk, wv, w_proj, b_proj,
                               compute_dtype=jnp.float32)
    jax.block_until_ready(out)
    ref = _reference(x, wq, wk, wv, w_proj, b_proj)
    assert out.shape == (B, T, N_EMBD)
    assert jnp.allclose(out, ref, atol=2e-2, rtol=2e-2)

    # --- fused path, bf16 MXU (default), checked loosely vs the f32 ref -----
    out_bf16 = multi_head_attention(x, wq, wk, wv, w_proj, b_proj)
    jax.block_until_ready(out_bf16)
    assert out_bf16.shape == (B, T, N_EMBD)
    assert bool(jnp.all(jnp.isfinite(out_bf16)))
    assert jnp.allclose(out_bf16, ref, atol=8e-2, rtol=8e-2)

    # --- flash (kv-tiled online-softmax) path at block_size-sized T ---------
    T2 = 256
    x2 = jax.random.normal(kx2, (B, T2, N_EMBD), dtype=jnp.float32)
    out_fl = multi_head_attention(x2, wq, wk, wv, w_proj, b_proj,
                                  compute_dtype=jnp.float32,
                                  impl="flash", q_block=128)
    jax.block_until_ready(out_fl)
    ref2 = _reference(x2, wq, wk, wv, w_proj, b_proj)
    assert out_fl.shape == (B, T2, N_EMBD)
    assert jnp.allclose(out_fl, ref2, atol=2e-2, rtol=2e-2)

    print("KERNEL_OK")
</pallas_src>

<mosaic_0001>
module attributes {stable_mosaic.version = 11 : i64} {
  func.func @_mha_fused_kernel(%arg0: i32, %arg1: memref<2x8x384xf32, #tpu.memory_space<vmem>>, %arg2: memref<384x1536xf32, #tpu.memory_space<vmem>>, %arg3: memref<4x128x384xf32, #tpu.memory_space<vmem>>, %arg4: memref<1x384xf32, #tpu.memory_space<vmem>>, %arg5: memref<2x8x384xf32, #tpu.memory_space<vmem>>) attributes {dimension_semantics = [#tpu.dimension_semantics<parallel>], iteration_bounds = array<i64: 1>, scalar_prefetch = 0 : i64, scratch_operands = 0 : i64, tpu.core_type = #tpu.core_type<tc>, window_params = [{transform_indices = @transform_0, window_bounds = array<i64: 2, 8, 384>}, {pipeline_mode = #tpu.pipeline_mode<synchronous>, transform_indices = @transform_1, window_bounds = array<i64: 384, 1536>}, {pipeline_mode = #tpu.pipeline_mode<synchronous>, transform_indices = @transform_2, window_bounds = array<i64: 4, 128, 384>}, {pipeline_mode = #tpu.pipeline_mode<synchronous>, transform_indices = @transform_3, window_bounds = array<i64: 1, 384>}, {transform_indices = @transform_4, window_bounds = array<i64: 2, 8, 384>}]} {
    %c0 = arith.constant 0 : index
    %c0_0 = arith.constant 0 : index
    %c0_1 = arith.constant 0 : index
    %0 = vector.load %arg1[%c0, %c0_0, %c0_1] : memref<2x8x384xf32, #tpu.memory_space<vmem>>, vector<2x8x384xf32>
    %1 = vector.shape_cast %0 : vector<2x8x384xf32> to vector<16x384xf32>
    %c0_2 = arith.constant 0 : index
    %c0_3 = arith.constant 0 : index
    %2 = vector.load %arg2[%c0_2, %c0_3] : memref<384x1536xf32, #tpu.memory_space<vmem>>, vector<384x1536xf32>
    %cst = arith.constant dense<0.000000e+00> : vector<16x1536xf32>
    %3 = tpu.matmul %1, %2, %cst {dimension_numbers = #tpu.dot_dimension_numbers<[1], [0], [0], [1], [0, 0, 1, 1], [], []>} : vector<16x384xf32>, vector<384x1536xf32>, vector<16x1536xf32> -> vector<16x1536xf32>
    %4 = tpu.iota {dimensions = array<i32: 0>} : vector<8x8xi32>
    %5 = tpu.iota {dimensions = array<i32: 1>} : vector<8x8xi32>
    %6 = arith.cmpi sle, %5, %4 : vector<8x8xi32>
    %7 = vector.shape_cast %6 : vector<8x8xi1> to vector<1x8x8xi1>
    %cst_4 = arith.constant 0.000000e+00 : f32
    %8 = vector.broadcast %cst_4 : f32 to vector<16x384xf32>
    %9 = vector.extract_strided_slice %3 {offsets = [0, 0], sizes = [16, 128], strides = [1, 1]} : vector<16x1536xf32> to vector<16x128xf32>
    %10 = vector.shape_cast %9 : vector<16x128xf32> to vector<2x8x128xf32>
    %11 = vector.extract_strided_slice %3 {offsets = [0, 512], sizes = [16, 128], strides = [1, 1]} : vector<16x1536xf32> to vector<16x128xf32>
    %12 = vector.shape_cast %11 : vector<16x128xf32> to vector<2x8x128xf32>
    %13 = vector.extract_strided_slice %3 {offsets = [0, 1024], sizes = [16, 128], strides = [1, 1]} : vector<16x1536xf32> to vector<16x128xf32>
    %14 = vector.shape_cast %13 : vector<16x128xf32> to vector<2x8x128xf32>
    "tpu.trace_start"() <{level = 10 : i32, message = "bqd,bkd->bqk"}> : () -> ()
    %cst_5 = arith.constant dense<0.000000e+00> : vector<2x8x8xf32>
    %15 = tpu.matmul %10, %12, %cst_5 {dimension_numbers = #tpu.dot_dimension_numbers<[2], [2], [1], [1], [0, 0, 0, 1, 1, 1], [0], [0]>} : vector<2x8x128xf32>, vector<2x8x128xf32>, vector<2x8x8xf32> -> vector<2x8x8xf32>
    %cst_6 = arith.constant -1.000000e+30 : f32
    "tpu.trace_stop"() : () -> ()
    %16 = vector.shape_cast %7 : vector<1x8x8xi1> to vector<1x8x8xi1>
    %17 = vector.broadcast %16 : vector<1x8x8xi1> to vector<2x8x8xi1>
    %18 = vector.broadcast %cst_6 : f32 to vector<2x8x8xf32>
    %19 = arith.select %17, %15, %18 : vector<2x8x8xi1>, vector<2x8x8xf32>
    %cst_7 = arith.constant dense<0xFF800000> : vector<2x8xf32>
    %20 = vector.multi_reduction <maximumf>, %19, %cst_7 [2] : vector<2x8x8xf32> to vector<2x8xf32>
    %21 = vector.shape_cast %20 : vector<2x8xf32> to vector<2x8x1xf32>
    %22 = vector.broadcast %21 : vector<2x8x1xf32> to vector<2x8x8xf32>
    %23 = arith.subf %19, %22 : vector<2x8x8xf32>
    %24 = math.exp %23 : vector<2x8x8xf32>
    %cst_8 = arith.constant dense<0.000000e+00> : vector<2x8xf32>
    %25 = vector.multi_reduction <add>, %24, %cst_8 [2] : vector<2x8x8xf32> to vector<2x8xf32>
    %26 = vector.shape_cast %25 : vector<2x8xf32> to vector<2x8x1xf32>
    %27 = tpu.reciprocal %26 {approx = true} : vector<2x8x1xf32> -> vector<2x8x1xf32>
    %28 = vector.broadcast %27 : vector<2x8x1xf32> to vector<2x8x8xf32>
    %29 = arith.mulf %24, %28 : vector<2x8x8xf32>
    "tpu.trace_start"() <{level = 10 : i32, message = "bqk,bkd->bqd"}> : () -> ()
    %cst_9 = arith.constant dense<0.000000e+00> : vector<2x8x128xf32>
    %30 = tpu.matmul %29, %14, %cst_9 {dimension_numbers = #tpu.dot_dimension_numbers<[2], [1], [1], [2], [0, 0, 0, 1, 1, 2], [0], [0]>} : vector<2x8x8xf32>, vector<2x8x128xf32>, vector<2x8x128xf32> -> vector<2x8x128xf32>
    "tpu.trace_stop"() : () -> ()
    %31 = vector.shape_cast %30 : vector<2x8x128xf32> to vector<16x128xf32>
    %c0_10 = arith.constant 0 : index
    %c0_11 = arith.constant 0 : index
    %c0_12 = arith.constant 0 : index
    %32 = vector.load %arg3[%c0_10, %c0_11, %c0_12] : memref<4x128x384xf32, #tpu.memory_space<vmem>>, vector<1x128x384xf32>
    %33 = vector.shape_cast %32 : vector<1x128x384xf32> to vector<128x384xf32>
    %cst_13 = arith.constant dense<0.000000e+00> : vector<16x384xf32>
    %34 = tpu.matmul %31, %33, %cst_13 {dimension_numbers = #tpu.dot_dimension_numbers<[1], [0], [0], [1], [0, 0, 1, 1], [], []>} : vector<16x128xf32>, vector<128x384xf32>, vector<16x384xf32> -> vector<16x384xf32>
    %35 = arith.addf %8, %34 : vector<16x384xf32>
    %36 = vector.extract_strided_slice %3 {offsets = [0, 128], sizes = [16, 128], strides = [1, 1]} : vector<16x1536xf32> to vector<16x128xf32>
    %37 = vector.shape_cast %36 : vector<16x128xf32> to vector<2x8x128xf32>
    %38 = vector.extract_strided_slice %3 {offsets = [0, 640], sizes = [16, 128], strides = [1, 1]} : vector<16x1536xf32> to vector<16x128xf32>
    %39 = vector.shape_cast %38 : vector<16x128xf32> to vector<2x8x128xf32>
    %40 = vector.extract_strided_slice %3 {offsets = [0, 1152], sizes = [16, 128], strides = [1, 1]} : vector<16x1536xf32> to vector<16x128xf32>
    %41 = vector.shape_cast %40 : vector<16x128xf32> to vector<2x8x128xf32>
    "tpu.trace_start"() <{level = 10 : i32, message = "bqd,bkd->bqk"}> : () -> ()
    %cst_14 = arith.constant dense<0.000000e+00> : vector<2x8x8xf32>
    %42 = tpu.matmul %37, %39, %cst_14 {dimension_numbers = #tpu.dot_dimension_numbers<[2], [2], [1], [1], [0, 0, 0, 1, 1, 1], [0], [0]>} : vector<2x8x128xf32>, vector<2x8x128xf32>, vector<2x8x8xf32> -> vector<2x8x8xf32>
    %cst_15 = arith.constant -1.000000e+30 : f32
    "tpu.trace_stop"() : () -> ()
    %43 = vector.shape_cast %7 : vector<1x8x8xi1> to vector<1x8x8xi1>
    %44 = vector.broadcast %43 : vector<1x8x8xi1> to vector<2x8x8xi1>
    %45 = vector.broadcast %cst_15 : f32 to vector<2x8x8xf32>
    %46 = arith.select %44, %42, %45 : vector<2x8x8xi1>, vector<2x8x8xf32>
    %cst_16 = arith.constant dense<0xFF800000> : vector<2x8xf32>
    %47 = vector.multi_reduction <maximumf>, %46, %cst_16 [2] : vector<2x8x8xf32> to vector<2x8xf32>
    %48 = vector.shape_cast %47 : vector<2x8xf32> to vector<2x8x1xf32>
    %49 = vector.broadcast %48 : vector<2x8x1xf32> to vector<2x8x8xf32>
    %50 = arith.subf %46, %49 : vector<2x8x8xf32>
    %51 = math.exp %50 : vector<2x8x8xf32>
    %cst_17 = arith.constant dense<0.000000e+00> : vector<2x8xf32>
    %52 = vector.multi_reduction <add>, %51, %cst_17 [2] : vector<2x8x8xf32> to vector<2x8xf32>
    %53 = vector.shape_cast %52 : vector<2x8xf32> to vector<2x8x1xf32>
    %54 = tpu.reciprocal %53 {approx = true} : vector<2x8x1xf32> -> vector<2x8x1xf32>
    %55 = vector.broadcast %54 : vector<2x8x1xf32> to vector<2x8x8xf32>
    %56 = arith.mulf %51, %55 : vector<2x8x8xf32>
    "tpu.trace_start"() <{level = 10 : i32, message = "bqk,bkd->bqd"}> : () -> ()
    %cst_18 = arith.constant dense<0.000000e+00> : vector<2x8x128xf32>
    %57 = tpu.matmul %56, %41, %cst_18 {dimension_numbers = #tpu.dot_dimension_numbers<[2], [1], [1], [2], [0, 0, 0, 1, 1, 2], [0], [0]>} : vector<2x8x8xf32>, vector<2x8x128xf32>, vector<2x8x128xf32> -> vector<2x8x128xf32>
    "tpu.trace_stop"() : () -> ()
    %58 = vector.shape_cast %57 : vector<2x8x128xf32> to vector<16x128xf32>
    %c1 = arith.constant 1 : index
    %c0_19 = arith.constant 0 : index
    %c0_20 = arith.constant 0 : index
    %59 = vector.load %arg3[%c1, %c0_19, %c0_20] : memref<4x128x384xf32, #tpu.memory_space<vmem>>, vector<1x128x384xf32>
    %60 = vector.shape_cast %59 : vector<1x128x384xf32> to vector<128x384xf32>
    %cst_21 = arith.constant dense<0.000000e+00> : vector<16x384xf32>
    %61 = tpu.matmul %58, %60, %cst_21 {dimension_numbers = #tpu.dot_dimension_numbers<[1], [0], [0], [1], [0, 0, 1, 1], [], []>} : vector<16x128xf32>, vector<128x384xf32>, vector<16x384xf32> -> vector<16x384xf32>
    %62 = arith.addf %35, %61 : vector<16x384xf32>
    %63 = vector.extract_strided_slice %3 {offsets = [0, 256], sizes = [16, 128], strides = [1, 1]} : vector<16x1536xf32> to vector<16x128xf32>
    %64 = vector.shape_cast %63 : vector<16x128xf32> to vector<2x8x128xf32>
    %65 = vector.extract_strided_slice %3 {offsets = [0, 768], sizes = [16, 128], strides = [1, 1]} : vector<16x1536xf32> to vector<16x128xf32>
    %66 = vector.shape_cast %65 : vector<16x128xf32> to vector<2x8x128xf32>
    %67 = vector.extract_strided_slice %3 {offsets = [0, 1280], sizes = [16, 128], strides = [1, 1]} : vector<16x1536xf32> to vector<16x128xf32>
    %68 = vector.shape_cast %67 : vector<16x128xf32> to vector<2x8x128xf32>
    "tpu.trace_start"() <{level = 10 : i32, message = "bqd,bkd->bqk"}> : () -> ()
    %cst_22 = arith.constant dense<0.000000e+00> : vector<2x8x8xf32>
    %69 = tpu.matmul %64, %66, %cst_22 {dimension_numbers = #tpu.dot_dimension_numbers<[2], [2], [1], [1], [0, 0, 0, 1, 1, 1], [0], [0]>} : vector<2x8x128xf32>, vector<2x8x128xf32>, vector<2x8x8xf32> -> vector<2x8x8xf32>
    %cst_23 = arith.constant -1.000000e+30 : f32
    "tpu.trace_stop"() : () -> ()
    %70 = vector.shape_cast %7 : vector<1x8x8xi1> to vector<1x8x8xi1>
    %71 = vector.broadcast %70 : vector<1x8x8xi1> to vector<2x8x8xi1>
    %72 = vector.broadcast %cst_23 : f32 to vector<2x8x8xf32>
    %73 = arith.select %71, %69, %72 : vector<2x8x8xi1>, vector<2x8x8xf32>
    %cst_24 = arith.constant dense<0xFF800000> : vector<2x8xf32>
    %74 = vector.multi_reduction <maximumf>, %73, %cst_24 [2] : vector<2x8x8xf32> to vector<2x8xf32>
    %75 = vector.shape_cast %74 : vector<2x8xf32> to vector<2x8x1xf32>
    %76 = vector.broadcast %75 : vector<2x8x1xf32> to vector<2x8x8xf32>
    %77 = arith.subf %73, %76 : vector<2x8x8xf32>
    %78 = math.exp %77 : vector<2x8x8xf32>
    %cst_25 = arith.constant dense<0.000000e+00> : vector<2x8xf32>
    %79 = vector.multi_reduction <add>, %78, %cst_25 [2] : vector<2x8x8xf32> to vector<2x8xf32>
    %80 = vector.shape_cast %79 : vector<2x8xf32> to vector<2x8x1xf32>
    %81 = tpu.reciprocal %80 {approx = true} : vector<2x8x1xf32> -> vector<2x8x1xf32>
    %82 = vector.broadcast %81 : vector<2x8x1xf32> to vector<2x8x8xf32>
    %83 = arith.mulf %78, %82 : vector<2x8x8xf32>
    "tpu.trace_start"() <{level = 10 : i32, message = "bqk,bkd->bqd"}> : () -> ()
    %cst_26 = arith.constant dense<0.000000e+00> : vector<2x8x128xf32>
    %84 = tpu.matmul %83, %68, %cst_26 {dimension_numbers = #tpu.dot_dimension_numbers<[2], [1], [1], [2], [0, 0, 0, 1, 1, 2], [0], [0]>} : vector<2x8x8xf32>, vector<2x8x128xf32>, vector<2x8x128xf32> -> vector<2x8x128xf32>
    "tpu.trace_stop"() : () -> ()
    %85 = vector.shape_cast %84 : vector<2x8x128xf32> to vector<16x128xf32>
    %c2 = arith.constant 2 : index
    %c0_27 = arith.constant 0 : index
    %c0_28 = arith.constant 0 : index
    %86 = vector.load %arg3[%c2, %c0_27, %c0_28] : memref<4x128x384xf32, #tpu.memory_space<vmem>>, vector<1x128x384xf32>
    %87 = vector.shape_cast %86 : vector<1x128x384xf32> to vector<128x384xf32>
    %cst_29 = arith.constant dense<0.000000e+00> : vector<16x384xf32>
    %88 = tpu.matmul %85, %87, %cst_29 {dimension_numbers = #tpu.dot_dimension_numbers<[1], [0], [0], [1], [0, 0, 1, 1], [], []>} : vector<16x128xf32>, vector<128x384xf32>, vector<16x384xf32> -> vector<16x384xf32>
    %89 = arith.addf %62, %88 : vector<16x384xf32>
    %90 = vector.extract_strided_slice %3 {offsets = [0, 384], sizes = [16, 128], strides = [1, 1]} : vector<16x1536xf32> to vector<16x128xf32>
    %91 = vector.shape_cast %90 : vector<16x128xf32> to vector<2x8x128xf32>
    %92 = vector.extract_strided_slice %3 {offsets = [0, 896], sizes = [16, 128], strides = [1, 1]} : vector<16x1536xf32> to vector<16x128xf32>
    %93 = vector.shape_cast %92 : vector<16x128xf32> to vector<2x8x128xf32>
    %94 = vector.extract_strided_slice %3 {offsets = [0, 1408], sizes = [16, 128], strides = [1, 1]} : vector<16x1536xf32> to vector<16x128xf32>
    %95 = vector.shape_cast %94 : vector<16x128xf32> to vector<2x8x128xf32>
    "tpu.trace_start"() <{level = 10 : i32, message = "bqd,bkd->bqk"}> : () -> ()
    %cst_30 = arith.constant dense<0.000000e+00> : vector<2x8x8xf32>
    %96 = tpu.matmul %91, %93, %cst_30 {dimension_numbers = #tpu.dot_dimension_numbers<[2], [2], [1], [1], [0, 0, 0, 1, 1, 1], [0], [0]>} : vector<2x8x128xf32>, vector<2x8x128xf32>, vector<2x8x8xf32> -> vector<2x8x8xf32>
    %cst_31 = arith.constant -1.000000e+30 : f32
    "tpu.trace_stop"() : () -> ()
    %97 = vector.shape_cast %7 : vector<1x8x8xi1> to vector<1x8x8xi1>
    %98 = vector.broadcast %97 : vector<1x8x8xi1> to vector<2x8x8xi1>
    %99 = vector.broadcast %cst_31 : f32 to vector<2x8x8xf32>
    %100 = arith.select %98, %96, %99 : vector<2x8x8xi1>, vector<2x8x8xf32>
    %cst_32 = arith.constant dense<0xFF800000> : vector<2x8xf32>
    %101 = vector.multi_reduction <maximumf>, %100, %cst_32 [2] : vector<2x8x8xf32> to vector<2x8xf32>
    %102 = vector.shape_cast %101 : vector<2x8xf32> to vector<2x8x1xf32>
    %103 = vector.broadcast %102 : vector<2x8x1xf32> to vector<2x8x8xf32>
    %104 = arith.subf %100, %103 : vector<2x8x8xf32>
    %105 = math.exp %104 : vector<2x8x8xf32>
    %cst_33 = arith.constant dense<0.000000e+00> : vector<2x8xf32>
    %106 = vector.multi_reduction <add>, %105, %cst_33 [2] : vector<2x8x8xf32> to vector<2x8xf32>
    %107 = vector.shape_cast %106 : vector<2x8xf32> to vector<2x8x1xf32>
    %108 = tpu.reciprocal %107 {approx = true} : vector<2x8x1xf32> -> vector<2x8x1xf32>
    %109 = vector.broadcast %108 : vector<2x8x1xf32> to vector<2x8x8xf32>
    %110 = arith.mulf %105, %109 : vector<2x8x8xf32>
    "tpu.trace_start"() <{level = 10 : i32, message = "bqk,bkd->bqd"}> : () -> ()
    %cst_34 = arith.constant dense<0.000000e+00> : vector<2x8x128xf32>
    %111 = tpu.matmul %110, %95, %cst_34 {dimension_numbers = #tpu.dot_dimension_numbers<[2], [1], [1], [2], [0, 0, 0, 1, 1, 2], [0], [0]>} : vector<2x8x8xf32>, vector<2x8x128xf32>, vector<2x8x128xf32> -> vector<2x8x128xf32>
    "tpu.trace_stop"() : () -> ()
    %112 = vector.shape_cast %111 : vector<2x8x128xf32> to vector<16x128xf32>
    %c3 = arith.constant 3 : index
    %c0_35 = arith.constant 0 : index
    %c0_36 = arith.constant 0 : index
    %113 = vector.load %arg3[%c3, %c0_35, %c0_36] : memref<4x128x384xf32, #tpu.memory_space<vmem>>, vector<1x128x384xf32>
    %114 = vector.shape_cast %113 : vector<1x128x384xf32> to vector<128x384xf32>
    %cst_37 = arith.constant dense<0.000000e+00> : vector<16x384xf32>
    %115 = tpu.matmul %112, %114, %cst_37 {dimension_numbers = #tpu.dot_dimension_numbers<[1], [0], [0], [1], [0, 0, 1, 1], [], []>} : vector<16x128xf32>, vector<128x384xf32>, vector<16x384xf32> -> vector<16x384xf32>
    %116 = arith.addf %89, %115 : vector<16x384xf32>
    %c0_38 = arith.constant 0 : index
    %c0_39 = arith.constant 0 : index
    %117 = vector.load %arg4[%c0_38, %c0_39] : memref<1x384xf32, #tpu.memory_space<vmem>>, vector<1x384xf32>
    %118 = vector.broadcast %117 : vector<1x384xf32> to vector<16x384xf32>
    %119 = arith.addf %116, %118 : vector<16x384xf32>
    %120 = vector.shape_cast %119 : vector<16x384xf32> to vector<2x8x384xf32>
    %c0_40 = arith.constant 0 : index
    %c0_41 = arith.constant 0 : index
    %c0_42 = arith.constant 0 : index
    %121 = vector.load %arg5[%c0_40, %c0_41, %c0_42] : memref<2x8x384xf32, #tpu.memory_space<vmem>>, vector<2x8x384xf32>
    tpu.vector_store %arg5[%c0_40, %c0_41, %c0_42], %120 {strides = array<i32>} : memref<2x8x384xf32, #tpu.memory_space<vmem>>, vector<2x8x384xf32>,
    return
  }
  func.func @transform_0(%arg0: i32) -> (i32, i32, i32) {
    %c0_i32 = arith.constant 0 : i32
    %c0_i32_0 = arith.constant 0 : i32
    %c0_i32_1 = arith.constant 0 : i32
    return %arg0, %c0_i32, %c0_i32_0 : i32, i32, i32
  }
  func.func @transform_1(%arg0: i32) -> (i32, i32) {
    %c0_i32 = arith.constant 0 : i32
    %c0_i32_0 = arith.constant 0 : i32
    %c0_i32_1 = arith.constant 0 : i32
    return %c0_i32, %c0_i32_0 : i32, i32
  }
  func.func @transform_2(%arg0: i32) -> (i32, i32, i32) {
    %c0_i32 = arith.constant 0 : i32
    %c0_i32_0 = arith.constant 0 : i32
    %c0_i32_1 = arith.constant 0 : i32
    %c0_i32_2 = arith.constant 0 : i32
    return %c0_i32, %c0_i32_0, %c0_i32_1 : i32, i32, i32
  }
  func.func @transform_3(%arg0: i32) -> (i32, i32) {
    %c0_i32 = arith.constant 0 : i32
    %c0_i32_0 = arith.constant 0 : i32
    %c0_i32_1 = arith.constant 0 : i32
    return %c0_i32, %c0_i32_0 : i32, i32
  }
  func.func @transform_4(%arg0: i32) -> (i32, i32, i32) {
    %c0_i32 = arith.constant 0 : i32
    %c0_i32_0 = arith.constant 0 : i32
    %c0_i32_1 = arith.constant 0 : i32
    return %arg0, %c0_i32, %c0_i32_0 : i32, i32, i32
  }
}

</mosaic_0001>

<bundles_post_ra>
// kernel: multi_head_attention.1
= control target key start
LH: loop header
LB: loop body
LE: loop exit
PB: predicated region body
PF: predicated region fallthrough
CT: control target
= control target key end

     0   :  { %s5255_s0 = inlined_call_operand.vmem [shape: f32[2,8,384], index: 0, kind: input, shape index: {}]   ;;  %s5256_s1 = inlined_call_operand.vmem [shape: f32[384,1536], index: 1, kind: input, shape index: {}]   ;;  %s5257_s2 = inlined_call_operand.vmem [shape: f32[4,128,384], index: 2, kind: input, shape index: {}]   ;;  %s5258_s3 = inlined_call_operand.vmem [shape: f32[1,384], index: 3, kind: input, shape index: {}]   ;;  %s5259_s4 = inlined_call_operand.hbm [shape: f32[2,8,384], index: 4, kind: output, shape index: {}]  }
   0x1   :  { %v396_v0 = vld [vmem:[%s5256_s1 + $0xba0] sm:$0xff]  ;;  %v205_v4 = vld [vmem:[%s5256_s1 + $0x5a8] sm:$0xff]  ;;  %v206_v60 = vld [vmem:[%s5256_s1 + $0x5b0] sm:$0xff] }
   0x2   :  { %v588_v1 = vld [vmem:[%s5256_s1 + $0x11a0] sm:$0xff]  ;;  %623 = vmatpush.msra.mxu1 %v396_v0  ;;  %669 = vmatpush.msra.mxu3 %v205_v4  ;;  %v193_v7 = vld [vmem:[%s5256_s1 + $0x548] sm:$0xff]  ;;  %v194_v0 = vld [vmem:[%s5256_s1 + $0x550] sm:$0xff] }
   0x3   :  { %v384_v2 = vld [vmem:[%s5256_s1 + $0xb40] sm:$0xff]  ;;  %646 = vmatpush.msra.mxu2 %v588_v1  ;;  %v181_v8 = vld [vmem:[%s5256_s1 + $0x4e8] sm:$0xff]  ;;  %v398_v1 = vld [vmem:[%s5256_s1 + $0xbb0] sm:$0xff] }
   0x4   :  { %v576_v3 = vld [vmem:[%s5256_s1 + $0x1140] sm:$0xff]  ;;  %624 = vmatpush.msra.mxu1 %v384_v2  ;;  %670 = vmatpush.msra.mxu3 %v193_v7  ;;  %v169_v11 = vld [vmem:[%s5256_s1 + $0x488] sm:$0xff]  ;;  %v182_v4 = vld [vmem:[%s5256_s1 + $0x4f0] sm:$0xff] }
   0x5   :  { %v372_v5 = vld [vmem:[%s5256_s1 + $0xae0] sm:$0xff]  ;;  %647 = vmatpush.msra.mxu2 %v576_v3  ;;  %v157_v15 = vld [vmem:[%s5256_s1 + $0x428] sm:$0xff] }
   0x6   :  { %v564_v6 = vld [vmem:[%s5256_s1 + $0x10e0] sm:$0xff]  ;;  %625 = vmatpush.msra.mxu1 %v372_v5  ;;  %671 = vmatpush.msra.mxu3 %v181_v8  ;;  %v145_v19 = vld [vmem:[%s5256_s1 + $0x3c8] sm:$0xff]  ;;  %v386_v5 = vld [vmem:[%s5256_s1 + $0xb50] sm:$0xff] }
   0x7   :  { %v360_v9 = vld [vmem:[%s5256_s1 + $0xa80] sm:$0xff]  ;;  %648 = vmatpush.msra.mxu2 %v564_v6  ;;  %v133_v23 = vld [vmem:[%s5256_s1 + $0x368] sm:$0xff]  ;;  %v170_v8 = vld [vmem:[%s5256_s1 + $0x490] sm:$0xff] }
   0x8   :  { %v552_v10 = vld [vmem:[%s5256_s1 + $0x1080] sm:$0xff]  ;;  %626 = vmatpush.msra.mxu1 %v360_v9  ;;  %672 = vmatpush.msra.mxu3 %v169_v11  ;;  %v121_v27 = vld [vmem:[%s5256_s1 + $0x308] sm:$0xff]  ;;  %v374_v9 = vld [vmem:[%s5256_s1 + $0xaf0] sm:$0xff] }
   0x9   :  { %v348_v12 = vld [vmem:[%s5256_s1 + $0xa20] sm:$0xff]  ;;  %649 = vmatpush.msra.mxu2 %v552_v10  ;;  %v109_v31 = vld [vmem:[%s5256_s1 + $0x2a8] sm:$0xff] }
   0xa   :  { %v540_v13 = vld [vmem:[%s5256_s1 + $0x1020] sm:$0xff]  ;;  %627 = vmatpush.msra.mxu1 %v348_v12  ;;  %673 = vmatpush.msra.mxu3 %v157_v15  ;;  %v97_v35 = vld [vmem:[%s5256_s1 + $0x248] sm:$0xff]  ;;  %v158_v12 = vld [vmem:[%s5256_s1 + $0x430] sm:$0xff] }
   0xb   :  { %v204_v14 = vld [vmem:[%s5256_s1 + $0x5a0] sm:$0xff]  ;;  %650 = vmatpush.msra.mxu2 %v540_v13  ;;  %v85_v39 = vld [vmem:[%s5256_s1 + $0x1e8] sm:$0xff]  ;;  %v362_v13 = vld [vmem:[%s5256_s1 + $0xa90] sm:$0xff] }
   0xc   :  { %v336_v16 = vld [vmem:[%s5256_s1 + $0x9c0] sm:$0xff]  ;;  %600 = vmatpush.msra.mxu0 %v204_v14  ;;  %674 = vmatpush.msra.mxu3 %v145_v19  ;;  %v73_v43 = vld [vmem:[%s5256_s1 + $0x188] sm:$0xff] }
   0xd   :  { %v528_v17 = vld [vmem:[%s5256_s1 + $0xfc0] sm:$0xff]  ;;  %628 = vmatpush.msra.mxu1 %v336_v16  ;;  %v61_v47 = vld [vmem:[%s5256_s1 + $0x128] sm:$0xff]  ;;  %v146_v16 = vld [vmem:[%s5256_s1 + $0x3d0] sm:$0xff] }
   0xe   :  { %v192_v18 = vld [vmem:[%s5256_s1 + $0x540] sm:$0xff]  ;;  %651 = vmatpush.msra.mxu2 %v528_v17  ;;  %675 = vmatpush.msra.mxu3 %v133_v23  ;;  %v49_v51 = vld [vmem:[%s5256_s1 + $0xc8] sm:$0xff]  ;;  %v350_v17 = vld [vmem:[%s5256_s1 + $0xa30] sm:$0xff] }
   0xf   :  { %v180_v20 = vld [vmem:[%s5256_s1 + $0x4e0] sm:$0xff]  ;;  %601 = vmatpush.msra.mxu0 %v192_v18  ;;  %v37_v55 = vld [vmem:[%s5256_s1 + $0x68] sm:$0xff] }
  0x10   :  { %v324_v21 = vld [vmem:[%s5256_s1 + $0x960] sm:$0xff]  ;;  %676 = vmatpush.msra.mxu3 %v121_v27  ;;  %v589_v59 = vld [vmem:[%s5256_s1 + $0x11a8] sm:$0xff] }
  0x11   :  { %v516_v22 = vld [vmem:[%s5256_s1 + $0xf60] sm:$0xff]  ;;  %602 = vmatpush.msra.mxu0 %v180_v20  ;;  %629 = vmatpush.msra.mxu1 %v324_v21  ;;  %v25_v61 = vld [vmem:[%s5256_s1 + $0x8] sm:$0xff]  ;;  %v134_v20 = vld [vmem:[%s5256_s1 + $0x370] sm:$0xff] }
  0x12   :  { %v168_v24 = vld [vmem:[%s5256_s1 + $0x480] sm:$0xff]  ;;  %652 = vmatpush.msra.mxu2 %v516_v22  ;;  %677 = vmatpush.msra.mxu3 %v109_v31  ;;  %v577_v63 = vld [vmem:[%s5256_s1 + $0x1148] sm:$0xff]  ;;  %v338_v21 = vld [vmem:[%s5256_s1 + $0x9d0] sm:$0xff] }
  0x13   :  { %v312_v25 = vld [vmem:[%s5256_s1 + $0x900] sm:$0xff]  ;;  %603 = vmatpush.msra.mxu0 %v168_v24  ;;  %v565_v3 = vld [vmem:[%s5256_s1 + $0x10e8] sm:$0xff]  ;;  %v122_v24 = vld [vmem:[%s5256_s1 + $0x310] sm:$0xff] }
  0x14   :  { %v504_v26 = vld [vmem:[%s5256_s1 + $0xf00] sm:$0xff]  ;;  %630 = vmatpush.msra.mxu1 %v312_v25  ;;  %678 = vmatpush.msra.mxu3 %v97_v35  ;;  %v553_v7 = vld [vmem:[%s5256_s1 + $0x1088] sm:$0xff]  ;;  %v326_v25 = vld [vmem:[%s5256_s1 + $0x970] sm:$0xff] }
  0x15   :  { %v156_v28 = vld [vmem:[%s5256_s1 + $0x420] sm:$0xff]  ;;  %653 = vmatpush.msra.mxu2 %v504_v26  ;;  %v541_v11 = vld [vmem:[%s5256_s1 + $0x1028] sm:$0xff] }
  0x16   :  { %v300_v29 = vld [vmem:[%s5256_s1 + $0x8a0] sm:$0xff]  ;;  %604 = vmatpush.msra.mxu0 %v156_v28  ;;  %679 = vmatpush.msra.mxu3 %v85_v39  ;;  %v397_v14 = vld [vmem:[%s5256_s1 + $0xba8] sm:$0xff]  ;;  %v110_v28 = vld [vmem:[%s5256_s1 + $0x2b0] sm:$0xff] }
  0x17   :  { %v492_v30 = vld [vmem:[%s5256_s1 + $0xea0] sm:$0xff]  ;;  %631 = vmatpush.msra.mxu1 %v300_v29  ;;  %v529_v15 = vld [vmem:[%s5256_s1 + $0xfc8] sm:$0xff]  ;;  %v314_v29 = vld [vmem:[%s5256_s1 + $0x910] sm:$0xff] }
  0x18   :  { %v144_v32 = vld [vmem:[%s5256_s1 + $0x3c0] sm:$0xff]  ;;  %654 = vmatpush.msra.mxu2 %v492_v30  ;;  %680 = vmatpush.msra.mxu3 %v73_v43  ;;  %v385_v18 = vld [vmem:[%s5256_s1 + $0xb48] sm:$0xff] }
  0x19   :  { %v288_v33 = vld [vmem:[%s5256_s1 + $0x840] sm:$0xff]  ;;  %605 = vmatpush.msra.mxu0 %v144_v32  ;;  %v517_v19 = vld [vmem:[%s5256_s1 + $0xf68] sm:$0xff]  ;;  %v98_v32 = vld [vmem:[%s5256_s1 + $0x250] sm:$0xff] }
  0x1a   :  { %v480_v34 = vld [vmem:[%s5256_s1 + $0xe40] sm:$0xff]  ;;  %632 = vmatpush.msra.mxu1 %v288_v33  ;;  %681 = vmatpush.msra.mxu3 %v61_v47  ;;  %v373_v22 = vld [vmem:[%s5256_s1 + $0xae8] sm:$0xff]  ;;  %v302_v33 = vld [vmem:[%s5256_s1 + $0x8b0] sm:$0xff] }
  0x1b   :  { %v132_v36 = vld [vmem:[%s5256_s1 + $0x360] sm:$0xff]  ;;  %655 = vmatpush.msra.mxu2 %v480_v34  ;;  %v505_v23 = vld [vmem:[%s5256_s1 + $0xf08] sm:$0xff] }
  0x1c   :  { %v276_v37 = vld [vmem:[%s5256_s1 + $0x7e0] sm:$0xff]  ;;  %606 = vmatpush.msra.mxu0 %v132_v36  ;;  %682 = vmatpush.msra.mxu3 %v49_v51  ;;  %v361_v26 = vld [vmem:[%s5256_s1 + $0xa88] sm:$0xff]  ;;  %v86_v36 = vld [vmem:[%s5256_s1 + $0x1f0] sm:$0xff] }
  0x1d   :  { %v468_v38 = vld [vmem:[%s5256_s1 + $0xde0] sm:$0xff]  ;;  %633 = vmatpush.msra.mxu1 %v276_v37  ;;  %v493_v27 = vld [vmem:[%s5256_s1 + $0xea8] sm:$0xff]  ;;  %v290_v37 = vld [vmem:[%s5256_s1 + $0x850] sm:$0xff] }
  0x1e   :  { %v120_v40 = vld [vmem:[%s5256_s1 + $0x300] sm:$0xff]  ;;  %656 = vmatpush.msra.mxu2 %v468_v38  ;;  %683 = vmatpush.msra.mxu3 %v37_v55  ;;  %v349_v30 = vld [vmem:[%s5256_s1 + $0xa28] sm:$0xff] }
  0x1f   :  { %v264_v41 = vld [vmem:[%s5256_s1 + $0x780] sm:$0xff]  ;;  %607 = vmatpush.msra.mxu0 %v120_v40  ;;  %v481_v31 = vld [vmem:[%s5256_s1 + $0xe48] sm:$0xff]  ;;  %v74_v40 = vld [vmem:[%s5256_s1 + $0x190] sm:$0xff] }
  0x20   :  { %v456_v42 = vld [vmem:[%s5256_s1 + $0xd80] sm:$0xff]  ;;  %634 = vmatpush.msra.mxu1 %v264_v41  ;;  %684 = vmatpush.msra.mxu3 %v25_v61  ;;  %v337_v34 = vld [vmem:[%s5256_s1 + $0x9c8] sm:$0xff]  ;;  %v278_v41 = vld [vmem:[%s5256_s1 + $0x7f0] sm:$0xff] }
  0x21   :  { %v108_v44 = vld [vmem:[%s5256_s1 + $0x2a0] sm:$0xff]  ;;  %657 = vmatpush.msra.mxu2 %v456_v42  ;;  %v469_v35 = vld [vmem:[%s5256_s1 + $0xde8] sm:$0xff]  ;;  %v2966_v42 = vld [vmem:[%s5255_s0 + $0x10] sm:$0xff] }
  0x22   :  { %v252_v45 = vld [vmem:[%s5256_s1 + $0x720] sm:$0xff]  ;;  %608 = vmatpush.msra.mxu0 %v108_v44  ;;  %761 = vmatpush.msrb.mxu3 %v398_v1  ;;  %v325_v38 = vld [vmem:[%s5256_s1 + $0x968] sm:$0xff]  ;;  %v62_v44 = vld [vmem:[%s5256_s1 + $0x130] sm:$0xff] }
  0x23   :  { %v444_v46 = vld [vmem:[%s5256_s1 + $0xd20] sm:$0xff]  ;;  %635 = vmatpush.msra.mxu1 %v252_v45  ;;  %v457_v39 = vld [vmem:[%s5256_s1 + $0xd88] sm:$0xff]  ;;  %v266_v45 = vld [vmem:[%s5256_s1 + $0x790] sm:$0xff] }
  0x24   :  { %v96_v48 = vld [vmem:[%s5256_s1 + $0x240] sm:$0xff]  ;;  %658 = vmatpush.msra.mxu2 %v444_v46  ;;  %762 = vmatpush.msrb.mxu3 %v386_v5  ;;  %v445_v43 = vld [vmem:[%s5256_s1 + $0xd28] sm:$0xff] }
  0x25   :  { %v240_v49 = vld [vmem:[%s5256_s1 + $0x6c0] sm:$0xff]  ;;  %609 = vmatpush.msra.mxu0 %v96_v48  ;;  %v313_v46 = vld [vmem:[%s5256_s1 + $0x908] sm:$0xff]  ;;  %v50_v48 = vld [vmem:[%s5256_s1 + $0xd0] sm:$0xff] }
  0x26   :  { %v432_v50 = vld [vmem:[%s5256_s1 + $0xcc0] sm:$0xff]  ;;  %636 = vmatpush.msra.mxu1 %v240_v49  ;;  %763 = vmatpush.msrb.mxu3 %v374_v9  ;;  %v433_v47 = vld [vmem:[%s5256_s1 + $0xcc8] sm:$0xff]  ;;  %v254_v49 = vld [vmem:[%s5256_s1 + $0x730] sm:$0xff] }
  0x27   :  { %v84_v52 = vld [vmem:[%s5256_s1 + $0x1e0] sm:$0xff]  ;;  %659 = vmatpush.msra.mxu2 %v432_v50  ;;  %v301_v50 = vld [vmem:[%s5256_s1 + $0x8a8] sm:$0xff] }
  0x28   :  { %v228_v53 = vld [vmem:[%s5256_s1 + $0x660] sm:$0xff]  ;;  %610 = vmatpush.msra.mxu0 %v84_v52  ;;  %764 = vmatpush.msrb.mxu3 %v362_v13  ;;  %v421_v51 = vld [vmem:[%s5256_s1 + $0xc68] sm:$0xff]  ;;  %v38_v52 = vld [vmem:[%s5256_s1 + $0x70] sm:$0xff] }
  0x29   :  { %v420_v54 = vld [vmem:[%s5256_s1 + $0xc60] sm:$0xff]  ;;  %637 = vmatpush.msra.mxu1 %v228_v53  ;;  %v242_v53 = vld [vmem:[%s5256_s1 + $0x6d0] sm:$0xff]  ;;  %v409_v55 = vld [vmem:[%s5256_s1 + $0xc08] sm:$0xff] }
  0x2a   :  { %v72_v56 = vld [vmem:[%s5256_s1 + $0x180] sm:$0xff]  ;;  %660 = vmatpush.msra.mxu2 %v420_v54  ;;  %765 = vmatpush.msrb.mxu3 %v350_v17 }
  0x2b   :  { %v216_v57 = vld [vmem:[%s5256_s1 + $0x600] sm:$0xff]  ;;  %611 = vmatpush.msra.mxu0 %v72_v56  ;;  %v26_v56 = vld [vmem:[%s5256_s1 + $0x10] sm:$0xff] }
  0x2c   :  { %v408_v58 = vld [vmem:[%s5256_s1 + $0xc00] sm:$0xff]  ;;  %638 = vmatpush.msra.mxu1 %v216_v57  ;;  %766 = vmatpush.msrb.mxu3 %v338_v21 }
  0x2d   :  { %v60_v62 = vld [vmem:[%s5256_s1 + $0x120] sm:$0xff]  ;;  %661 = vmatpush.msra.mxu2 %v408_v58 }
  0x2e   :  { %715 = vmatpush.msrb.mxu1 %v589_v59  ;;  %v48_v2 = vld [vmem:[%s5256_s1 + $0xc0] sm:$0xff]  ;;  %612 = vmatpush.msra.mxu0 %v60_v62 }
  0x2f   :  { %738 = vmatpush.msrb.mxu2 %v206_v60  ;;  %v36_v6 = vld [vmem:[%s5256_s1 + $0x60] sm:$0xff]  ;;  %767 = vmatpush.msrb.mxu3 %v326_v25 }
  0x30   :  { %716 = vmatpush.msrb.mxu1 %v577_v63  ;;  %613 = vmatpush.msra.mxu0 %v48_v2  ;;  %v24_v10 = vld [vmem:[%s5256_s1] sm:$0xff] }
  0x31   :  { %739 = vmatpush.msrb.mxu2 %v194_v0  ;;  %768 = vmatpush.msrb.mxu3 %v314_v29  ;;  %v3005_v54 = vld [vmem:[%s5255_s0] sm:$0xff] }
  0x32   :  { %717 = vmatpush.msrb.mxu1 %v565_v3  ;;  %614 = vmatpush.msra.mxu0 %v36_v6 }
  0x33   :  { %740 = vmatpush.msrb.mxu2 %v182_v4  ;;  %769 = vmatpush.msrb.mxu3 %v302_v33 }
  0x34   :  { %718 = vmatpush.msrb.mxu1 %v553_v7  ;;  %615 = vmatpush.msra.mxu0 %v24_v10 }
  0x35   :  { %741 = vmatpush.msrb.mxu2 %v170_v8  ;;  %770 = vmatpush.msrb.mxu3 %v290_v37 }
  0x36   :  { %719 = vmatpush.msrb.mxu1 %v541_v11  ;;  %692 = vmatpush.msrb.mxu0 %v397_v14 }
  0x37   :  { %742 = vmatpush.msrb.mxu2 %v158_v12  ;;  %771 = vmatpush.msrb.mxu3 %v278_v41 }
  0x38   :  { %720 = vmatpush.msrb.mxu1 %v529_v15  ;;  %693 = vmatpush.msrb.mxu0 %v385_v18 }
  0x39   :  { %743 = vmatpush.msrb.mxu2 %v146_v16  ;;  %772 = vmatpush.msrb.mxu3 %v266_v45 }
  0x3a   :  { %721 = vmatpush.msrb.mxu1 %v517_v19  ;;  %694 = vmatpush.msrb.mxu0 %v373_v22 }
  0x3b   :  { %744 = vmatpush.msrb.mxu2 %v134_v20  ;;  %773 = vmatpush.msrb.mxu3 %v254_v49 }
  0x3c   :  { %722 = vmatpush.msrb.mxu1 %v505_v23  ;;  %695 = vmatpush.msrb.mxu0 %v361_v26 }
  0x3d   :  { %745 = vmatpush.msrb.mxu2 %v122_v24 }
  0x3e   :  { %723 = vmatpush.msrb.mxu1 %v493_v27  ;;  %696 = vmatpush.msrb.mxu0 %v349_v30 }
  0x3f   :  { %746 = vmatpush.msrb.mxu2 %v110_v28 }
  0x40   :  { %724 = vmatpush.msrb.mxu1 %v481_v31  ;;  %697 = vmatpush.msrb.mxu0 %v337_v34 }
  0x41   :  { %747 = vmatpush.msrb.mxu2 %v98_v32 }
  0x42   :  { %725 = vmatpush.msrb.mxu1 %v469_v35  ;;  %698 = vmatpush.msrb.mxu0 %v325_v38 }
  0x43   :  { %748 = vmatpush.msrb.mxu2 %v86_v36 }
  0x44   :  { %726 = vmatpush.msrb.mxu1 %v457_v39  ;;  %662 = vmatmul.f32.vlgmr.msra.gmra.mxu2 %v2966_v42 }
  0x45   :  { %749 = vmatpush.msrb.mxu2 %v74_v40  ;;  %699 = vmatpush.msrb.mxu0 %v313_v46 }
  0x46   :  { %727 = vmatpush.msrb.mxu1 %v445_v43 }
  0x47   :  { %750 = vmatpush.msrb.mxu2 %v62_v44  ;;  %700 = vmatpush.msrb.mxu0 %v301_v50 }
  0x48   :  { %728 = vmatpush.msrb.mxu1 %v433_v47 }
  0x49   :  { %751 = vmatpush.msrb.mxu2 %v50_v48 }
  0x4a   :  { %9 = vsyncpa [#allocation3], 0  ;;  %729 = vmatpush.msrb.mxu1 %v421_v51  ;;  %v230_v57 = vld [vmem:[%s5256_s1 + $0x670] sm:$0xff]  ;;  %v3019_v58 = vld [vmem:[%s5255_s0 + $0x8] sm:$0xff]  ;;  %774 = vmatpush.msrb.mxu3 %v242_v53  ;;  %vm1477_vm1 = vcmask 64512   ;;  %s2385_s19 = sshll.u32 %s5259_s4, 4  ;;  %s2386_s19 = int_to_ptr.hbm [resolvable:$true] %s2385_s19 }
  0x4b   :  { %752 = vmatpush.msrb.mxu2 %v38_v52  ;;  %616 = vmatmul.f32.vlgmr.msra.gmra.mxu0 %v3005_v54  ;;  %v289_v59 = vld [vmem:[%s5256_s1 + $0x848] sm:$0xff]  ;;  %v207_v60 = vld [vmem:[%s5256_s1 + $0x5b8] sm:$0xff]  ;;  %v218_v62 = vld [vmem:[%s5256_s1 + $0x610] sm:$0xff]  ;;  %s2618_s20 = smov 384   ;;  %s2619_s21 = smov 24  }
  0x4c   :  { %730 = vmatpush.msrb.mxu1 %v409_v55  ;;  %v399_v61 = vld [vmem:[%s5256_s1 + $0xbb8] sm:$0xff]  ;;  %775 = vmatpush.msrb.mxu3 %v230_v57  ;;  %v277_v63 = vld [vmem:[%s5256_s1 + $0x7e8] sm:$0xff]  ;;  %v590_v23 = vld [vmem:[%s5256_s1 + $0x11b0] sm:$0xff] }
  0x4d   :  { %753 = vmatpush.msrb.mxu2 %v26_v56  ;;  %639 = vmatmul.f32.vlgmr.msra.gmra.mxu1 %v3019_v58  ;;  %v195_v0 = vld [vmem:[%s5256_s1 + $0x558] sm:$0xff]  ;;  %v265_v3 = vld [vmem:[%s5256_s1 + $0x788] sm:$0xff]  ;;  %v578_v27 = vld [vmem:[%s5256_s1 + $0x1150] sm:$0xff] }
  0x4e   :  { %701 = vmatpush.msrb.mxu0 %v289_v59  ;;  %807 = vmatpush.msra.mxu1 %v207_v60  ;;  %v387_v1 = vld [vmem:[%s5256_s1 + $0xb58] sm:$0xff]  ;;  %v253_v7 = vld [vmem:[%s5256_s1 + $0x728] sm:$0xff]  ;;  %v566_v31 = vld [vmem:[%s5256_s1 + $0x10f0] sm:$0xff] }
  0x4f   :  { %830 = vmatpush.msra.mxu2 %v399_v61  ;;  %776 = vmatpush.msrb.mxu3 %v218_v62  ;;  %v591_v2 = vld [vmem:[%s5256_s1 + $0x11b8] sm:$0xff]  ;;  %v241_v11 = vld [vmem:[%s5256_s1 + $0x6c8] sm:$0xff]  ;;  %v554_v36 = vld [vmem:[%s5256_s1 + $0x1090] sm:$0xff] }
  0x50   :  { %685 = vmatmul.f32.vlgmr.msra.gmra.mxu3 %v3005_v54  ;;  %702 = vmatpush.msrb.mxu0 %v277_v63  ;;  %v183_v4 = vld [vmem:[%s5256_s1 + $0x4f8] sm:$0xff]  ;;  %v229_v15 = vld [vmem:[%s5256_s1 + $0x668] sm:$0xff]  ;;  %v542_v43 = vld [vmem:[%s5256_s1 + $0x1030] sm:$0xff] }
  0x51   :  { %v375_v5 = vld [vmem:[%s5256_s1 + $0xaf8] sm:$0xff]  ;;  %808 = vmatpush.msra.mxu1 %v195_v0  ;;  %831 = vmatpush.msra.mxu2 %v387_v1  ;;  %v217_v19 = vld [vmem:[%s5256_s1 + $0x608] sm:$0xff]  ;;  %v3182_v46 = vld [vmem:[%s5255_s0 + $0x20] sm:$0xff] }
  0x52   :  { %v579_v6 = vld [vmem:[%s5256_s1 + $0x1158] sm:$0xff]  ;;  %853 = vmatpush.msra.mxu3 %v591_v2  ;;  %703 = vmatpush.msrb.mxu0 %v265_v3  ;;  %v3147_v35 = vld [vmem:[%s5255_s0 + $0x28] sm:$0xff]  ;;  %v530_v47 = vld [vmem:[%s5256_s1 + $0xfd0] sm:$0xff] }
  0x53   :  { %v171_v8 = vld [vmem:[%s5256_s1 + $0x498] sm:$0xff]  ;;  %809 = vmatpush.msra.mxu1 %v183_v4  ;;  %832 = vmatpush.msra.mxu2 %v375_v5  ;;  %v518_v51 = vld [vmem:[%s5256_s1 + $0xf70] sm:$0xff]  ;;  %v400_v2 = vld [vmem:[%s5256_s1 + $0xbc0] sm:$0xff] }
  0x54   :  { %v363_v9 = vld [vmem:[%s5256_s1 + $0xa98] sm:$0xff]  ;;  %854 = vmatpush.msra.mxu3 %v579_v6  ;;  %704 = vmatpush.msrb.mxu0 %v253_v7  ;;  %v506_v56 = vld [vmem:[%s5256_s1 + $0xf10] sm:$0xff]  ;;  %v592_v3 = vld [vmem:[%s5256_s1 + $0x11c0] sm:$0xff] }
  0x55   :  { %v567_v10 = vld [vmem:[%s5256_s1 + $0x10f8] sm:$0xff]  ;;  %810 = vmatpush.msra.mxu1 %v171_v8  ;;  %833 = vmatpush.msra.mxu2 %v363_v9  ;;  %v494_v61 = vld [vmem:[%s5256_s1 + $0xeb0] sm:$0xff]  ;;  %v388_v6 = vld [vmem:[%s5256_s1 + $0xb60] sm:$0xff] }
  0x56   :  { %v159_v12 = vld [vmem:[%s5256_s1 + $0x438] sm:$0xff]  ;;  %855 = vmatpush.msra.mxu3 %v567_v10  ;;  %705 = vmatpush.msrb.mxu0 %v241_v11  ;;  %v482_v1 = vld [vmem:[%s5256_s1 + $0xe50] sm:$0xff]  ;;  %v580_v7 = vld [vmem:[%s5256_s1 + $0x1160] sm:$0xff] }
  0x57   :  { %v351_v13 = vld [vmem:[%s5256_s1 + $0xa38] sm:$0xff]  ;;  %811 = vmatpush.msra.mxu1 %v159_v12  ;;  %665 = vmatmul.f32.gmra.mxu2 %v3147_v35  ;;  %v470_v5 = vld [vmem:[%s5256_s1 + $0xdf0] sm:$0xff]  ;;  %v209_v8 = vld [vmem:[%s5256_s1 + $0x5c8] sm:$0xff] }
  0x58   :  { %v555_v14 = vld [vmem:[%s5256_s1 + $0x1098] sm:$0xff]  ;;  %834 = vmatpush.msra.mxu2 %v351_v13  ;;  %706 = vmatpush.msrb.mxu0 %v229_v15  ;;  %v458_v9 = vld [vmem:[%s5256_s1 + $0xd90] sm:$0xff]  ;;  %v376_v10 = vld [vmem:[%s5256_s1 + $0xb00] sm:$0xff] }
  0x59   :  { %v147_v16 = vld [vmem:[%s5256_s1 + $0x3d8] sm:$0xff]  ;;  %856 = vmatpush.msra.mxu3 %v555_v14  ;;  %642 = vmatmul.f32.gmra.mxu1 %v3182_v46  ;;  %v568_v11 = vld [vmem:[%s5256_s1 + $0x1100] sm:$0xff]  ;;  %v197_v12 = vld [vmem:[%s5256_s1 + $0x568] sm:$0xff] }
  0x5a   :  { %v339_v17 = vld [vmem:[%s5256_s1 + $0x9d8] sm:$0xff]  ;;  %812 = vmatpush.msra.mxu1 %v147_v16  ;;  %707 = vmatpush.msrb.mxu0 %v217_v19  ;;  %v446_v13 = vld [vmem:[%s5256_s1 + $0xd30] sm:$0xff]  ;;  %v364_v14 = vld [vmem:[%s5256_s1 + $0xaa0] sm:$0xff] }
  0x5b   :  { %v543_v18 = vld [vmem:[%s5256_s1 + $0x1038] sm:$0xff]  ;;  %835 = vmatpush.msra.mxu2 %v339_v17  ;;  %v556_v15 = vld [vmem:[%s5256_s1 + $0x10a0] sm:$0xff]  ;;  %v185_v16 = vld [vmem:[%s5256_s1 + $0x508] sm:$0xff] }
  0x5c   :  { %v135_v20 = vld [vmem:[%s5256_s1 + $0x378] sm:$0xff]  ;;  %857 = vmatpush.msra.mxu3 %v543_v18  ;;  %784 = vmatpush.msra.mxu0 %v590_v23  ;;  %v434_v17 = vld [vmem:[%s5256_s1 + $0xcd0] sm:$0xff]  ;;  %v352_v18 = vld [vmem:[%s5256_s1 + $0xa40] sm:$0xff] }
  0x5d   :  { %v327_v21 = vld [vmem:[%s5256_s1 + $0x978] sm:$0xff]  ;;  %813 = vmatpush.msra.mxu1 %v135_v20  ;;  %v544_v19 = vld [vmem:[%s5256_s1 + $0x1040] sm:$0xff]  ;;  %v173_v20 = vld [vmem:[%s5256_s1 + $0x4a8] sm:$0xff] }
  0x5e   :  { %v531_v22 = vld [vmem:[%s5256_s1 + $0xfd8] sm:$0xff]  ;;  %836 = vmatpush.msra.mxu2 %v327_v21  ;;  %785 = vmatpush.msra.mxu0 %v578_v27  ;;  %v422_v21 = vld [vmem:[%s5256_s1 + $0xc70] sm:$0xff]  ;;  %v532_v23 = vld [vmem:[%s5256_s1 + $0xfe0] sm:$0xff] }
  0x5f   :  { %v123_v24 = vld [vmem:[%s5256_s1 + $0x318] sm:$0xff]  ;;  %858 = vmatpush.msra.mxu3 %v531_v22  ;;  %754 = vmatmul.f32.vlgmr.msrb.gmra.mxu2 %v3005_v54  ;;  %v340_v22 = vld [vmem:[%s5256_s1 + $0x9e0] sm:$0xff] }
  0x60   :  { %v315_v25 = vld [vmem:[%s5256_s1 + $0x918] sm:$0xff]  ;;  %814 = vmatpush.msra.mxu1 %v123_v24  ;;  %786 = vmatpush.msra.mxu0 %v566_v31  ;;  %v161_v24 = vld [vmem:[%s5256_s1 + $0x448] sm:$0xff]  ;;  %v520_v27 = vld [vmem:[%s5256_s1 + $0xf80] sm:$0xff] }
  0x61   :  { %v519_v26 = vld [vmem:[%s5256_s1 + $0xf78] sm:$0xff]  ;;  %837 = vmatpush.msra.mxu2 %v315_v25  ;;  %731 = vmatmul.f32.vlgmr.msrb.gmra.mxu1 %v2966_v42  ;;  %v410_v25 = vld [vmem:[%s5256_s1 + $0xc10] sm:$0xff]  ;;  %v508_v31 = vld [vmem:[%s5256_s1 + $0xf20] sm:$0xff] }
  0x62   :  { %v111_v28 = vld [vmem:[%s5256_s1 + $0x2b8] sm:$0xff]  ;;  %859 = vmatpush.msra.mxu3 %v519_v26  ;;  %787 = vmatpush.msra.mxu0 %v554_v36  ;;  %v328_v26 = vld [vmem:[%s5256_s1 + $0x980] sm:$0xff] }
  0x63   :  { %v303_v29 = vld [vmem:[%s5256_s1 + $0x8b8] sm:$0xff]  ;;  %815 = vmatpush.msra.mxu1 %v111_v28  ;;  %v149_v28 = vld [vmem:[%s5256_s1 + $0x3e8] sm:$0xff]  ;;  %v496_v36 = vld [vmem:[%s5256_s1 + $0xec0] sm:$0xff] }
  0x64   :  { %v507_v30 = vld [vmem:[%s5256_s1 + $0xf18] sm:$0xff]  ;;  %838 = vmatpush.msra.mxu2 %v303_v29  ;;  %788 = vmatpush.msra.mxu0 %v542_v43  ;;  %v208_v29 = vld [vmem:[%s5256_s1 + $0x5c0] sm:$0xff]  ;;  %v113_v43 = vld [vmem:[%s5256_s1 + $0x2c8] sm:$0xff] }
  0x65   :  { %v99_v32 = vld [vmem:[%s5256_s1 + $0x258] sm:$0xff]  ;;  %860 = vmatpush.msra.mxu3 %v507_v30  ;;  %v316_v30 = vld [vmem:[%s5256_s1 + $0x920] sm:$0xff] }
  0x66   :  { %v291_v33 = vld [vmem:[%s5256_s1 + $0x858] sm:$0xff]  ;;  %816 = vmatpush.msra.mxu1 %v99_v32  ;;  %789 = vmatpush.msra.mxu0 %v530_v47  ;;  %v137_v32 = vld [vmem:[%s5256_s1 + $0x388] sm:$0xff]  ;;  %v472_v47 = vld [vmem:[%s5256_s1 + $0xe00] sm:$0xff] }
  0x67   :  { %v495_v34 = vld [vmem:[%s5256_s1 + $0xeb8] sm:$0xff]  ;;  %839 = vmatpush.msra.mxu2 %v291_v33  ;;  %v196_v33 = vld [vmem:[%s5256_s1 + $0x560] sm:$0xff] }
  0x68   :  { %v87_v37 = vld [vmem:[%s5256_s1 + $0x1f8] sm:$0xff]  ;;  %861 = vmatpush.msra.mxu3 %v495_v34  ;;  %790 = vmatpush.msra.mxu0 %v518_v51  ;;  %v304_v34 = vld [vmem:[%s5256_s1 + $0x8c0] sm:$0xff] }
  0x69   :  { %v279_v38 = vld [vmem:[%s5256_s1 + $0x7f8] sm:$0xff]  ;;  %817 = vmatpush.msra.mxu1 %v87_v37  ;;  %v125_v37 = vld [vmem:[%s5256_s1 + $0x328] sm:$0xff]  ;;  %v460_v51 = vld [vmem:[%s5256_s1 + $0xda0] sm:$0xff] }
  0x6a   :  { %v483_v39 = vld [vmem:[%s5256_s1 + $0xe58] sm:$0xff]  ;;  %840 = vmatpush.msra.mxu2 %v279_v38  ;;  %791 = vmatpush.msra.mxu0 %v506_v56  ;;  %v184_v38 = vld [vmem:[%s5256_s1 + $0x500] sm:$0xff] }
  0x6b   :  { %v3165_v40 = vld [vmem:[%s5255_s0 + $0x18] sm:$0xff]  ;;  %862 = vmatpush.msra.mxu3 %v483_v39  ;;  %v292_v39 = vld [vmem:[%s5256_s1 + $0x860] sm:$0xff]  ;;  %734 = vmatmul.f32.gmra.mxu1 %v3147_v35 }
  0x6c   :  { %v75_v41 = vld [vmem:[%s5256_s1 + $0x198] sm:$0xff]  ;;  %619 = vmatmul.f32.gmra.mxu0 %v3165_v40  ;;  %688 = vmatmul.f32.gmra.mxu3 %v3165_v40  ;;  %v448_v56 = vld [vmem:[%s5256_s1 + $0xd40] sm:$0xff] }
  0x6d   :  { %v267_v44 = vld [vmem:[%s5256_s1 + $0x798] sm:$0xff]  ;;  %818 = vmatpush.msra.mxu1 %v75_v41  ;;  %792 = vmatpush.msra.mxu0 %v494_v61  ;;  %v484_v41 = vld [vmem:[%s5256_s1 + $0xe60] sm:$0xff] }
  0x6e   :  { %v471_v45 = vld [vmem:[%s5256_s1 + $0xdf8] sm:$0xff]  ;;  %841 = vmatpush.msra.mxu2 %v267_v44  ;;  %v172_v44 = vld [vmem:[%s5256_s1 + $0x4a0] sm:$0xff] }
  0x6f   :  { %v63_v48 = vld [vmem:[%s5256_s1 + $0x138] sm:$0xff]  ;;  %863 = vmatpush.msra.mxu3 %v471_v45  ;;  %793 = vmatpush.msra.mxu0 %v482_v1  ;;  %v280_v45 = vld [vmem:[%s5256_s1 + $0x800] sm:$0xff] }
  0x70   :  { %v255_v49 = vld [vmem:[%s5256_s1 + $0x738] sm:$0xff]  ;;  %819 = vmatpush.msra.mxu1 %v63_v48  ;;  %757 = vmatmul.f32.gmra.mxu2 %v3165_v40  ;;  %v101_v48 = vld [vmem:[%s5256_s1 + $0x268] sm:$0xff]  ;;  %v436_v61 = vld [vmem:[%s5256_s1 + $0xce0] sm:$0xff] }
  0x71   :  { %v459_v50 = vld [vmem:[%s5256_s1 + $0xd98] sm:$0xff]  ;;  %842 = vmatpush.msra.mxu2 %v255_v49  ;;  %794 = vmatpush.msra.mxu0 %v470_v5  ;;  %v160_v49 = vld [vmem:[%s5256_s1 + $0x440] sm:$0xff] }
  0x72   :  { %v51_v52 = vld [vmem:[%s5256_s1 + $0xd8] sm:$0xff]  ;;  %864 = vmatpush.msra.mxu3 %v459_v50  ;;  %v268_v50 = vld [vmem:[%s5256_s1 + $0x7a0] sm:$0xff] }
  0x73   :  { %v243_v53 = vld [vmem:[%s5256_s1 + $0x6d8] sm:$0xff]  ;;  %820 = vmatpush.msra.mxu1 %v51_v52  ;;  %795 = vmatpush.msra.mxu0 %v458_v9  ;;  %v89_v52 = vld [vmem:[%s5256_s1 + $0x208] sm:$0xff]  ;;  %v424_v1 = vld [vmem:[%s5256_s1 + $0xc80] sm:$0xff] }
  0x74   :  { %v447_v55 = vld [vmem:[%s5256_s1 + $0xd38] sm:$0xff]  ;;  %843 = vmatpush.msra.mxu2 %v243_v53  ;;  %708 = vmatmul.f32.vlgmr.msrb.gmra.mxu0 %v3019_v58  ;;  %v148_v53 = vld [vmem:[%s5256_s1 + $0x3e0] sm:$0xff]  ;;  %v210_v9 = vld [vmem:[%s5256_s1 + $0x5d0] sm:$0xff] }
  0x75   :  { %v39_v57 = vld [vmem:[%s5256_s1 + $0x78] sm:$0xff]  ;;  %865 = vmatpush.msra.mxu3 %v447_v55  ;;  %796 = vmatpush.msra.mxu0 %v446_v13  ;;  %v256_v55 = vld [vmem:[%s5256_s1 + $0x740] sm:$0xff]  ;;  %v198_v13 = vld [vmem:[%s5256_s1 + $0x570] sm:$0xff] }
  0x76   :  { %v231_v59 = vld [vmem:[%s5256_s1 + $0x678] sm:$0xff]  ;;  %821 = vmatpush.msra.mxu1 %v39_v57  ;;  %777 = vmatmul.f32.vlgmr.msrb.gmra.mxu3 %v3019_v58  ;;  %v77_v57 = vld [vmem:[%s5256_s1 + $0x1a8] sm:$0xff]  ;;  %v412_v5 = vld [vmem:[%s5256_s1 + $0xc20] sm:$0xff] }
  0x77   :  { %v435_v60 = vld [vmem:[%s5256_s1 + $0xcd8] sm:$0xff]  ;;  %844 = vmatpush.msra.mxu2 %v231_v59  ;;  %797 = vmatpush.msra.mxu0 %v434_v17  ;;  %v136_v59 = vld [vmem:[%s5256_s1 + $0x380] sm:$0xff]  ;;  %v186_v17 = vld [vmem:[%s5256_s1 + $0x510] sm:$0xff] }
  0x78   :  { %v27_v62 = vld [vmem:[%s5256_s1 + $0x18] sm:$0xff]  ;;  %866 = vmatpush.msra.mxu3 %v435_v60  ;;  %v244_v60 = vld [vmem:[%s5256_s1 + $0x6e0] sm:$0xff] }
  0x79   :  { %v219_v63 = vld [vmem:[%s5256_s1 + $0x618] sm:$0xff]  ;;  %822 = vmatpush.msra.mxu1 %v27_v62  ;;  %798 = vmatpush.msra.mxu0 %v422_v21  ;;  %v65_v62 = vld [vmem:[%s5256_s1 + $0x148] sm:$0xff]  ;;  %v174_v21 = vld [vmem:[%s5256_s1 + $0x4b0] sm:$0xff] }
  0x7a   :  { %v423_v0 = vld [vmem:[%s5256_s1 + $0xc78] sm:$0xff]  ;;  %845 = vmatpush.msra.mxu2 %v219_v63  ;;  %v124_v63 = vld [vmem:[%s5256_s1 + $0x320] sm:$0xff]  ;;  %823 = vmatmul.f32.vlgmr.msra.gmra.mxu1 %v3005_v54 }
  0x7b   :  { %867 = vmatpush.msra.mxu3 %v423_v0  ;;  %v411_v4 = vld [vmem:[%s5256_s1 + $0xc18] sm:$0xff]  ;;  %899 = vmatpush.msrb.mxu1 %v400_v2  ;;  %v232_v0 = vld [vmem:[%s5256_s1 + $0x680] sm:$0xff]  ;;  %v53_v2 = vld [vmem:[%s5256_s1 + $0xe8] sm:$0xff] }
  0x7c   :  { %922 = vmatpush.msrb.mxu2 %v592_v3  ;;  %799 = vmatpush.msra.mxu0 %v410_v25  ;;  %v112_v3 = vld [vmem:[%s5256_s1 + $0x2c0] sm:$0xff]  ;;  %v162_v25 = vld [vmem:[%s5256_s1 + $0x450] sm:$0xff] }
  0x7d   :  { %868 = vmatpush.msra.mxu3 %v411_v4  ;;  %900 = vmatpush.msrb.mxu1 %v388_v6  ;;  %v220_v4 = vld [vmem:[%s5256_s1 + $0x620] sm:$0xff]  ;;  %v41_v6 = vld [vmem:[%s5256_s1 + $0x88] sm:$0xff] }
  0x7e   :  { %923 = vmatpush.msrb.mxu2 %v580_v7  ;;  %876 = vmatpush.msrb.mxu0 %v208_v29  ;;  %v100_v7 = vld [vmem:[%s5256_s1 + $0x260] sm:$0xff]  ;;  %v150_v29 = vld [vmem:[%s5256_s1 + $0x3f0] sm:$0xff] }
  0x7f   :  { %945 = vmatpush.msrb.mxu3 %v209_v8  ;;  %901 = vmatpush.msrb.mxu1 %v376_v10  ;;  %v593_v8 = vld [vmem:[%s5256_s1 + $0x11c8] sm:$0xff] }
  0x80   :  { %924 = vmatpush.msrb.mxu2 %v568_v11  ;;  %877 = vmatpush.msrb.mxu0 %v196_v33  ;;  %v29_v10 = vld [vmem:[%s5256_s1 + $0x28] sm:$0xff]  ;;  %v88_v11 = vld [vmem:[%s5256_s1 + $0x200] sm:$0xff]  ;;  %v138_v33 = vld [vmem:[%s5256_s1 + $0x390] sm:$0xff] }
  0x81   :  { %946 = vmatpush.msrb.mxu3 %v197_v12  ;;  %902 = vmatpush.msrb.mxu1 %v364_v14  ;;  %v581_v12 = vld [vmem:[%s5256_s1 + $0x1168] sm:$0xff]  ;;  %v402_v14 = vld [vmem:[%s5256_s1 + $0xbd0] sm:$0xff] }
  0x82   :  { %925 = vmatpush.msrb.mxu2 %v556_v15  ;;  %878 = vmatpush.msrb.mxu0 %v184_v38  ;;  %v76_v15 = vld [vmem:[%s5256_s1 + $0x1a0] sm:$0xff]  ;;  %v126_v38 = vld [vmem:[%s5256_s1 + $0x330] sm:$0xff] }
  0x83   :  { %947 = vmatpush.msrb.mxu3 %v185_v16  ;;  %903 = vmatpush.msrb.mxu1 %v352_v18  ;;  %v569_v16 = vld [vmem:[%s5256_s1 + $0x1108] sm:$0xff]  ;;  %v390_v18 = vld [vmem:[%s5256_s1 + $0xb70] sm:$0xff] }
  0x84   :  { %926 = vmatpush.msrb.mxu2 %v544_v19  ;;  %780 = vmatmul.f32.gmra.mxu3 %v3182_v46  ;;  %v64_v19 = vld [vmem:[%s5256_s1 + $0x140] sm:$0xff] }
  0x85   :  { %948 = vmatpush.msrb.mxu3 %v173_v20  ;;  %904 = vmatpush.msrb.mxu1 %v340_v22  ;;  %v557_v20 = vld [vmem:[%s5256_s1 + $0x10a8] sm:$0xff]  ;;  %v378_v22 = vld [vmem:[%s5256_s1 + $0xb10] sm:$0xff] }
  0x86   :  { %927 = vmatpush.msrb.mxu2 %v532_v23  ;;  %879 = vmatpush.msrb.mxu0 %v172_v44  ;;  %v52_v23 = vld [vmem:[%s5256_s1 + $0xe0] sm:$0xff]  ;;  %v114_v44 = vld [vmem:[%s5256_s1 + $0x2d0] sm:$0xff] }
  0x87   :  { %949 = vmatpush.msrb.mxu3 %v161_v24  ;;  %905 = vmatpush.msrb.mxu1 %v328_v26  ;;  %v545_v24 = vld [vmem:[%s5256_s1 + $0x1048] sm:$0xff]  ;;  %v366_v26 = vld [vmem:[%s5256_s1 + $0xab0] sm:$0xff] }
  0x88   :  { %928 = vmatpush.msrb.mxu2 %v520_v27  ;;  %711 = vmatmul.f32.gmra.mxu0 %v3182_v46  ;;  %v40_v27 = vld [vmem:[%s5256_s1 + $0x80] sm:$0xff] }
  0x89   :  { %950 = vmatpush.msrb.mxu3 %v149_v28  ;;  %906 = vmatpush.msrb.mxu1 %v316_v30  ;;  %v533_v28 = vld [vmem:[%s5256_s1 + $0xfe8] sm:$0xff]  ;;  %v354_v30 = vld [vmem:[%s5256_s1 + $0xa50] sm:$0xff] }
  0x8a   :  { %929 = vmatpush.msrb.mxu2 %v508_v31  ;;  %880 = vmatpush.msrb.mxu0 %v160_v49  ;;  %v28_v31 = vld [vmem:[%s5256_s1 + $0x20] sm:$0xff]  ;;  %v102_v49 = vld [vmem:[%s5256_s1 + $0x270] sm:$0xff] }
  0x8b   :  { %951 = vmatpush.msrb.mxu3 %v137_v32  ;;  %907 = vmatpush.msrb.mxu1 %v304_v34  ;;  %v521_v32 = vld [vmem:[%s5256_s1 + $0xf88] sm:$0xff]  ;;  %v342_v34 = vld [vmem:[%s5256_s1 + $0x9f0] sm:$0xff] }
  0x8c   :  { %930 = vmatpush.msrb.mxu2 %v496_v36  ;;  %881 = vmatpush.msrb.mxu0 %v148_v53  ;;  %v401_v36 = vld [vmem:[%s5256_s1 + $0xbc8] sm:$0xff]  ;;  %v90_v53 = vld [vmem:[%s5256_s1 + $0x210] sm:$0xff] }
  0x8d   :  { %952 = vmatpush.msrb.mxu3 %v125_v37  ;;  %908 = vmatpush.msrb.mxu1 %v292_v39  ;;  %v509_v37 = vld [vmem:[%s5256_s1 + $0xf28] sm:$0xff]  ;;  %v330_v39 = vld [vmem:[%s5256_s1 + $0x990] sm:$0xff] }
  0x8e   :  { %931 = vmatpush.msrb.mxu2 %v484_v41  ;;  %882 = vmatpush.msrb.mxu0 %v136_v59  ;;  %v389_v41 = vld [vmem:[%s5256_s1 + $0xb68] sm:$0xff]  ;;  %v78_v59 = vld [vmem:[%s5256_s1 + $0x1b0] sm:$0xff] }
  0x8f   :  { %953 = vmatpush.msrb.mxu3 %v113_v43  ;;  %909 = vmatpush.msrb.mxu1 %v280_v45  ;;  %v497_v43 = vld [vmem:[%s5256_s1 + $0xec8] sm:$0xff]  ;;  %v318_v45 = vld [vmem:[%s5256_s1 + $0x930] sm:$0xff] }
  0x90   :  { %932 = vmatpush.msrb.mxu2 %v472_v47  ;;  %869 = vmatmul.f32.vlgmr.msra.gmra.mxu3 %v2966_v42  ;;  %v377_v47 = vld [vmem:[%s5256_s1 + $0xb08] sm:$0xff] }
  0x91   :  { %954 = vmatpush.msrb.mxu3 %v101_v48  ;;  %910 = vmatpush.msrb.mxu1 %v268_v50  ;;  %v485_v48 = vld [vmem:[%s5256_s1 + $0xe68] sm:$0xff]  ;;  %v306_v50 = vld [vmem:[%s5256_s1 + $0x8d0] sm:$0xff] }
  0x92   :  { %933 = vmatpush.msrb.mxu2 %v460_v51  ;;  %883 = vmatpush.msrb.mxu0 %v124_v63  ;;  %v365_v51 = vld [vmem:[%s5256_s1 + $0xaa8] sm:$0xff]  ;;  %v66_v63 = vld [vmem:[%s5256_s1 + $0x150] sm:$0xff] }
  0x93   :  { %955 = vmatpush.msrb.mxu3 %v89_v52  ;;  %911 = vmatpush.msrb.mxu1 %v256_v55  ;;  %v473_v52 = vld [vmem:[%s5256_s1 + $0xe08] sm:$0xff]  ;;  %v294_v55 = vld [vmem:[%s5256_s1 + $0x870] sm:$0xff] }
  0x94   :  { %934 = vmatpush.msrb.mxu2 %v448_v56  ;;  %800 = vmatmul.f32.vlgmr.msra.gmra.mxu0 %v2966_v42  ;;  %v353_v56 = vld [vmem:[%s5256_s1 + $0xa48] sm:$0xff] }
  0x95   :  { %956 = vmatpush.msrb.mxu3 %v77_v57  ;;  %846 = vmatmul.f32.vlgmr.msra.gmra.mxu2 %v3019_v58  ;;  %v461_v57 = vld [vmem:[%s5256_s1 + $0xda8] sm:$0xff] }
  0x96   :  { %912 = vmatpush.msrb.mxu1 %v244_v60  ;;  %935 = vmatpush.msrb.mxu2 %v436_v61  ;;  %v282_v60 = vld [vmem:[%s5256_s1 + $0x810] sm:$0xff]  ;;  %v341_v61 = vld [vmem:[%s5256_s1 + $0x9e8] sm:$0xff] }
  0x97   :  { %957 = vmatpush.msrb.mxu3 %v65_v62  ;;  %884 = vmatpush.msrb.mxu0 %v112_v3  ;;  %v449_v62 = vld [vmem:[%s5256_s1 + $0xd48] sm:$0xff]  ;;  %v258_v3 = vld [vmem:[%s5256_s1 + $0x750] sm:$0xff] }
  0x98   :  { %913 = vmatpush.msrb.mxu1 %v232_v0  ;;  %936 = vmatpush.msrb.mxu2 %v424_v1  ;;  %v270_v0 = vld [vmem:[%s5256_s1 + $0x7b0] sm:$0xff]  ;;  %v437_v1 = vld [vmem:[%s5256_s1 + $0xce8] sm:$0xff] }
  0x99   :  { %958 = vmatpush.msrb.mxu3 %v53_v2  ;;  %885 = vmatpush.msrb.mxu0 %v100_v7  ;;  %v54_v2 = vld [vmem:[%s5256_s1 + $0xf0] sm:$0xff] }
  0x9a   :  { %914 = vmatpush.msrb.mxu1 %v220_v4  ;;  %937 = vmatpush.msrb.mxu2 %v412_v5  ;;  %v317_v4 = vld [vmem:[%s5256_s1 + $0x928] sm:$0xff]  ;;  %v246_v7 = vld [vmem:[%s5256_s1 + $0x6f0] sm:$0xff] }
  0x9b   :  { %959 = vmatpush.msrb.mxu3 %v41_v6  ;;  %886 = vmatpush.msrb.mxu0 %v88_v11  ;;  %v425_v5 = vld [vmem:[%s5256_s1 + $0xc88] sm:$0xff]  ;;  %v42_v6 = vld [vmem:[%s5256_s1 + $0x90] sm:$0xff] }
  0x9c   :  { %991 = vmatpush.msra.mxu1 %v593_v8  ;;  %1014 = vmatpush.msra.mxu2 %v210_v9  ;;  %v305_v8 = vld [vmem:[%s5256_s1 + $0x8c8] sm:$0xff]  ;;  %v234_v11 = vld [vmem:[%s5256_s1 + $0x690] sm:$0xff] }
  0x9d   :  { %960 = vmatpush.msrb.mxu3 %v29_v10  ;;  %887 = vmatpush.msrb.mxu0 %v76_v15  ;;  %v413_v9 = vld [vmem:[%s5256_s1 + $0xc28] sm:$0xff]  ;;  %v30_v10 = vld [vmem:[%s5256_s1 + $0x30] sm:$0xff] }
  0x9e   :  { %992 = vmatpush.msra.mxu1 %v581_v12  ;;  %1015 = vmatpush.msra.mxu2 %v198_v13  ;;  %v293_v12 = vld [vmem:[%s5256_s1 + $0x868] sm:$0xff]  ;;  %v211_v13 = vld [vmem:[%s5256_s1 + $0x5d8] sm:$0xff]  ;;  %v222_v15 = vld [vmem:[%s5256_s1 + $0x630] sm:$0xff] }
  0x9f   :  { %1037 = vmatpush.msra.mxu3 %v402_v14  ;;  %803 = vmatmul.f32.gmra.mxu0 %v3147_v35  ;;  %v403_v14 = vld [vmem:[%s5256_s1 + $0xbd8] sm:$0xff] }
  0xa0   :  { %993 = vmatpush.msra.mxu1 %v569_v16  ;;  %1016 = vmatpush.msra.mxu2 %v186_v17  ;;  %v281_v16 = vld [vmem:[%s5256_s1 + $0x808] sm:$0xff]  ;;  %v199_v17 = vld [vmem:[%s5256_s1 + $0x578] sm:$0xff] }
  0xa1   :  { %1038 = vmatpush.msra.mxu3 %v390_v18  ;;  %888 = vmatpush.msrb.mxu0 %v64_v19  ;;  %v391_v18 = vld [vmem:[%s5256_s1 + $0xb78] sm:$0xff] }
  0xa2   :  { %994 = vmatpush.msra.mxu1 %v557_v20  ;;  %1017 = vmatpush.msra.mxu2 %v174_v21  ;;  %v595_v19 = vld [vmem:[%s5256_s1 + $0x11d8] sm:$0xff]  ;;  %v269_v20 = vld [vmem:[%s5256_s1 + $0x7a8] sm:$0xff] }
  0xa3   :  { %1039 = vmatpush.msra.mxu3 %v378_v22  ;;  %889 = vmatpush.msrb.mxu0 %v52_v23  ;;  %v187_v21 = vld [vmem:[%s5256_s1 + $0x518] sm:$0xff] }
  0xa4   :  { %995 = vmatpush.msra.mxu1 %v545_v24  ;;  %1018 = vmatpush.msra.mxu2 %v162_v25  ;;  %v379_v22 = vld [vmem:[%s5256_s1 + $0xb18] sm:$0xff] }
  0xa5   :  { %1040 = vmatpush.msra.mxu3 %v366_v26  ;;  %890 = vmatpush.msrb.mxu0 %v40_v27  ;;  %v583_v23 = vld [vmem:[%s5256_s1 + $0x1178] sm:$0xff]  ;;  %v245_v27 = vld [vmem:[%s5256_s1 + $0x6e8] sm:$0xff] }
  0xa6   :  { %996 = vmatpush.msra.mxu1 %v533_v28  ;;  %1019 = vmatpush.msra.mxu2 %v150_v29  ;;  %v175_v24 = vld [vmem:[%s5256_s1 + $0x4b8] sm:$0xff] }
  0xa7   :  { %1041 = vmatpush.msra.mxu3 %v354_v30  ;;  %849 = vmatmul.f32.gmra.mxu2 %v3182_v46  ;;  %v367_v25 = vld [vmem:[%s5256_s1 + $0xab8] sm:$0xff] }
  0xa8   :  { %891 = vmatpush.msrb.mxu0 %v28_v31  ;;  %997 = vmatpush.msra.mxu1 %v521_v32  ;;  %v571_v26 = vld [vmem:[%s5256_s1 + $0x1118] sm:$0xff]  ;;  %v233_v31 = vld [vmem:[%s5256_s1 + $0x688] sm:$0xff] }
  0xa9   :  { %1020 = vmatpush.msra.mxu2 %v138_v33  ;;  %1042 = vmatpush.msra.mxu3 %v342_v34  ;;  %v163_v28 = vld [vmem:[%s5256_s1 + $0x458] sm:$0xff] }
  0xaa   :  { %968 = vmatpush.msra.mxu0 %v401_v36  ;;  %872 = vmatmul.f32.gmra.mxu3 %v3147_v35  ;;  %v355_v29 = vld [vmem:[%s5256_s1 + $0xa58] sm:$0xff]  ;;  %v221_v36 = vld [vmem:[%s5256_s1 + $0x628] sm:$0xff] }
  0xab   :  { %998 = vmatpush.msra.mxu1 %v509_v37  ;;  %1021 = vmatpush.msra.mxu2 %v126_v38  ;;  %v559_v30 = vld [vmem:[%s5256_s1 + $0x10b8] sm:$0xff] }
  0xac   :  { %1043 = vmatpush.msra.mxu3 %v330_v39  ;;  %969 = vmatpush.msra.mxu0 %v389_v41  ;;  %v151_v32 = vld [vmem:[%s5256_s1 + $0x3f8] sm:$0xff]  ;;  %v594_v41 = vld [vmem:[%s5256_s1 + $0x11d0] sm:$0xff] }
  0xad   :  { %999 = vmatpush.msra.mxu1 %v497_v43  ;;  %1022 = vmatpush.msra.mxu2 %v114_v44  ;;  %v343_v33 = vld [vmem:[%s5256_s1 + $0x9f8] sm:$0xff] }
  0xae   :  { %1044 = vmatpush.msra.mxu3 %v318_v45  ;;  %826 = vmatmul.f32.gmra.mxu1 %v3165_v40  ;;  %v547_v34 = vld [vmem:[%s5256_s1 + $0x1058] sm:$0xff] }
  0xaf   :  { %970 = vmatpush.msra.mxu0 %v377_v47  ;;  %1000 = vmatpush.msra.mxu1 %v485_v48  ;;  %v139_v37 = vld [vmem:[%s5256_s1 + $0x398] sm:$0xff]  ;;  %v582_v47 = vld [vmem:[%s5256_s1 + $0x1170] sm:$0xff] }
  0xb0   :  { %1023 = vmatpush.msra.mxu2 %v102_v49  ;;  %1045 = vmatpush.msra.mxu3 %v306_v50  ;;  %v331_v38 = vld [vmem:[%s5256_s1 + $0x998] sm:$0xff] }
  0xb1   :  { %971 = vmatpush.msra.mxu0 %v365_v51  ;;  %1001 = vmatpush.msra.mxu1 %v473_v52  ;;  %v535_v39 = vld [vmem:[%s5256_s1 + $0xff8] sm:$0xff]  ;;  %v570_v51 = vld [vmem:[%s5256_s1 + $0x1110] sm:$0xff] }
  0xb2   :  { %1024 = vmatpush.msra.mxu2 %v90_v53  ;;  %1046 = vmatpush.msra.mxu3 %v294_v55  ;;  %v127_v43 = vld [vmem:[%s5256_s1 + $0x338] sm:$0xff] }
  0xb3   :  { %938 = vmatmul.f32.vlgmr.msrb.gmra.mxu2 %v2966_v42  ;;  %972 = vmatpush.msra.mxu0 %v353_v56  ;;  %v329_v42 = vld [vmem:[%s5256_s1 + $0x988] sm:$0xff]  ;;  %v319_v44 = vld [vmem:[%s5256_s1 + $0x938] sm:$0xff]  ;;  %v558_v56 = vld [vmem:[%s5256_s1 + $0x10b0] sm:$0xff] }
  0xb4   :  { %1002 = vmatpush.msra.mxu1 %v461_v57  ;;  %1025 = vmatpush.msra.mxu2 %v78_v59  ;;  %v523_v45 = vld [vmem:[%s5256_s1 + $0xf98] sm:$0xff] }
  0xb5   :  { %1047 = vmatpush.msra.mxu3 %v282_v60  ;;  %973 = vmatpush.msra.mxu0 %v341_v61  ;;  %v115_v48 = vld [vmem:[%s5256_s1 + $0x2d8] sm:$0xff]  ;;  %v546_v61 = vld [vmem:[%s5256_s1 + $0x1050] sm:$0xff] }
  0xb6   :  { %1003 = vmatpush.msra.mxu1 %v449_v62  ;;  %1026 = vmatpush.msra.mxu2 %v66_v63  ;;  %v307_v49 = vld [vmem:[%s5256_s1 + $0x8d8] sm:$0xff] }
  0xb7   :  { %1048 = vmatpush.msra.mxu3 %v270_v0  ;;  %892 = vmatmul.f32.vlgmr.msrb.gmra.mxu0 %v3005_v54  ;;  %v511_v50 = vld [vmem:[%s5256_s1 + $0xf38] sm:$0xff]  ;;  %v534_v0 = vld [vmem:[%s5256_s1 + $0xff0] sm:$0xff] }
  0xb8   :  { %915 = vmatmul.f32.vlgmr.msrb.gmra.mxu1 %v3019_v58  ;;  %974 = vmatpush.msra.mxu0 %v329_v42  ;;  %v103_v52 = vld [vmem:[%s5256_s1 + $0x278] sm:$0xff] }
  0xb9   :  { %1004 = vmatpush.msra.mxu1 %v437_v1  ;;  %1027 = vmatpush.msra.mxu2 %v54_v2  ;;  %v295_v53 = vld [vmem:[%s5256_s1 + $0x878] sm:$0xff] }
  0xba   :  { %1049 = vmatpush.msra.mxu3 %v258_v3  ;;  %975 = vmatpush.msra.mxu0 %v317_v4  ;;  %v499_v55 = vld [vmem:[%s5256_s1 + $0xed8] sm:$0xff]  ;;  %v522_v3 = vld [vmem:[%s5256_s1 + $0xf90] sm:$0xff] }
  0xbb   :  { %1005 = vmatpush.msra.mxu1 %v425_v5  ;;  %1028 = vmatpush.msra.mxu2 %v42_v6  ;;  %v91_v57 = vld [vmem:[%s5256_s1 + $0x218] sm:$0xff] }
  0xbc   :  { %1050 = vmatpush.msra.mxu3 %v246_v7  ;;  %976 = vmatpush.msra.mxu0 %v305_v8  ;;  %v283_v59 = vld [vmem:[%s5256_s1 + $0x818] sm:$0xff]  ;;  %v510_v7 = vld [vmem:[%s5256_s1 + $0xf30] sm:$0xff] }
  0xbd   :  { %1006 = vmatpush.msra.mxu1 %v413_v9  ;;  %1029 = vmatpush.msra.mxu2 %v30_v10  ;;  %v487_v60 = vld [vmem:[%s5256_s1 + $0xe78] sm:$0xff] }
  0xbe   :  { %1051 = vmatpush.msra.mxu3 %v234_v11  ;;  %977 = vmatpush.msra.mxu0 %v293_v12  ;;  %v79_v62 = vld [vmem:[%s5256_s1 + $0x1b8] sm:$0xff]  ;;  %v498_v11 = vld [vmem:[%s5256_s1 + $0xed0] sm:$0xff] }
  0xbf   :  { %1083 = vmatpush.msrb.mxu1 %v211_v13  ;;  %1106 = vmatpush.msrb.mxu2 %v403_v14  ;;  %v271_v63 = vld [vmem:[%s5256_s1 + $0x7b8] sm:$0xff]  ;;  %v404_v14 = vld [vmem:[%s5256_s1 + $0xbe0] sm:$0xff] }
  0xc0   :  { %1052 = vmatpush.msra.mxu3 %v222_v15  ;;  %978 = vmatpush.msra.mxu0 %v281_v16  ;;  %v67_v42 = vld [vmem:[%s5256_s1 + $0x158] sm:$0xff]  ;;  %v596_v15 = vld [vmem:[%s5256_s1 + $0x11e0] sm:$0xff] }
  0xc1   :  { %961 = vmatmul.f32.vlgmr.msrb.gmra.mxu3 %v3005_v54  ;;  %1084 = vmatpush.msrb.mxu1 %v199_v17  ;;  %v257_v54 = vld [vmem:[%s5256_s1 + $0x748] sm:$0xff]  ;;  %v259_v1 = vld [vmem:[%s5256_s1 + $0x758] sm:$0xff]  ;;  %v3859_v17 = vld [vmem:[%s5255_s0] sm:$0xff] }
  0xc2   :  { %1107 = vmatpush.msrb.mxu2 %v391_v18  ;;  %1129 = vmatpush.msrb.mxu3 %v595_v19  ;;  %v463_v2 = vld [vmem:[%s5256_s1 + $0xdb8] sm:$0xff]  ;;  %v474_v18 = vld [vmem:[%s5256_s1 + $0xe10] sm:$0xff]  ;;  %v392_v19 = vld [vmem:[%s5256_s1 + $0xb80] sm:$0xff] }
  0xc3   :  { %979 = vmatpush.msra.mxu0 %v269_v20  ;;  %1085 = vmatpush.msrb.mxu1 %v187_v21  ;;  %v55_v4 = vld [vmem:[%s5256_s1 + $0xf8] sm:$0xff]  ;;  %v584_v20 = vld [vmem:[%s5256_s1 + $0x1180] sm:$0xff]  ;;  %v213_v21 = vld [vmem:[%s5256_s1 + $0x5e8] sm:$0xff] }
  0xc4   :  { %1108 = vmatpush.msrb.mxu2 %v379_v22  ;;  %1130 = vmatpush.msrb.mxu3 %v583_v23  ;;  %v247_v5 = vld [vmem:[%s5256_s1 + $0x6f8] sm:$0xff]  ;;  %v462_v22 = vld [vmem:[%s5256_s1 + $0xdb0] sm:$0xff]  ;;  %v3880_v23 = vld [vmem:[%s5255_s0 + $0x8] sm:$0xff] }
  0xc5   :  { %941 = vmatmul.f32.gmra.mxu2 %v3147_v35  ;;  %980 = vmatpush.msra.mxu0 %v257_v54  ;;  %v451_v6 = vld [vmem:[%s5256_s1 + $0xd58] sm:$0xff]  ;;  %v380_v54 = vld [vmem:[%s5256_s1 + $0xb20] sm:$0xff] }
  0xc6   :  { %1086 = vmatpush.msrb.mxu1 %v175_v24  ;;  %1109 = vmatpush.msrb.mxu2 %v367_v25  ;;  %v43_v8 = vld [vmem:[%s5256_s1 + $0x98] sm:$0xff]  ;;  %v572_v24 = vld [vmem:[%s5256_s1 + $0x1120] sm:$0xff]  ;;  %v201_v25 = vld [vmem:[%s5256_s1 + $0x588] sm:$0xff] }
  0xc7   :  { %1131 = vmatpush.msrb.mxu3 %v571_v26  ;;  %981 = vmatpush.msra.mxu0 %v245_v27  ;;  %v235_v9 = vld [vmem:[%s5256_s1 + $0x698] sm:$0xff]  ;;  %v450_v26 = vld [vmem:[%s5256_s1 + $0xd50] sm:$0xff]  ;;  %v368_v27 = vld [vmem:[%s5256_s1 + $0xac0] sm:$0xff] }
  0xc8   :  { %1087 = vmatpush.msrb.mxu1 %v163_v28  ;;  %1110 = vmatpush.msrb.mxu2 %v355_v29  ;;  %v439_v10 = vld [vmem:[%s5256_s1 + $0xcf8] sm:$0xff]  ;;  %v560_v28 = vld [vmem:[%s5256_s1 + $0x10c0] sm:$0xff]  ;;  %v189_v29 = vld [vmem:[%s5256_s1 + $0x528] sm:$0xff] }
  0xc9   :  { %1132 = vmatpush.msrb.mxu3 %v559_v30  ;;  %895 = vmatmul.f32.gmra.mxu0 %v3165_v40  ;;  %v223_v12 = vld [vmem:[%s5256_s1 + $0x638] sm:$0xff]  ;;  %v438_v30 = vld [vmem:[%s5256_s1 + $0xcf0] sm:$0xff] }
  0xca   :  { %918 = vmatmul.f32.gmra.mxu1 %v3182_v46  ;;  %982 = vmatpush.msra.mxu0 %v233_v31  ;;  %v427_v13 = vld [vmem:[%s5256_s1 + $0xc98] sm:$0xff]  ;;  %v356_v31 = vld [vmem:[%s5256_s1 + $0xa60] sm:$0xff] }
  0xcb   :  { %1088 = vmatpush.msrb.mxu1 %v151_v32  ;;  %1111 = vmatpush.msrb.mxu2 %v343_v33  ;;  %v415_v16 = vld [vmem:[%s5256_s1 + $0xc38] sm:$0xff]  ;;  %v548_v32 = vld [vmem:[%s5256_s1 + $0x1060] sm:$0xff]  ;;  %v177_v33 = vld [vmem:[%s5256_s1 + $0x4c8] sm:$0xff] }
  0xcc   :  { %1133 = vmatpush.msrb.mxu3 %v547_v34  ;;  %983 = vmatpush.msra.mxu0 %v221_v36  ;;  %v426_v34 = vld [vmem:[%s5256_s1 + $0xc90] sm:$0xff]  ;;  %v344_v36 = vld [vmem:[%s5256_s1 + $0xa00] sm:$0xff] }
  0xcd   :  { %1089 = vmatpush.msrb.mxu1 %v139_v37  ;;  %1112 = vmatpush.msrb.mxu2 %v331_v38  ;;  %v536_v37 = vld [vmem:[%s5256_s1 + $0x1000] sm:$0xff]  ;;  %v165_v38 = vld [vmem:[%s5256_s1 + $0x468] sm:$0xff] }
  0xce   :  { %1134 = vmatpush.msrb.mxu3 %v535_v39  ;;  %1060 = vmatpush.msrb.mxu0 %v594_v41  ;;  %v414_v39 = vld [vmem:[%s5256_s1 + $0xc30] sm:$0xff]  ;;  %v332_v41 = vld [vmem:[%s5256_s1 + $0x9a0] sm:$0xff] }
  0xcf   :  { %1090 = vmatpush.msrb.mxu1 %v127_v43  ;;  %1113 = vmatpush.msrb.mxu2 %v319_v44  ;;  %v524_v43 = vld [vmem:[%s5256_s1 + $0xfa0] sm:$0xff]  ;;  %v153_v44 = vld [vmem:[%s5256_s1 + $0x408] sm:$0xff] }
  0xd0   :  { %1135 = vmatpush.msrb.mxu3 %v523_v45  ;;  %1061 = vmatpush.msrb.mxu0 %v582_v47  ;;  %v212_v45 = vld [vmem:[%s5256_s1 + $0x5e0] sm:$0xff] }
  0xd1   :  { %1091 = vmatpush.msrb.mxu1 %v115_v48  ;;  %1114 = vmatpush.msrb.mxu2 %v307_v49  ;;  %v320_v47 = vld [vmem:[%s5256_s1 + $0x940] sm:$0xff]  ;;  %v141_v49 = vld [vmem:[%s5256_s1 + $0x3a8] sm:$0xff] }
  0xd2   :  { %1136 = vmatpush.msrb.mxu3 %v511_v50  ;;  %1062 = vmatpush.msrb.mxu0 %v570_v51  ;;  %v512_v48 = vld [vmem:[%s5256_s1 + $0xf40] sm:$0xff]  ;;  %v3955_v51 = vpop.f32.mrf.mxu2 }
  0xd3   :  { %1092 = vmatpush.msrb.mxu1 %v103_v52  ;;  %984 = vmatmul.f32.vlgmr.msra.gmra.mxu0 %v3019_v58  ;;  %v3782_v58 = vld [vmem:[%s5255_s0 + $0x10] sm:$0xff]  ;;  %v200_v50 = vld [vmem:[%s5256_s1 + $0x580] sm:$0xff] }
  0xd4   :  { %1115 = vmatpush.msrb.mxu2 %v295_v53  ;;  %1137 = vmatpush.msrb.mxu3 %v499_v55  ;;  %v308_v52 = vld [vmem:[%s5256_s1 + $0x8e0] sm:$0xff]  ;;  %v129_v55 = vld [vmem:[%s5256_s1 + $0x348] sm:$0xff] }
  0xd5   :  { %1063 = vmatpush.msrb.mxu0 %v558_v56  ;;  %964 = vmatmul.f32.gmra.mxu3 %v3165_v40  ;;  %v475_v40 = vld [vmem:[%s5256_s1 + $0xe18] sm:$0xff]  ;;  %v500_v53 = vld [vmem:[%s5256_s1 + $0xee0] sm:$0xff]  ;;  %v3966_v56 = vpop.f32.mrf.mxu3 }
  0xd6   :  { %1007 = vmatmul.f32.vlgmr.msra.gmra.mxu1 %v3782_v58  ;;  %1116 = vmatpush.msrb.mxu2 %v283_v59  ;;  %v188_v59 = vld [vmem:[%s5256_s1 + $0x520] sm:$0xff] }
  0xd7   :  { %1093 = vmatpush.msrb.mxu1 %v91_v57  ;;  %1138 = vmatpush.msrb.mxu3 %v487_v60  ;;  %v3968_v57 = vpop.f32.mrf.mxu1  ;;  %v296_v60 = vld [vmem:[%s5256_s1 + $0x880] sm:$0xff] }
  0xd8   :  { %1064 = vmatpush.msrb.mxu0 %v546_v61  ;;  %1117 = vmatpush.msrb.mxu2 %v271_v63  ;;  %v488_v61 = vld [vmem:[%s5256_s1 + $0xe80] sm:$0xff]  ;;  %v3985_v63 = vld [vmem:[%s5255_s0 + $0x18] sm:$0xff] }
  0xd9   :  { %1094 = vmatpush.msrb.mxu1 %v79_v62  ;;  %1139 = vmatpush.msrb.mxu3 %v475_v40  ;;  %v117_v62 = vld [vmem:[%s5256_s1 + $0x2e8] sm:$0xff]  ;;  %v176_v40 = vld [vmem:[%s5256_s1 + $0x4c0] sm:$0xff] }
  0xda   :  { %1065 = vmatpush.msrb.mxu0 %v534_v0  ;;  %1118 = vmatpush.msrb.mxu2 %v259_v1  ;;  %v284_v0 = vld [vmem:[%s5256_s1 + $0x820] sm:$0xff]  ;;  %v105_v1 = vld [vmem:[%s5256_s1 + $0x288] sm:$0xff] }
  0xdb   :  { %1095 = vmatpush.msrb.mxu1 %v67_v42  ;;  %1140 = vmatpush.msrb.mxu3 %v463_v2  ;;  %v476_v42 = vld [vmem:[%s5256_s1 + $0xe20] sm:$0xff] }
  0xdc   :  { %1066 = vmatpush.msrb.mxu0 %v522_v3  ;;  %1119 = vmatpush.msrb.mxu2 %v247_v5  ;;  %v164_v2 = vld [vmem:[%s5256_s1 + $0x460] sm:$0xff] }
  0xdd   :  { %987 = vmatmul.f32.gmra.mxu0 %v3182_v46  ;;  %1096 = vmatpush.msrb.mxu1 %v55_v4  ;;  %v31_v46 = vld [vmem:[%s5256_s1 + $0x38] sm:$0xff]  ;;  %v4006_v3 = vld [vmem:[%s5255_s0 + $0x20] sm:$0xff] }
  0xde   :  { %1141 = vmatpush.msrb.mxu3 %v451_v6  ;;  %1067 = vmatpush.msrb.mxu0 %v510_v7  ;;  %v272_v4 = vld [vmem:[%s5256_s1 + $0x7c0] sm:$0xff]  ;;  %v93_v6 = vld [vmem:[%s5256_s1 + $0x228] sm:$0xff] }
  0xdf   :  { %1010 = vmatmul.f32.gmra.mxu1 %v3147_v35  ;;  %1120 = vmatpush.msrb.mxu2 %v235_v9  ;;  %v486_v35 = vld [vmem:[%s5256_s1 + $0xe70] sm:$0xff]  ;;  %v464_v5 = vld [vmem:[%s5256_s1 + $0xdc0] sm:$0xff] }
  0xe0   :  { %1097 = vmatpush.msrb.mxu1 %v43_v8  ;;  %1142 = vmatpush.msrb.mxu3 %v439_v10  ;;  %v152_v7 = vld [vmem:[%s5256_s1 + $0x400] sm:$0xff]  ;;  %v4021_v8 = vpop.f32.mrf.mxu2 }
  0xe1   :  { %1068 = vmatpush.msrb.mxu0 %v498_v11  ;;  %1121 = vmatpush.msrb.mxu2 %v223_v12  ;;  %v260_v9 = vld [vmem:[%s5256_s1 + $0x760] sm:$0xff]  ;;  %v81_v12 = vld [vmem:[%s5256_s1 + $0x1c8] sm:$0xff] }
  0xe2   :  { %1098 = vmatpush.msrb.mxu1 %v31_v46  ;;  %1143 = vmatpush.msrb.mxu3 %v427_v13  ;;  %v452_v10 = vld [vmem:[%s5256_s1 + $0xd60] sm:$0xff]  ;;  %v4031_v46 = vpop.f32.mrf.mxu1 }
  0xe3   :  { %1030 = vmatmul.f32.vlgmr.msra.gmra.mxu2 %v3859_v17  ;;  %1069 = vmatpush.msrb.mxu0 %v486_v35  ;;  %v140_v13 = vld [vmem:[%s5256_s1 + $0x3a0] sm:$0xff] }
  0xe4   :  { %1175 = vmatpush.msra.mxu1 %v404_v14  ;;  %1198 = vmatpush.msra.mxu2 %v596_v15  ;;  %v248_v35 = vld [vmem:[%s5256_s1 + $0x700] sm:$0xff]  ;;  %v69_v15 = vld [vmem:[%s5256_s1 + $0x168] sm:$0xff] }
  0xe5   :  { %1144 = vmatpush.msrb.mxu3 %v415_v16  ;;  %1070 = vmatpush.msrb.mxu0 %v474_v18  ;;  %v440_v14 = vld [vmem:[%s5256_s1 + $0xd00] sm:$0xff] }
  0xe6   :  { %1053 = vmatmul.f32.vlgmr.msra.gmra.mxu3 %v3880_v23  ;;  %1176 = vmatpush.msra.mxu1 %v392_v19  ;;  %v128_v16 = vld [vmem:[%s5256_s1 + $0x340] sm:$0xff] }
  0xe7   :  { %1199 = vmatpush.msra.mxu2 %v584_v20  ;;  %1221 = vmatpush.msra.mxu3 %v213_v21  ;;  %v236_v18 = vld [vmem:[%s5256_s1 + $0x6a0] sm:$0xff]  ;;  %v57_v20 = vld [vmem:[%s5256_s1 + $0x108] sm:$0xff] }
  0xe8   :  { %1071 = vmatpush.msrb.mxu0 %v462_v22  ;;  %1177 = vmatpush.msra.mxu1 %v380_v54  ;;  %v428_v19 = vld [vmem:[%s5256_s1 + $0xca0] sm:$0xff] }
  0xe9   :  { %1200 = vmatpush.msra.mxu2 %v572_v24  ;;  %1222 = vmatpush.msra.mxu3 %v201_v25  ;;  %v116_v21 = vld [vmem:[%s5256_s1 + $0x2e0] sm:$0xff]  ;;  %v4071_v24 = vpop.f32.mrf.mxu2  ;;  %v45_v25 = vld [vmem:[%s5256_s1 + $0xa8] sm:$0xff] }
  0xea   :  { %1072 = vmatpush.msrb.mxu0 %v450_v26  ;;  %1178 = vmatpush.msra.mxu1 %v368_v27  ;;  %v224_v22 = vld [vmem:[%s5256_s1 + $0x640] sm:$0xff]  ;;  %v597_v27 = vld [vmem:[%s5256_s1 + $0x11e8] sm:$0xff] }
  0xeb   :  { %1201 = vmatpush.msra.mxu2 %v560_v28  ;;  %1223 = vmatpush.msra.mxu3 %v189_v29  ;;  %v416_v54 = vld [vmem:[%s5256_s1 + $0xc40] sm:$0xff]  ;;  %v214_v28 = vld [vmem:[%s5256_s1 + $0x5f0] sm:$0xff]  ;;  %v33_v29 = vld [vmem:[%s5256_s1 + $0x48] sm:$0xff] }
  0xec   :  { %1073 = vmatpush.msrb.mxu0 %v438_v30  ;;  %1179 = vmatpush.msra.mxu1 %v356_v31  ;;  %v104_v26 = vld [vmem:[%s5256_s1 + $0x280] sm:$0xff]  ;;  %v4091_v31 = vpop.f32.mrf.mxu1 }
  0xed   :  { %1202 = vmatpush.msra.mxu2 %v548_v32  ;;  %1224 = vmatpush.msra.mxu3 %v177_v33  ;;  %v92_v32 = vld [vmem:[%s5256_s1 + $0x220] sm:$0xff]  ;;  %v585_v33 = vld [vmem:[%s5256_s1 + $0x1188] sm:$0xff] }
  0xee   :  { %1074 = vmatpush.msrb.mxu0 %v426_v34  ;;  %1180 = vmatpush.msra.mxu1 %v344_v36  ;;  %v202_v34 = vld [vmem:[%s5256_s1 + $0x590] sm:$0xff] }
  0xef   :  { %1203 = vmatpush.msra.mxu2 %v536_v37  ;;  %1225 = vmatpush.msra.mxu3 %v165_v38  ;;  %v4029_v11 = vpop.f32.mrf.mxu3  ;;  %v406_v36 = vld [vmem:[%s5256_s1 + $0xbf0] sm:$0xff]  ;;  %v80_v37 = vld [vmem:[%s5256_s1 + $0x1c0] sm:$0xff]  ;;  %v573_v38 = vld [vmem:[%s5256_s1 + $0x1128] sm:$0xff] }
  0xf0   :  { %1075 = vmatpush.msrb.mxu0 %v414_v39  ;;  %1181 = vmatpush.msra.mxu1 %v332_v41  ;;  %v190_v39 = vld [vmem:[%s5256_s1 + $0x530] sm:$0xff] }
  0xf1   :  { %1204 = vmatpush.msra.mxu2 %v524_v43  ;;  %1226 = vmatpush.msra.mxu3 %v153_v44  ;;  %v394_v41 = vld [vmem:[%s5256_s1 + $0xb90] sm:$0xff]  ;;  %v68_v43 = vld [vmem:[%s5256_s1 + $0x160] sm:$0xff]  ;;  %v561_v44 = vld [vmem:[%s5256_s1 + $0x10c8] sm:$0xff] }
  0xf2   :  { %1152 = vmatpush.msra.mxu0 %v212_v45  ;;  %1182 = vmatpush.msra.mxu1 %v320_v47  ;;  %v4123_v45 = vpop.f32.mrf.mxu0  ;;  %v178_v47 = vld [vmem:[%s5256_s1 + $0x4d0] sm:$0xff] }
  0xf3   :  { %1205 = vmatpush.msra.mxu2 %v512_v48  ;;  %1227 = vmatpush.msra.mxu3 %v141_v49  ;;  %v382_v48 = vld [vmem:[%s5256_s1 + $0xb30] sm:$0xff]  ;;  %v56_v49 = vld [vmem:[%s5256_s1 + $0x100] sm:$0xff] }
  0xf4   :  { %1153 = vmatpush.msra.mxu0 %v200_v50  ;;  %1183 = vmatpush.msra.mxu1 %v308_v52  ;;  %v549_v50 = vld [vmem:[%s5256_s1 + $0x1068] sm:$0xff]  ;;  %v4137_v52 = vpop.f32.mrf.mxu2 }
  0xf5   :  { %1206 = vmatpush.msra.mxu2 %v500_v53  ;;  %1228 = vmatpush.msra.mxu3 %v129_v55  ;;  %v166_v53 = vld [vmem:[%s5256_s1 + $0x470] sm:$0xff] }
  0xf6   :  { %1033 = vmatmul.f32.gmra.mxu2 %v3985_v63  ;;  %1154 = vmatpush.msra.mxu0 %v188_v59  ;;  %v370_v55 = vld [vmem:[%s5256_s1 + $0xad0] sm:$0xff]  ;;  %v44_v59 = vld [vmem:[%s5256_s1 + $0xa0] sm:$0xff] }
  0xf7   :  { %1184 = vmatpush.msra.mxu1 %v296_v60  ;;  %1207 = vmatpush.msra.mxu2 %v488_v61  ;;  %v537_v60 = vld [vmem:[%s5256_s1 + $0x1008] sm:$0xff]  ;;  %v4151_v61 = vpop.f32.mrf.mxu1 }
  0xf8   :  { %1229 = vmatpush.msra.mxu3 %v117_v62  ;;  %1155 = vmatpush.msra.mxu0 %v176_v40  ;;  %v154_v62 = vld [vmem:[%s5256_s1 + $0x410] sm:$0xff] }
  0xf9   :  { %1056 = vmatmul.f32.gmra.mxu3 %v4006_v3  ;;  %1185 = vmatpush.msra.mxu1 %v284_v0  ;;  %v4088_v30 = vpop.f32.mrf.mxu3  ;;  %v358_v40 = vld [vmem:[%s5256_s1 + $0xa70] sm:$0xff] }
  0xfa   :  { %1208 = vmatpush.msra.mxu2 %v476_v42  ;;  %1230 = vmatpush.msra.mxu3 %v105_v1  ;;  %v525_v42 = vld [vmem:[%s5256_s1 + $0xfa8] sm:$0xff]  ;;  %v32_v1 = vld [vmem:[%s5256_s1 + $0x40] sm:$0xff] }
  0xfb   :  { %1156 = vmatpush.msra.mxu0 %v164_v2  ;;  %1186 = vmatpush.msra.mxu1 %v272_v4  ;;  %v142_v2 = vld [vmem:[%s5256_s1 + $0x3b0] sm:$0xff] }
  0xfc   :  { %1209 = vmatpush.msra.mxu2 %v464_v5  ;;  %1231 = vmatpush.msra.mxu3 %v93_v6  ;;  %v346_v4 = vld [vmem:[%s5256_s1 + $0xa10] sm:$0xff]  ;;  %v405_v5 = vld [vmem:[%s5256_s1 + $0xbe8] sm:$0xff]  ;;  %v4176_v6 = vpop.f32.mrf.mxu0 }
  0xfd   :  { %1157 = vmatpush.msra.mxu0 %v152_v7  ;;  %1187 = vmatpush.msra.mxu1 %v260_v9  ;;  %v513_v7 = vld [vmem:[%s5256_s1 + $0xf48] sm:$0xff]  ;;  %v130_v9 = vld [vmem:[%s5256_s1 + $0x350] sm:$0xff] }
  0xfe   :  { %1210 = vmatpush.msra.mxu2 %v452_v10  ;;  %1232 = vmatpush.msra.mxu3 %v81_v12  ;;  %v334_v10 = vld [vmem:[%s5256_s1 + $0x9b0] sm:$0xff]  ;;  %v393_v12 = vld [vmem:[%s5256_s1 + $0xb88] sm:$0xff] }
  0xff   :  { %1122 = vmatmul.f32.vlgmr.msrb.gmra.mxu2 %v3880_v23  ;;  %1158 = vmatpush.msra.mxu0 %v140_v13  ;;  %v501_v13 = vld [vmem:[%s5256_s1 + $0xee8] sm:$0xff] }
 0x100   :  { %1188 = vmatpush.msra.mxu1 %v248_v35  ;;  %1211 = vmatpush.msra.mxu2 %v440_v14  ;;  %v118_v35 = vld [vmem:[%s5256_s1 + $0x2f0] sm:$0xff] }
 0x101   :  { %1233 = vmatpush.msra.mxu3 %v69_v15  ;;  %1159 = vmatpush.msra.mxu0 %v128_v16  ;;  %v322_v14 = vld [vmem:[%s5256_s1 + $0x950] sm:$0xff]  ;;  %v381_v16 = vld [vmem:[%s5256_s1 + $0xb28] sm:$0xff] }
 0x102   :  { %1145 = vmatmul.f32.vlgmr.msrb.gmra.mxu3 %v3782_v58  ;;  %1189 = vmatpush.msra.mxu1 %v236_v18  ;;  %v489_v18 = vld [vmem:[%s5256_s1 + $0xe88] sm:$0xff] }
 0x103   :  { %1212 = vmatpush.msra.mxu2 %v428_v19  ;;  %1234 = vmatpush.msra.mxu3 %v57_v20  ;;  %v106_v19 = vld [vmem:[%s5256_s1 + $0x290] sm:$0xff]  ;;  %v824_v20 = vpop.f32.mrf.mxu1 }
 0x104   :  { %1160 = vmatpush.msra.mxu0 %v116_v21  ;;  %1190 = vmatpush.msra.mxu1 %v224_v22  ;;  %v310_v21 = vld [vmem:[%s5256_s1 + $0x8f0] sm:$0xff]  ;;  %v369_v22 = vld [vmem:[%s5256_s1 + $0xac8] sm:$0xff] }
 0x105   :  { %1213 = vmatpush.msra.mxu2 %v416_v54  ;;  %1235 = vmatpush.msra.mxu3 %v45_v25 }
 0x106   :  { %1099 = vmatmul.f32.vlgmr.msrb.gmra.mxu1 %v3859_v17  ;;  %1161 = vmatpush.msra.mxu0 %v104_v26  ;;  %v4219_v26 = vld [vmem:[%s5255_s0 + $0x28] sm:$0xff] }
 0x107   :  { %1267 = vmatpush.msrb.mxu1 %v597_v27  ;;  %1290 = vmatpush.msrb.mxu2 %v214_v28  ;;  %v4159_v0 = vpop.f32.mrf.mxu3  ;;  %v477_v27 = vld [vmem:[%s5256_s1 + $0xe28] sm:$0xff]  ;;  %v94_v28 = vld [vmem:[%s5256_s1 + $0x230] sm:$0xff] }
 0x108   :  { %1236 = vmatpush.msra.mxu3 %v33_v29  ;;  %1162 = vmatpush.msra.mxu0 %v92_v32  ;;  %v298_v29 = vld [vmem:[%s5256_s1 + $0x890] sm:$0xff] }
 0x109   :  { %1268 = vmatpush.msrb.mxu1 %v585_v33  ;;  %1291 = vmatpush.msrb.mxu2 %v202_v34  ;;  %v357_v33 = vld [vmem:[%s5256_s1 + $0xa68] sm:$0xff]  ;;  %v4236_v34 = vpop.f32.mrf.mxu0 }
 0x10a   :  { %1313 = vmatpush.msrb.mxu3 %v406_v36  ;;  %1163 = vmatpush.msra.mxu0 %v80_v37  ;;  %v465_v36 = vld [vmem:[%s5256_s1 + $0xdc8] sm:$0xff]  ;;  %v82_v37 = vld [vmem:[%s5256_s1 + $0x1d0] sm:$0xff] }
 0x10b   :  { %1269 = vmatpush.msrb.mxu1 %v573_v38  ;;  %1292 = vmatpush.msrb.mxu2 %v190_v39  ;;  %v286_v38 = vld [vmem:[%s5256_s1 + $0x830] sm:$0xff]  ;;  %v345_v39 = vld [vmem:[%s5256_s1 + $0xa08] sm:$0xff] }
 0x10c   :  { %1314 = vmatpush.msrb.mxu3 %v394_v41  ;;  %1164 = vmatpush.msra.mxu0 %v68_v43  ;;  %v453_v41 = vld [vmem:[%s5256_s1 + $0xd68] sm:$0xff]  ;;  %v70_v43 = vld [vmem:[%s5256_s1 + $0x170] sm:$0xff] }
 0x10d   :  { %1270 = vmatpush.msrb.mxu1 %v561_v44  ;;  %1293 = vmatpush.msrb.mxu2 %v178_v47  ;;  %v274_v44 = vld [vmem:[%s5256_s1 + $0x7d0] sm:$0xff]  ;;  %v333_v47 = vld [vmem:[%s5256_s1 + $0x9a8] sm:$0xff] }
 0x10e   :  { %1315 = vmatpush.msrb.mxu3 %v382_v48  ;;  %1165 = vmatpush.msra.mxu0 %v56_v49  ;;  %v441_v48 = vld [vmem:[%s5256_s1 + $0xd08] sm:$0xff]  ;;  %v58_v49 = vld [vmem:[%s5256_s1 + $0x110] sm:$0xff] }
 0x10f   :  { %1271 = vmatpush.msrb.mxu1 %v549_v50  ;;  %1294 = vmatpush.msrb.mxu2 %v166_v53  ;;  %v262_v50 = vld [vmem:[%s5256_s1 + $0x770] sm:$0xff]  ;;  %v321_v53 = vld [vmem:[%s5256_s1 + $0x948] sm:$0xff] }
 0x110   :  { %1316 = vmatpush.msrb.mxu3 %v370_v55  ;;  %1166 = vmatpush.msra.mxu0 %v44_v59  ;;  %v429_v55 = vld [vmem:[%s5256_s1 + $0xca8] sm:$0xff]  ;;  %v46_v59 = vld [vmem:[%s5256_s1 + $0xb0] sm:$0xff] }
 0x111   :  { %1272 = vmatpush.msrb.mxu1 %v537_v60  ;;  %1295 = vmatpush.msrb.mxu2 %v154_v62  ;;  %v4283_v60 = vpop.f32.mrf.mxu0  ;;  %v250_v62 = vld [vmem:[%s5256_s1 + $0x710] sm:$0xff] }
 0x112   :  { %1317 = vmatpush.msrb.mxu3 %v358_v40  ;;  %1076 = vmatmul.f32.vlgmr.msrb.gmra.mxu0 %v3782_v58  ;;  %v309_v40 = vld [vmem:[%s5256_s1 + $0x8e8] sm:$0xff] }
 0x113   :  { %1273 = vmatpush.msrb.mxu1 %v525_v42  ;;  %1167 = vmatpush.msra.mxu0 %v32_v1  ;;  %v870_v25 = vpop.f32.mrf.mxu3  ;;  %v34_v42 = vld [vmem:[%s5256_s1 + $0x50] sm:$0xff]  ;;  %v417_v1 = vld [vmem:[%s5256_s1 + $0xc48] sm:$0xff] }
 0x114   :  { %1296 = vmatpush.msrb.mxu2 %v142_v2  ;;  %1318 = vmatpush.msrb.mxu3 %v346_v4  ;;  %v238_v2 = vld [vmem:[%s5256_s1 + $0x6b0] sm:$0xff]  ;;  %v297_v4 = vld [vmem:[%s5256_s1 + $0x888] sm:$0xff] }
 0x115   :  { %1244 = vmatpush.msrb.mxu0 %v405_v5  ;;  %1274 = vmatpush.msrb.mxu1 %v513_v7  ;;  %v215_v5 = vld [vmem:[%s5256_s1 + $0x5f8] sm:$0xff] }
 0x116   :  { %1297 = vmatpush.msrb.mxu2 %v130_v9  ;;  %1319 = vmatpush.msrb.mxu3 %v334_v10  ;;  %v407_v7 = vld [vmem:[%s5256_s1 + $0xbf8] sm:$0xff]  ;;  %v226_v9 = vld [vmem:[%s5256_s1 + $0x650] sm:$0xff]  ;;  %v285_v10 = vld [vmem:[%s5256_s1 + $0x828] sm:$0xff] }
 0x117   :  { %1245 = vmatpush.msrb.mxu0 %v393_v12  ;;  %1125 = vmatmul.f32.gmra.mxu2 %v4006_v3  ;;  %v203_v12 = vld [vmem:[%s5256_s1 + $0x598] sm:$0xff] }
 0x118   :  { %v847_v15 = vpop.f32.mrf.mxu2  ;;  %1275 = vmatpush.msrb.mxu1 %v501_v13  ;;  %1298 = vmatpush.msrb.mxu2 %v118_v35  ;;  %v395_v13 = vld [vmem:[%s5256_s1 + $0xb98] sm:$0xff] }
 0x119   :  { %1320 = vmatpush.msrb.mxu3 %v322_v14  ;;  %v848_v54 = vadd.f32 %v847_v15, %v824_v20  ;;  %1246 = vmatpush.msrb.mxu0 %v381_v16  ;;  %v599_v14 = vld [vmem:[%s5256_s1 + $0x11f8] sm:$0xff]  ;;  %v4327_v16 = vpop.f32.mrf.mxu0 }
 0x11a   :  { %1148 = vmatmul.f32.gmra.mxu3 %v4219_v26  ;;  %1276 = vmatpush.msrb.mxu1 %v489_v18  ;;  %v273_v18 = vld [vmem:[%s5256_s1 + $0x7c8] sm:$0xff] }
 0x11b   :  { %1299 = vmatpush.msrb.mxu2 %v106_v19  ;;  %v4231_v32 = vadd.f32 %v870_v25, %v848_v54  ;;  %1321 = vmatpush.msrb.mxu3 %v310_v21  ;;  %v191_v19 = vld [vmem:[%s5256_s1 + $0x538] sm:$0xff] }
 0x11c   :  { %1247 = vmatpush.msrb.mxu0 %v369_v22  ;;  %1277 = vmatpush.msrb.mxu1 %v477_v27  ;;  %v383_v21 = vld [vmem:[%s5256_s1 + $0xb38] sm:$0xff] }
 0x11d   :  { %1079 = vmatmul.f32.gmra.mxu0 %v4219_v26  ;;  %1300 = vmatpush.msrb.mxu2 %v94_v28  ;;  %v587_v22 = vld [vmem:[%s5256_s1 + $0x1198] sm:$0xff]  ;;  %v261_v28 = vld [vmem:[%s5256_s1 + $0x768] sm:$0xff] }
 0x11e   :  { %1322 = vmatpush.msrb.mxu3 %v298_v29  ;;  %1248 = vmatpush.msrb.mxu0 %v357_v33  ;;  %v179_v25 = vld [vmem:[%s5256_s1 + $0x4d8] sm:$0xff] }
 0x11f   :  { %1102 = vmatmul.f32.gmra.mxu1 %v3985_v63  ;;  %1301 = vmatpush.msrb.mxu2 %v82_v37  ;;  %v371_v29 = vld [vmem:[%s5256_s1 + $0xad8] sm:$0xff] }
 0x120   :  { %1278 = vmatpush.msrb.mxu1 %v465_v36  ;;  %1323 = vmatpush.msrb.mxu3 %v286_v38  ;;  %v575_v33 = vld [vmem:[%s5256_s1 + $0x1138] sm:$0xff]  ;;  %v249_v36 = vld [vmem:[%s5256_s1 + $0x708] sm:$0xff] }
 0x121   :  { %1249 = vmatpush.msrb.mxu0 %v345_v39  ;;  %1302 = vmatpush.msrb.mxu2 %v70_v43  ;;  %v167_v37 = vld [vmem:[%s5256_s1 + $0x478] sm:$0xff] }
 0x122   :  { %1279 = vmatpush.msrb.mxu1 %v453_v41  ;;  %1324 = vmatpush.msrb.mxu3 %v274_v44  ;;  %v359_v38 = vld [vmem:[%s5256_s1 + $0xa78] sm:$0xff]  ;;  %v237_v41 = vld [vmem:[%s5256_s1 + $0x6a8] sm:$0xff] }
 0x123   :  { %1250 = vmatpush.msrb.mxu0 %v333_v47  ;;  %1214 = vmatmul.f32.vlgmr.msra.gmra.mxu2 %v3782_v58  ;;  %v563_v39 = vld [vmem:[%s5256_s1 + $0x10d8] sm:$0xff] }
 0x124   :  { %1280 = vmatpush.msrb.mxu1 %v441_v48  ;;  %1303 = vmatpush.msrb.mxu2 %v58_v49  ;;  %v155_v43 = vld [vmem:[%s5256_s1 + $0x418] sm:$0xff]  ;;  %v225_v48 = vld [vmem:[%s5256_s1 + $0x648] sm:$0xff]  ;;  %v4385_v49 = vpop.f32.mrf.mxu0 }
 0x125   :  { %1325 = vmatpush.msrb.mxu3 %v262_v50  ;;  %1251 = vmatpush.msrb.mxu0 %v321_v53  ;;  %v347_v44 = vld [vmem:[%s5256_s1 + $0xa18] sm:$0xff] }
 0x126   :  { %1281 = vmatpush.msrb.mxu1 %v429_v55  ;;  %1168 = vmatmul.f32.vlgmr.msra.gmra.mxu0 %v3859_v17  ;;  %v551_v47 = vld [vmem:[%s5256_s1 + $0x1078] sm:$0xff] }
 0x127   :  { %1304 = vmatpush.msrb.mxu2 %v46_v59  ;;  %1326 = vmatpush.msrb.mxu3 %v250_v62  ;;  %v143_v50 = vld [vmem:[%s5256_s1 + $0x3b8] sm:$0xff] }
 0x128   :  { %1252 = vmatpush.msrb.mxu0 %v309_v40  ;;  %1191 = vmatmul.f32.vlgmr.msra.gmra.mxu1 %v3880_v23  ;;  %v335_v53 = vld [vmem:[%s5256_s1 + $0x9b8] sm:$0xff] }
 0x129   :  { %1305 = vmatpush.msrb.mxu2 %v34_v42  ;;  %1282 = vmatpush.msrb.mxu1 %v417_v1  ;;  %v539_v55 = vld [vmem:[%s5256_s1 + $0x1018] sm:$0xff] }
 0x12a   :  { %1327 = vmatpush.msrb.mxu3 %v238_v2  ;;  %1253 = vmatpush.msrb.mxu0 %v297_v4  ;;  %v850_v35 = vpop.f32.mrf.mxu2  ;;  %v131_v59 = vld [vmem:[%s5256_s1 + $0x358] sm:$0xff] }
 0x12b   :  { %1359 = vmatpush.msra.mxu1 %v215_v5  ;;  %1382 = vmatpush.msra.mxu2 %v407_v7  ;;  %v827_v15 = vpop.f32.mrf.mxu1  ;;  %v323_v62 = vld [vmem:[%s5256_s1 + $0x958] sm:$0xff] }
 0x12c   :  { %1237 = vmatmul.f32.vlgmr.msra.gmra.mxu3 %v3859_v17  ;;  %1254 = vmatpush.msrb.mxu0 %v285_v10  ;;  %v851_v20 = vadd.f32 %v850_v35, %v827_v15  ;;  %v527_v40 = vld [vmem:[%s5256_s1 + $0xfb8] sm:$0xff] }
 0x12d   :  { %1328 = vmatpush.msrb.mxu3 %v226_v9  ;;  %1360 = vmatpush.msra.mxu1 %v203_v12  ;;  %v873_v54 = vpop.f32.mrf.mxu3  ;;  %v119_v42 = vld [vmem:[%s5256_s1 + $0x2f8] sm:$0xff] }
 0x12e   :  { %1383 = vmatpush.msra.mxu2 %v395_v13  ;;  %v4345_v27 = vadd.f32 %v873_v54, %v851_v20  ;;  %1255 = vmatpush.msrb.mxu0 %v273_v18  ;;  %v311_v1 = vld [vmem:[%s5256_s1 + $0x8f8] sm:$0xff] }
 0x12f   :  { %1405 = vmatpush.msra.mxu3 %v599_v14  ;;  %1217 = vmatmul.f32.gmra.mxu2 %v4219_v26  ;;  %v515_v2 = vld [vmem:[%s5256_s1 + $0xf58] sm:$0xff] }
 0x130   :  { %1361 = vmatpush.msra.mxu1 %v191_v19  ;;  %1384 = vmatpush.msra.mxu2 %v383_v21  ;;  %v107_v4 = vld [vmem:[%s5256_s1 + $0x298] sm:$0xff] }
 0x131   :  { %1406 = vmatpush.msra.mxu3 %v587_v22  ;;  %1171 = vmatmul.f32.gmra.mxu0 %v3985_v63  ;;  %v299_v5 = vld [vmem:[%s5256_s1 + $0x898] sm:$0xff] }
 0x132   :  { %1362 = vmatpush.msra.mxu1 %v179_v25  ;;  %1256 = vmatpush.msrb.mxu0 %v261_v28  ;;  %v503_v7 = vld [vmem:[%s5256_s1 + $0xef8] sm:$0xff] }
 0x133   :  { %1385 = vmatpush.msra.mxu2 %v371_v29  ;;  %1407 = vmatpush.msra.mxu3 %v575_v33  ;;  %v95_v9 = vld [vmem:[%s5256_s1 + $0x238] sm:$0xff] }
 0x134   :  { %1194 = vmatmul.f32.gmra.mxu1 %v4006_v3  ;;  %1257 = vmatpush.msrb.mxu0 %v249_v36  ;;  %v893_v10 = vpop.f32.mrf.mxu0  ;;  %v287_v13 = vld [vmem:[%s5256_s1 + $0x838] sm:$0xff] }
 0x135   :  { %1363 = vmatpush.msra.mxu1 %v167_v37  ;;  %1386 = vmatpush.msra.mxu2 %v359_v38  ;;  %v916_v12 = vpop.f32.mrf.mxu1  ;;  %v491_v35 = vld [vmem:[%s5256_s1 + $0xe98] sm:$0xff] }
 0x136   :  { %1408 = vmatpush.msra.mxu3 %v563_v39  ;;  %1258 = vmatpush.msrb.mxu0 %v237_v41  ;;  %v83_v14 = vld [vmem:[%s5256_s1 + $0x1d8] sm:$0xff]  ;;  %v939_v19 = vpop.f32.mrf.mxu2  ;;  %v917_v36 = vadd.f32 %v916_v12, %v893_v10  ;;  %v713_v12 = vadd.f32 %v4283_v60, %v4029_v11 }
 0x137   :  { %1240 = vmatmul.f32.gmra.mxu3 %v3985_v63  ;;  %1364 = vmatpush.msra.mxu1 %v155_v43  ;;  %v275_v15 = vld [vmem:[%s5256_s1 + $0x7d8] sm:$0xff] }
 0x138   :  { %1387 = vmatpush.msra.mxu2 %v347_v44  ;;  %1409 = vmatpush.msra.mxu3 %v551_v47  ;;  %v479_v18 = vld [vmem:[%s5256_s1 + $0xe38] sm:$0xff] }
 0x139   :  { %1259 = vmatpush.msrb.mxu0 %v225_v48  ;;  %1365 = vmatpush.msra.mxu1 %v143_v50  ;;  %v71_v20 = vld [vmem:[%s5256_s1 + $0x178] sm:$0xff]  ;;  %v940_v50 = vadd.f32 %v939_v19, %v917_v36 }
 0x13a   :  { %1388 = vmatpush.msra.mxu2 %v335_v53  ;;  %1410 = vmatpush.msra.mxu3 %v539_v55  ;;  %v263_v21 = vld [vmem:[%s5256_s1 + $0x778] sm:$0xff] }
 0x13b   :  { %1260 = vmatmul.f32.vlgmr.msrb.gmra.mxu0 %v3880_v23  ;;  %1366 = vmatpush.msra.mxu1 %v131_v59  ;;  %v467_v22 = vld [vmem:[%s5256_s1 + $0xdd8] sm:$0xff] }
 0x13c   :  { %1389 = vmatpush.msra.mxu2 %v323_v62  ;;  %1411 = vmatpush.msra.mxu3 %v527_v40  ;;  %v59_v54 = vld [vmem:[%s5256_s1 + $0x118] sm:$0xff] }
 0x13d   :  { %1283 = vmatmul.f32.vlgmr.msrb.gmra.mxu1 %v3782_v58  ;;  %1306 = vmatmul.f32.vlgmr.msrb.gmra.mxu2 %v3859_v17  ;;  %v251_v25 = vld [vmem:[%s5256_s1 + $0x718] sm:$0xff] }
 0x13e   :  { %1367 = vmatpush.msra.mxu1 %v119_v42  ;;  %1390 = vmatpush.msra.mxu2 %v311_v1  ;;  %v455_v28 = vld [vmem:[%s5256_s1 + $0xd78] sm:$0xff]  ;;  %v641_v1 = vadd.f32 %v3968_v57, %v4123_v45  ;;  %v710_v57 = vadd.f32 %v4236_v34, %v3966_v56 }
 0x13f   :  { %1412 = vmatpush.msra.mxu3 %v515_v2  ;;  %v47_v37 = vld [vmem:[%s5256_s1 + $0xb8] sm:$0xff] }
 0x140   :  { %1329 = vmatmul.f32.vlgmr.msrb.gmra.mxu3 %v3880_v23  ;;  %1368 = vmatpush.msra.mxu1 %v107_v4  ;;  %v239_v38 = vld [vmem:[%s5256_s1 + $0x6b8] sm:$0xff]  ;;  %v733_v10 = vadd.f32 %v4091_v31, %v710_v57 }
 0x141   :  { %1391 = vmatpush.msra.mxu2 %v299_v5  ;;  %1413 = vmatpush.msra.mxu3 %v503_v7  ;;  %v443_v39 = vld [vmem:[%s5256_s1 + $0xd18] sm:$0xff] }
 0x142   :  { %1369 = vmatpush.msra.mxu1 %v95_v9  ;;  %v35_v43 = vld [vmem:[%s5256_s1 + $0x58] sm:$0xff] }
 0x143   :  { %1392 = vmatpush.msra.mxu2 %v287_v13  ;;  %1414 = vmatpush.msra.mxu3 %v491_v35  ;;  %v227_v47 = vld [vmem:[%s5256_s1 + $0x658] sm:$0xff] }
 0x144   :  { %1263 = vmatmul.f32.gmra.mxu0 %v4006_v3  ;;  %1370 = vmatpush.msra.mxu1 %v83_v14  ;;  %v431_v48 = vld [vmem:[%s5256_s1 + $0xcb8] sm:$0xff]  ;;  %v962_v59 = vpop.f32.mrf.mxu3 }
 0x145   :  { %1393 = vmatpush.msra.mxu2 %v275_v15  ;;  %1415 = vmatpush.msra.mxu3 %v479_v18  ;;  %v419_v53 = vld [vmem:[%s5256_s1 + $0xc58] sm:$0xff] }
 0x146   :  { %1286 = vmatmul.f32.gmra.mxu1 %v4219_v26  ;;  %1309 = vmatmul.f32.gmra.mxu2 %v3985_v63  ;;  %v896_v29 = vpop.f32.mrf.mxu0 }
 0x147   :  { %1371 = vmatpush.msra.mxu1 %v71_v20  ;;  %1394 = vmatpush.msra.mxu2 %v263_v21  ;;  %v919_v33 = vpop.f32.mrf.mxu1 }
 0x148   :  { %1416 = vmatpush.msra.mxu3 %v467_v22  ;;  %v920_v41 = vadd.f32 %v919_v33, %v896_v29  ;;  %v942_v44 = vpop.f32.mrf.mxu2 }
 0x149   :  { %1332 = vmatmul.f32.gmra.mxu3 %v4006_v3  ;;  %1372 = vmatpush.msra.mxu1 %v59_v54 }
 0x14a   :  { %1395 = vmatpush.msra.mxu2 %v251_v25  ;;  %1417 = vmatpush.msra.mxu3 %v455_v28  ;;  %v943_v55 = vadd.f32 %v942_v44, %v920_v41 }
 0x14b   :  { %1373 = vmatpush.msra.mxu1 %v47_v37 }
 0x14c   :  { %1396 = vmatpush.msra.mxu2 %v239_v38  ;;  %1418 = vmatpush.msra.mxu3 %v443_v39 }
 0x14d   :  { %1374 = vmatpush.msra.mxu1 %v35_v43 }
 0x14e   :  { %1397 = vmatpush.msra.mxu2 %v227_v47  ;;  %1419 = vmatpush.msra.mxu3 %v431_v48 }
 0x14f   :  { %1375 = vmatmul.f32.vlgmr.msra.gmra.mxu1 %v3859_v17  ;;  %1398 = vmatmul.f32.vlgmr.msra.gmra.mxu2 %v3880_v23  ;;  %v664_v23 = vadd.f32 %v3955_v51, %v641_v1  ;;  %v1428_v1 = vlaneseq }
 0x150   :  { %1448 = vmatpush.xpose.msrb.mxu1 %v940_v50  ;;  %1420 = vmatpush.msra.mxu3 %v419_v53  ;;  %v985_v62 = vpop.f32.mrf.mxu0 }
 0x151   :  { %1421 = vmatmul.f32.vlgmr.msra.gmra.mxu3 %v3782_v58  ;;  %v986_v42 = vadd.f32 %v985_v62, %v962_v59 }
 0x153   :  { %v1008_v40 = vpop.f32.mrf.mxu1 }
 0x154   :  { %1468 = vmatpush.xpose.msra.mxu1 %v943_v55  ;;  %v1009_v17 = vadd.f32 %v1008_v40, %v986_v42 }
 0x157   :  { %1378 = vmatmul.f32.gmra.mxu1 %v3985_v63  ;;  %1401 = vmatmul.f32.gmra.mxu2 %v4006_v3  ;;  %v644_v63 = vadd.f32 %v4031_v46, %v4176_v6  ;;  %v736_v46 = vadd.f32 %v4151_v61, %v713_v12 }
 0x158   :  { %v965_v2 = vpop.f32.mrf.mxu3 }
 0x159   :  { %1424 = vmatmul.f32.gmra.mxu3 %v4219_v26  ;;  %v667_v7 = vadd.f32 %v4021_v8, %v644_v63 }
 0x15a   :  { %v988_v4 = vpop.f32.mrf.mxu0 }
 0x15b   :  { %v989_v58 = vadd.f32 %v988_v4, %v965_v2  ;;  %v1431_v2 = vand.u32 127, %v1428_v1 }
 0x15c   :  { %v1011_v5 = vpop.f32.mrf.mxu1 }
 0x15d   :  { %v1012_v3 = vadd.f32 %v1011_v5, %v989_v58 }
 0x15f   :  { %1449 = vmatmul.f32.vlgmr.msrb.gmra.mxu1 %v664_v23  ;;  %v1429_v23 = vshrl.u32 %v1428_v1, 7  ;;  %v418_v1 = vld [vmem:[%s5256_s1 + $0xc50] sm:$0xff] }
 0x160   :  { %1609 = vmatpush.xpose.msrb.mxu1 %v1009_v17 }
 0x161   :  { %vm4519_vm0 = vcmp.le.s32.totalorder %v1431_v2, %v1429_v23 }
 0x166   :  { %v1031_v45 = vpop.f32.mrf.mxu2 }
 0x167   :  { %1469 = vmatmul.f32.vlgmr.msra.gmra.mxu1 %v667_v7 }
 0x168   :  { %1629 = vmatpush.xpose.msra.mxu1 %v1012_v3 }
 0x169   :  { %v1054_v9 = vpop.f32.mrf.mxu3 }
 0x16a   :  { %v1055_v51 = vadd.f32 %v1054_v9, %v1031_v45 }
 0x16f   :  { %1610 = vmatmul.f32.vlgmr.msrb.gmra.mxu1 %v733_v10 }
 0x177   :  { %1630 = vmatmul.f32.vlgmr.msra.gmra.mxu1 %v736_v46 }
 0x179   :  { %v1034_v6 = vpop.f32.mrf.mxu2 }
 0x17c   :  { %v1057_v13 = vpop.f32.mrf.mxu3 }
 0x17d   :  { %v1058_v8 = vadd.f32 %v1057_v13, %v1034_v6 }
 0x182   :  { %v1123_v35 = vpop.f32.mrf.mxu2 }
 0x183   :  { %v1100_v14 = vpop.f32.mrf.mxu1 }
 0x184   :  { %v1124_v15 = vadd.f32 %v1123_v35, %v1100_v14  ;;  %v598_v35 = vld [vmem:[%s5256_s1 + $0x11f0] sm:$0xff] }
 0x185   :  { %v1146_v18 = vpop.f32.mrf.mxu3  ;;  %v586_v14 = vld [vmem:[%s5256_s1 + $0x1190] sm:$0xff]  ;;  %1336 = vmatpush.msra.mxu0 %v598_v35 }
 0x186   :  { %v4507_v56 = vadd.f32 %v1146_v18, %v1124_v15  ;;  %v574_v15 = vld [vmem:[%s5256_s1 + $0x1130] sm:$0xff] }
 0x187   :  { %1337 = vmatpush.msra.mxu0 %v586_v14  ;;  %v2447_v35 = vld [vmem:[%s5257_s2 + $0x2f0] sm:$0xff]  ;;  %v2444_v14 = vld [vmem:[%s5257_s2 + $0x2d8] sm:$0xff] }
 0x188   :  { %1776 = vmatpush.msrb.mxu1 %v2447_v35  ;;  %v2419_v35 = vld [vmem:[%s5257_s2 + $0x210] sm:$0xff] }
 0x189   :  { %1338 = vmatpush.msra.mxu0 %v574_v15  ;;  %v2430_v15 = vld [vmem:[%s5257_s2 + $0x268] sm:$0xff] }
 0x18a   :  { %1777 = vmatpush.msrb.mxu1 %v2444_v14  ;;  %v2408_v14 = vld [vmem:[%s5257_s2 + $0x1b8] sm:$0xff] }
 0x18f   :  { %v1077_v34 = vpop.f32.mrf.mxu0 }
 0x190   :  { %v4509_v19 = vadd.f32 %v1077_v34, %v1055_v51 }
 0x19a   :  { %v1080_v31 = vpop.f32.mrf.mxu0  ;;  %v1126_v21 = vpop.f32.mrf.mxu2 }
 0x19b   :  { %v4511_v20 = vadd.f32 %v1080_v31, %v1058_v8  ;;  %v562_v31 = vld [vmem:[%s5256_s1 + $0x10d0] sm:$0xff] }
 0x19c   :  { %v1103_v11 = vpop.f32.mrf.mxu1  ;;  %1339 = vmatpush.msra.mxu0 %v562_v31  ;;  %v2441_v31 = vld [vmem:[%s5257_s2 + $0x2c0] sm:$0xff] }
 0x19d   :  { %v1127_v60 = vadd.f32 %v1126_v21, %v1103_v11  ;;  %v1149_v61 = vpop.f32.mrf.mxu3  ;;  %1778 = vmatpush.msrb.mxu1 %v2441_v31  ;;  %v2413_v31 = vld [vmem:[%s5257_s2 + $0x1e0] sm:$0xff] }
 0x19f   :  { %v4513_v22 = vadd.f32 %v1149_v61, %v1127_v60  ;;  %v550_v60 = vld [vmem:[%s5256_s1 + $0x1070] sm:$0xff] }
 0x1a0   :  { %1340 = vmatpush.msra.mxu0 %v550_v60  ;;  %v1582_v60 = vld [vmem:[%s5257_s2 + $0x120] sm:$0xff] }
 0x1a3   :  { %v1169_v54 = vpop.f32.mrf.mxu0 }
 0x1a5   :  { %v1192_v25 = vpop.f32.mrf.mxu1 }
 0x1a6   :  { %v1193_v28 = vadd.f32 %v1192_v25, %v1169_v54  ;;  %v1215_v29 = vpop.f32.mrf.mxu2  ;;  %v538_v54 = vld [vmem:[%s5256_s1 + $0x1010] sm:$0xff] }
 0x1a7   :  { %v526_v25 = vld [vmem:[%s5256_s1 + $0xfb0] sm:$0xff]  ;;  %1341 = vmatpush.msra.mxu0 %v538_v54  ;;  %v2438_v54 = vld [vmem:[%s5257_s2 + $0x2a8] sm:$0xff] }
 0x1a8   :  { %v1216_v33 = vadd.f32 %v1215_v29, %v1193_v28  ;;  %1779 = vmatpush.msrb.mxu1 %v2438_v54  ;;  %v2407_v54 = vld [vmem:[%s5257_s2 + $0x1b0] sm:$0xff] }
 0x1a9   :  { %1342 = vmatpush.msra.mxu0 %v526_v25 }
 0x1aa   :  { %1518 = vmatpush.msrb.mxu2 %v1216_v33  ;;  %v514_v33 = vld [vmem:[%s5256_s1 + $0xf50] sm:$0xff] }
 0x1ab   :  { %1343 = vmatpush.msra.mxu0 %v514_v33  ;;  %v1579_v33 = vld [vmem:[%s5257_s2 + $0x108] sm:$0xff] }
 0x1ae   :  { %v1172_v36 = vpop.f32.mrf.mxu0 }
 0x1af   :  { %v1238_v43 = vpop.f32.mrf.mxu3 }
 0x1b1   :  { %v1195_v37 = vpop.f32.mrf.mxu1 }
 0x1b2   :  { %v1196_v38 = vadd.f32 %v1195_v37, %v1172_v36  ;;  %v1218_v39 = vpop.f32.mrf.mxu2 }
 0x1b4   :  { %v1219_v41 = vadd.f32 %v1218_v39, %v1196_v38  ;;  %v502_v38 = vld [vmem:[%s5256_s1 + $0xef0] sm:$0xff] }
 0x1b5   :  { %1344 = vmatpush.msra.mxu0 %v502_v38  ;;  %v2421_v38 = vld [vmem:[%s5257_s2 + $0x220] sm:$0xff] }
 0x1b6   :  { %1541 = vmatpush.msrb.mxu3 %v1219_v41  ;;  %v490_v41 = vld [vmem:[%s5256_s1 + $0xe90] sm:$0xff] }
 0x1b7   :  { %1345 = vmatpush.msra.mxu0 %v490_v41  ;;  %v2432_v41 = vld [vmem:[%s5257_s2 + $0x278] sm:$0xff] }
 0x1b8   :  { %v1261_v44 = vpop.f32.mrf.mxu0 }
 0x1b9   :  { %v1262_v47 = vadd.f32 %v1261_v44, %v1238_v43  ;;  %v478_v43 = vld [vmem:[%s5256_s1 + $0xe30] sm:$0xff] }
 0x1ba   :  { %v1284_v48 = vpop.f32.mrf.mxu1  ;;  %v1241_v53 = vpop.f32.mrf.mxu3  ;;  %1346 = vmatpush.msra.mxu0 %v478_v43  ;;  %v2437_v43 = vld [vmem:[%s5257_s2 + $0x2a0] sm:$0xff] }
 0x1bb   :  { %v1285_v50 = vadd.f32 %v1284_v48, %v1262_v47  ;;  %v466_v48 = vld [vmem:[%s5256_s1 + $0xdd0] sm:$0xff] }
 0x1bc   :  { %1347 = vmatpush.msra.mxu0 %v466_v48  ;;  %v2429_v48 = vld [vmem:[%s5257_s2 + $0x260] sm:$0xff] }
 0x1bd   :  { %1676 = vmatpush.msra.mxu2 %v1285_v50 }
 0x1c1   :  { %v1264_v55 = vpop.f32.mrf.mxu0 }
 0x1c2   :  { %v1265_v59 = vadd.f32 %v1264_v55, %v1241_v53  ;;  %v454_v55 = vld [vmem:[%s5256_s1 + $0xd70] sm:$0xff] }
 0x1c3   :  { %v1287_v62 = vpop.f32.mrf.mxu1  ;;  %1348 = vmatpush.msra.mxu0 %v454_v55  ;;  %v1570_v55 = vld [vmem:[%s5257_s2 + $0xc0] sm:$0xff] }
 0x1c4   :  { %v1288_v40 = vadd.f32 %v1287_v62, %v1265_v59  ;;  %v442_v62 = vld [vmem:[%s5256_s1 + $0xd10] sm:$0xff] }
 0x1c5   :  { %1349 = vmatpush.msra.mxu0 %v442_v62  ;;  %v2426_v62 = vld [vmem:[%s5257_s2 + $0x248] sm:$0xff] }
 0x1c6   :  { %1699 = vmatpush.msra.mxu3 %v1288_v40  ;;  %v430_v40 = vld [vmem:[%s5256_s1 + $0xcb0] sm:$0xff] }
 0x1c7   :  { %1350 = vmatpush.msra.mxu0 %v430_v40 }
 0x1c9   :  { %1351 = vmatpush.msra.mxu0 %v418_v1  ;;  %v2412_v1 = vld [vmem:[%s5257_s2 + $0x1d8] sm:$0xff] }
 0x1cc   :  { %v4515_v42 = vpop.f32.mrf.mxu1 }
 0x1d4   :  { %v4517_v17 = vpop.f32.mrf.mxu1 }
 0x1dc   :  { %v1450_v58 = vpop.f32.mrf.mxu1 }
 0x1dd   :  { %v1475_v63 = vsel %vm4519_vm0, %v1450_v58, -1e+30  ;;  %v2590_v58 = vld [vmem:[%s5255_s0 + $0x10] sm:$0xff] }
 0x1de   :  { %v1478_v5 = vsel %vm1477_vm1, %v1475_v63, -inf  ;;  %1352 = vmatmul.f32.vlgmr.msra.gmra.mxu0 %v2590_v58  ;;  %v2423_v58 = vld [vmem:[%s5257_s2 + $0x230] sm:$0xff] }
 0x1df   :  { %1479 = vmax.xlane.f32.xlu0 %v1478_v5 }
 0x1e4   :  { %v1470_v3 = vpop.f32.mrf.mxu1 }
 0x1e5   :  { %v1476_v7 = vsel %vm4519_vm0, %v1470_v3, -1e+30 }
 0x1e6   :  { %v1481_v57 = vsel %vm1477_vm1, %v1476_v7, -inf  ;;  %1355 = vmatmul.f32.gmra.mxu0 %v4219_v26  ;;  %v2442_v26 = vld [vmem:[%s5257_s2 + $0x2c8] sm:$0xff] }
 0x1e7   :  { %1482 = vmax.xlane.f32.xlu0 %v1481_v57  ;;  %v2448_v57 = vld [vmem:[%s5257_s2 + $0x2f8] sm:$0xff] }
 0x1ec   :  { %v1611_v45 = vpop.f32.mrf.mxu1 }
 0x1ed   :  { %v1634_v9 = vsel %vm4519_vm0, %v1611_v45, -1e+30  ;;  %v2445_v45 = vld [vmem:[%s5257_s2 + $0x2e0] sm:$0xff] }
 0x1ee   :  { %v1636_v51 = vsel %vm1477_vm1, %v1634_v9, -inf }
 0x1ef   :  { %1637 = vmax.xlane.f32.xlu1 %v1636_v51 }
 0x1f4   :  { %v1631_v10 = vpop.f32.mrf.mxu1 }
 0x1f5   :  { %v1635_v12 = vsel %vm4519_vm0, %v1631_v10, -1e+30 }
 0x1f6   :  { %v1639_v46 = vsel %vm1477_vm1, %v1635_v12, -inf }
 0x1f7   :  { %1640 = vmax.xlane.f32.xlu1 %v1639_v46  ;;  %v2436_v46 = vld [vmem:[%s5257_s2 + $0x298] sm:$0xff] }
 0x252   :  { %v1480_v6 = vpop.xlane.xlu0 %1479 }
 0x253   :  { %v1484_v13 = vsub.f32 %v1475_v63, %v1480_v6  ;;  %v1591_v6 = vld [vmem:[%s5257_s2 + $0x168] sm:$0xff] }
 0x255   :  { %v1486_v8 = vmul.f32 1.442695, %v1484_v13  ;;  %v2433_v13 = vld [vmem:[%s5257_s2 + $0x280] sm:$0xff] }
 0x257   :  { %2552 = vpow2.f32 %v1486_v8  ;;  %v1588_v8 = vld [vmem:[%s5257_s2 + $0x150] sm:$0xff] }
 0x25a   :  { %v1483_v18 = vpop.xlane.xlu0 %1482 }
 0x25b   :  { %v1485_v34 = vsub.f32 %v1476_v7, %v1483_v18  ;;  %v1585_v18 = vld [vmem:[%s5257_s2 + $0x138] sm:$0xff] }
 0x25d   :  { %v2553_v21 = vpop.eup %2552  ;;  %v1488_v11 = vmul.f32 1.442695, %v1485_v34  ;;  %v2446_v34 = vld [vmem:[%s5257_s2 + $0x2e8] sm:$0xff] }
 0x25e   :  { %v1490_v61 = vsel %vm1477_vm1, %v2553_v21, 0.0  ;;  %1753 = vmatpush.msrb.mxu0 %v2446_v34  ;;  %v1546_v34 = vld [vmem:[%s5257_s2] sm:$0xff] }
 0x25f   :  { %2554 = vpow2.f32 %v1488_v11  ;;  %1491 = vadd.xlane.f32.xlu2 %v1490_v61  ;;  %v2427_v11 = vld [vmem:[%s5257_s2 + $0x250] sm:$0xff] }
 0x262   :  { %v1638_v28 = vpop.xlane.xlu1 %1637 }
 0x263   :  { %v1642_v29 = vsub.f32 %v1634_v9, %v1638_v28  ;;  %v2439_v9 = vld [vmem:[%s5257_s2 + $0x2b0] sm:$0xff] }
 0x265   :  { %v2555_v36 = vpop.eup %2554  ;;  %v1644_v37 = vmul.f32 1.442695, %v1642_v29  ;;  %v2424_v29 = vld [vmem:[%s5257_s2 + $0x238] sm:$0xff] }
 0x266   :  { %v1493_v39 = vsel %vm1477_vm1, %v2555_v36, 0.0 }
 0x267   :  { %2556 = vpow2.f32 %v1644_v37  ;;  %1494 = vadd.xlane.f32.xlu2 %v1493_v39  ;;  %v2440_v37 = vld [vmem:[%s5257_s2 + $0x2b8] sm:$0xff]  ;;  %v1576_v39 = vld [vmem:[%s5257_s2 + $0xf0] sm:$0xff] }
 0x26a   :  { %v1641_v44 = vpop.xlane.xlu1 %1640 }
 0x26b   :  { %v1643_v47 = vsub.f32 %v1635_v12, %v1641_v44  ;;  %v2418_v44 = vld [vmem:[%s5257_s2 + $0x208] sm:$0xff] }
 0x26d   :  { %v4573_v50 = vpop.eup %2556  ;;  %v1646_v53 = vmul.f32 1.442695, %v1643_v47  ;;  %v1573_v47 = vld [vmem:[%s5257_s2 + $0xd8] sm:$0xff] }
 0x26e   :  { %v1648_v59 = vsel %vm1477_vm1, %v4573_v50, 0.0 }
 0x26f   :  { %2558 = vpow2.f32 %v1646_v53  ;;  %1649 = vadd.xlane.f32.xlu0 %v1648_v59  ;;  %v2415_v53 = vld [vmem:[%s5257_s2 + $0x1f0] sm:$0xff] }
 0x275   :  { %v4589_v23 = vpop.eup %2558 }
 0x276   :  { %v1651_v2 = vsel %vm1477_vm1, %v4589_v23, 0.0 }
 0x277   :  { %1652 = vadd.xlane.f32.xlu1 %v1651_v2  ;;  %v1567_v2 = vld [vmem:[%s5257_s2 + $0xa8] sm:$0xff] }
 0x2d2   :  { %v1492_v63 = vpop.xlane.xlu2 %1491 }
 0x2d3   :  { %2560 = vrcp.f32 %v1492_v63  ;;  %v2409_v63 = vld [vmem:[%s5257_s2 + $0x1c0] sm:$0xff] }
 0x2d9   :  { %v2561_v5 = vpop.eup %2560 }
 0x2da   :  { %v1498_v3 = vmul.f32 %v2561_v5, %v2553_v21  ;;  %v1495_v7 = vpop.xlane.xlu2 %1494  ;;  %v2443_v21 = vld [vmem:[%s5257_s2 + $0x2d0] sm:$0xff] }
 0x2db   :  { %2562 = vrcp.f32 %v1495_v7  ;;  %1754 = vmatpush.msrb.mxu0 %v2443_v21  ;;  %v1564_v5 = vld [vmem:[%s5257_s2 + $0x90] sm:$0xff]  ;;  %v2428_v7 = vld [vmem:[%s5257_s2 + $0x258] sm:$0xff]  ;;  %v2402_v21 = vld [vmem:[%s5257_s2 + $0x188] sm:$0xff] }
 0x2dc   :  { %2397 = vmatmul.msk.f32.vlgmr.msrb.gmra.mxu2 %vm1477_vm1, %v1498_v3  ;;  %v2420_v3 = vld [vmem:[%s5257_s2 + $0x218] sm:$0xff] }
 0x2dd   :  { %1799 = vmatpush.msrb.mxu2 %v2448_v57  ;;  %1755 = vmatpush.msrb.mxu0 %v2440_v37  ;;  %v2406_v57 = vld [vmem:[%s5257_s2 + $0x1a8] sm:$0xff]  ;;  %v4815_v37 = vpop.f32.mrf.mxu2 }
 0x2df   :  { %1800 = vmatpush.msrb.mxu2 %v2445_v45  ;;  %1756 = vmatpush.msrb.mxu0 %v2437_v43  ;;  %v1561_v45 = vld [vmem:[%s5257_s2 + $0x78] sm:$0xff]  ;;  %v1592_v43 = vld [vmem:[%s5257_s2 + $0x170] sm:$0xff] }
 0x2e1   :  { %v2563_v51 = vpop.eup %2562  ;;  %1801 = vmatpush.msrb.mxu2 %v2442_v26  ;;  %v2417_v26 = vld [vmem:[%s5257_s2 + $0x200] sm:$0xff] }
 0x2e2   :  { %v1499_v10 = vmul.f32 %v2563_v51, %v2555_v36  ;;  %v1650_v12 = vpop.xlane.xlu0 %1649  ;;  %v2435_v36 = vld [vmem:[%s5257_s2 + $0x290] sm:$0xff] }
 0x2e3   :  { %1802 = vmatpush.msrb.mxu2 %v2439_v9  ;;  %2564 = vrcp.f32 %v1650_v12  ;;  %1780 = vmatpush.msrb.mxu1 %v2435_v36  ;;  %v2425_v9 = vld [vmem:[%s5257_s2 + $0x240] sm:$0xff]  ;;  %v2403_v51 = vld [vmem:[%s5257_s2 + $0x190] sm:$0xff]  ;;  %v2414_v12 = vld [vmem:[%s5257_s2 + $0x1e8] sm:$0xff] }
 0x2e4   :  { %2398 = vmatmul.msk.f32.vlgmr.msrb.gmra.mxu3 %vm1477_vm1, %v1499_v10  ;;  %v1558_v10 = vld [vmem:[%s5257_s2 + $0x60] sm:$0xff]  ;;  %v1575_v36 = vld [vmem:[%s5257_s2 + $0xe8] sm:$0xff] }
 0x2e5   :  { %1803 = vmatpush.msrb.mxu2 %v2436_v46  ;;  %1822 = vmatpush.msrb.mxu3 %v1591_v6  ;;  %v1555_v46 = vld [vmem:[%s5257_s2 + $0x48] sm:$0xff] }
 0x2e6   :  { %1781 = vmatpush.msrb.mxu1 %v2432_v41  ;;  %v2422_v6 = vld [vmem:[%s5257_s2 + $0x228] sm:$0xff]  ;;  %v4823_v41 = vpop.f32.mrf.mxu3 }
 0x2e7   :  { %1804 = vmatpush.msrb.mxu2 %v2433_v13  ;;  %1823 = vmatpush.msrb.mxu3 %v1588_v8  ;;  %v2411_v13 = vld [vmem:[%s5257_s2 + $0x1d0] sm:$0xff] }
 0x2e8   :  { %1782 = vmatpush.msrb.mxu1 %v2429_v48  ;;  %v1552_v8 = vld [vmem:[%s5257_s2 + $0x30] sm:$0xff]  ;;  %v1566_v48 = vld [vmem:[%s5257_s2 + $0xa0] sm:$0xff] }
 0x2e9   :  { %v2565_v61 = vpop.eup %2564  ;;  %1805 = vmatpush.msrb.mxu2 %v2430_v15  ;;  %1824 = vmatpush.msrb.mxu3 %v1585_v18  ;;  %v1549_v15 = vld [vmem:[%s5257_s2 + $0x18] sm:$0xff]  ;;  %v2405_v18 = vld [vmem:[%s5257_s2 + $0x1a0] sm:$0xff] }
 0x2ea   :  { %v1656_v25 = vmul.f32 %v2565_v61, %v4573_v50  ;;  %v1653_v28 = vpop.xlane.xlu1 %1652  ;;  %v2434_v50 = vld [vmem:[%s5257_s2 + $0x288] sm:$0xff]  ;;  %1783 = vmatpush.msrb.mxu1 %v2426_v62  ;;  %v1590_v61 = vld [vmem:[%s5257_s2 + $0x160] sm:$0xff]  ;;  %v1560_v62 = vld [vmem:[%s5257_s2 + $0x70] sm:$0xff] }
 0x2eb   :  { %1806 = vmatpush.msrb.mxu2 %v2427_v11  ;;  %2566 = vrcp.f32 %v1653_v28  ;;  %1825 = vmatpush.msrb.mxu3 %v1582_v60  ;;  %v1593_v11 = vld [vmem:[%s5257_s2 + $0x178] sm:$0xff]  ;;  %v2410_v60 = vld [vmem:[%s5257_s2 + $0x1c8] sm:$0xff] }
 0x2ec   :  { %2399 = vmatmul.msk.f32.vlgmr.msra.gmra.mxu2 %vm1477_vm1, %v1656_v25  ;;  %1757 = vmatpush.msrb.mxu0 %v2434_v50  ;;  %v1587_v25 = vld [vmem:[%s5257_s2 + $0x148] sm:$0xff]  ;;  %v2404_v28 = vld [vmem:[%s5257_s2 + $0x198] sm:$0xff]  ;;  %v1310_v50 = vpop.f32.mrf.mxu2 }
 0x2ed   :  { %1807 = vmatpush.msrb.mxu2 %v2424_v29  ;;  %1826 = vmatpush.msrb.mxu3 %v1579_v33  ;;  %v1581_v29 = vld [vmem:[%s5257_s2 + $0x118] sm:$0xff]  ;;  %v1578_v33 = vld [vmem:[%s5257_s2 + $0x100] sm:$0xff] }
 0x2ee   :  { %1784 = vmatpush.msrb.mxu1 %v2423_v58  ;;  %v1554_v58 = vld [vmem:[%s5257_s2 + $0x40] sm:$0xff] }
 0x2ef   :  { %1808 = vmatpush.msrb.mxu2 %v2421_v38  ;;  %1827 = vmatpush.msrb.mxu3 %v1576_v39  ;;  %v1572_v38 = vld [vmem:[%s5257_s2 + $0xd0] sm:$0xff]  ;;  %v2401_v39 = vld [vmem:[%s5257_s2 + $0x180] sm:$0xff] }
 0x2f0   :  { %1785 = vmatpush.msrb.mxu1 %v2420_v3 }
 0x2f1   :  { %v2567_v59 = vpop.eup %2566  ;;  %1809 = vmatpush.msrb.mxu2 %v2418_v44  ;;  %1828 = vmatpush.msrb.mxu3 %v1573_v47  ;;  %v1569_v44 = vld [vmem:[%s5257_s2 + $0xb8] sm:$0xff] }
 0x2f2   :  { %v1657_v40 = vmul.f32 %v2567_v59, %v4589_v23  ;;  %v2431_v23 = vld [vmem:[%s5257_s2 + $0x270] sm:$0xff]  ;;  %1786 = vmatpush.msrb.mxu1 %v2417_v26  ;;  %v1589_v47 = vld [vmem:[%s5257_s2 + $0x158] sm:$0xff]  ;;  %v1583_v59 = vld [vmem:[%s5257_s2 + $0x128] sm:$0xff] }
 0x2f3   :  { %1810 = vmatpush.msrb.mxu2 %v2415_v53  ;;  %1829 = vmatpush.msrb.mxu3 %v1570_v55  ;;  %v1586_v53 = vld [vmem:[%s5257_s2 + $0x140] sm:$0xff]  ;;  %v1563_v55 = vld [vmem:[%s5257_s2 + $0x88] sm:$0xff]  ;;  %v1568_v26 = vld [vmem:[%s5257_s2 + $0xb0] sm:$0xff] }
 0x2f4   :  { %2400 = vmatmul.msk.f32.vlgmr.msra.gmra.mxu3 %vm1477_vm1, %v1657_v40  ;;  %1758 = vmatpush.msrb.mxu0 %v2431_v23  ;;  %v1580_v40 = vld [vmem:[%s5257_s2 + $0x110] sm:$0xff]  ;;  %v1333_v23 = vpop.f32.mrf.mxu3  ;;  %v1399_v3 = vpop.f32.mrf.mxu2 }
 0x2f5   :  { %1811 = vmatpush.msrb.mxu2 %v2412_v1  ;;  %1830 = vmatpush.msrb.mxu3 %v1567_v2  ;;  %v1557_v1 = vld [vmem:[%s5257_s2 + $0x58] sm:$0xff] }
 0x2f6   :  { %1759 = vmatpush.msrb.mxu0 %v2428_v7  ;;  %1787 = vmatpush.msrb.mxu1 %v2414_v12  ;;  %v1577_v2 = vld [vmem:[%s5257_s2 + $0xf8] sm:$0xff]  ;;  %v1571_v7 = vld [vmem:[%s5257_s2 + $0xc8] sm:$0xff] }
 0x2f7   :  { %1812 = vmatpush.msrb.mxu2 %v2409_v63  ;;  %1831 = vmatpush.msrb.mxu3 %v1564_v5  ;;  %v1574_v63 = vld [vmem:[%s5257_s2 + $0xe0] sm:$0xff]  ;;  %v1551_v5 = vld [vmem:[%s5257_s2 + $0x28] sm:$0xff] }
 0x2f8   :  { %1760 = vmatpush.msrb.mxu0 %v2425_v9  ;;  %1788 = vmatpush.msrb.mxu1 %v2411_v13  ;;  %v1565_v9 = vld [vmem:[%s5257_s2 + $0x98] sm:$0xff] }
 0x2f9   :  { %1813 = vmatpush.msrb.mxu2 %v2406_v57  ;;  %1832 = vmatpush.msrb.mxu3 %v1561_v45  ;;  %v1548_v57 = vld [vmem:[%s5257_s2 + $0x10] sm:$0xff]  ;;  %v1353_v45 = vpop.f32.mrf.mxu0  ;;  %v1553_v13 = vld [vmem:[%s5257_s2 + $0x38] sm:$0xff] }
 0x2fa   :  { %1761 = vmatpush.msrb.mxu0 %v2422_v6  ;;  %1789 = vmatpush.msrb.mxu1 %v2408_v14  ;;  %v1556_v6 = vld [vmem:[%s5257_s2 + $0x50] sm:$0xff]  ;;  %v1550_v14 = vld [vmem:[%s5257_s2 + $0x20] sm:$0xff] }
 0x2fb   :  { %1814 = vmatpush.msrb.mxu2 %v2403_v51  ;;  %1833 = vmatpush.msrb.mxu3 %v1558_v10  ;;  %v1562_v51 = vld [vmem:[%s5257_s2 + $0x80] sm:$0xff] }
 0x2fc   :  { %1762 = vmatpush.msrb.mxu0 %v2419_v35  ;;  %1790 = vmatpush.msrb.mxu1 %v2405_v18  ;;  %v1422_v10 = vpop.f32.mrf.mxu3  ;;  %v1402_v12 = vpop.f32.mrf.mxu2 }
 0x2fd   :  { %1906 = vmatpush.xpose.msra.mxu2 %v4509_v19  ;;  %1834 = vmatpush.msrb.mxu3 %v1555_v46  ;;  %v2416_v19 = vld [vmem:[%s5257_s2 + $0x1f8] sm:$0xff]  ;;  %v1559_v46 = vld [vmem:[%s5257_s2 + $0x68] sm:$0xff] }
 0x2fe   :  { %1763 = vmatpush.msrb.mxu0 %v2416_v19  ;;  %1791 = vmatpush.msrb.mxu1 %v2402_v21  ;;  %v782_v21 = vadd.f32 %v4159_v0, %v4137_v52  ;;  %v779_v52 = vadd.f32 %v4088_v30, %v4071_v24 }
 0x2ff   :  { %1835 = vmatpush.msrb.mxu3 %v1552_v8  ;;  %v1334_v8 = vadd.f32 %v1333_v23, %v1310_v50 }
 0x300   :  { %1764 = vmatpush.msrb.mxu0 %v2413_v31  ;;  %1868 = vmatpush.msra.mxu1 %v1593_v11  ;;  %v1331_v11 = vadd.f32 %v4823_v41, %v4815_v37  ;;  %v802_v0 = vadd.f32 %v4327_v16, %v779_v52  ;;  %v2484_v52 = vld [vmem:[%s5257_s2 + $0x408] sm:$0xff] }
 0x301   :  { %1836 = vmatpush.msrb.mxu3 %v1549_v15  ;;  %v1356_v35 = vpop.f32.mrf.mxu0  ;;  %v1547_v15 = vld [vmem:[%s5257_s2 + $0x8] sm:$0xff] }
 0x302   :  { %1765 = vmatpush.msrb.mxu0 %v2410_v60  ;;  %1869 = vmatpush.msra.mxu1 %v1590_v61  ;;  %v1357_v18 = vadd.f32 %v1356_v35, %v1334_v8  ;;  %v805_v60 = vadd.f32 %v4385_v49, %v782_v21  ;;  %v1400_v49 = vadd.f32 %v1399_v3, %v4515_v42  ;;  %v2496_v35 = vld [vmem:[%s5257_s2 + $0x468] sm:$0xff]  ;;  %v2491_v21 = vld [vmem:[%s5257_s2 + $0x440] sm:$0xff] }
 0x303   :  { %1837 = vmatpush.msrb.mxu3 %v1546_v34 }
 0x304   :  { %1766 = vmatpush.msrb.mxu0 %v2407_v54  ;;  %1870 = vmatpush.msra.mxu1 %v1587_v25  ;;  %v1425_v19 = vpop.f32.mrf.mxu3  ;;  %v1354_v54 = vadd.f32 %v1353_v45, %v1331_v11  ;;  %v2492_v11 = vld [vmem:[%s5257_s2 + $0x448] sm:$0xff] }
 0x305   :  { %1926 = vmatpush.xpose.msra.mxu3 %v4511_v20  ;;  %v1584_v20 = vld [vmem:[%s5257_s2 + $0x130] sm:$0xff] }
 0x306   :  { %1767 = vmatpush.msrb.mxu0 %v2404_v28  ;;  %1871 = vmatpush.msra.mxu1 %v1584_v20  ;;  %v1423_v28 = vadd.f32 %v1422_v10, %v1400_v49  ;;  %v2486_v49 = vld [vmem:[%s5257_s2 + $0x418] sm:$0xff] }
 0x308   :  { %1872 = vmatpush.msra.mxu1 %v1581_v29  ;;  %1768 = vmatpush.msrb.mxu0 %v2401_v39 }
 0x30a   :  { %1873 = vmatpush.msra.mxu1 %v1578_v33  ;;  %1845 = vmatpush.msra.mxu0 %v1592_v43 }
 0x30c   :  { %1874 = vmatpush.msra.mxu1 %v1575_v36  ;;  %1846 = vmatpush.msra.mxu0 %v1589_v47 }
 0x30e   :  { %1875 = vmatpush.msra.mxu1 %v1572_v38  ;;  %1847 = vmatpush.msra.mxu0 %v1586_v53 }
 0x310   :  { %1876 = vmatpush.msra.mxu1 %v1569_v44  ;;  %1848 = vmatpush.msra.mxu0 %v1583_v59 }
 0x312   :  { %1877 = vmatpush.msra.mxu1 %v1566_v48  ;;  %1849 = vmatpush.msra.mxu0 %v1580_v40 }
 0x314   :  { %1878 = vmatpush.msra.mxu1 %v1563_v55  ;;  %1850 = vmatpush.msra.mxu0 %v1577_v2 }
 0x316   :  { %1879 = vmatpush.msra.mxu1 %v1560_v62  ;;  %1851 = vmatpush.msra.mxu0 %v1574_v63 }
 0x318   :  { %1880 = vmatpush.msra.mxu1 %v1557_v1  ;;  %1852 = vmatpush.msra.mxu0 %v1571_v7 }
 0x31a   :  { %1881 = vmatpush.msra.mxu1 %v1554_v58  ;;  %1853 = vmatpush.msra.mxu0 %v1568_v26 }
 0x31c   :  { %1882 = vmatpush.msra.mxu1 %v1551_v5  ;;  %1854 = vmatpush.msra.mxu0 %v1565_v9 }
 0x31e   :  { %1883 = vmatpush.msra.mxu1 %v1548_v57  ;;  %1855 = vmatpush.msra.mxu0 %v1562_v51 }
 0x320   :  { %1856 = vmatpush.msra.mxu0 %v1559_v46 }
 0x322   :  { %1857 = vmatpush.msra.mxu0 %v1556_v6 }
 0x324   :  { %1858 = vmatpush.msra.mxu0 %v1553_v13 }
 0x326   :  { %1859 = vmatpush.msra.mxu0 %v1550_v14  ;;  %v2497_v14 = vld [vmem:[%s5257_s2 + $0x470] sm:$0xff] }
 0x328   :  { %1860 = vmatpush.msra.mxu0 %v1547_v15  ;;  %v2498_v15 = vld [vmem:[%s5257_s2 + $0x478] sm:$0xff] }
 0x35f   :  { %v1520_v34 = vpop.f32.mrf.mxu2 }
 0x360   :  { %1838 = vmatmul.f32.vlgmr.msrb.gmra.mxu3 %v1520_v34 }
 0x361   :  { %1996 = vmatpush.msrb.mxu3 %v1357_v18  ;;  %v2494_v18 = vld [vmem:[%s5257_s2 + $0x458] sm:$0xff] }
 0x367   :  { %v1543_v31 = vpop.f32.mrf.mxu3 }
 0x368   :  { %1841 = vmatmul.f32.gmra.mxu3 %v1543_v31 }
 0x36f   :  { %v1678_v61 = vpop.f32.mrf.mxu2 }
 0x370   :  { %1769 = vmatmul.f32.vlgmr.msrb.gmra.mxu0 %v1678_v61  ;;  %1792 = vmatmul.f32.vlgmr.msrb.gmra.mxu1 %v1678_v61 }
 0x371   :  { %1815 = vmatmul.f32.vlgmr.msrb.gmra.mxu2 %v1678_v61  ;;  %1927 = vmatmul.f32.vlgmr.msra.gmra.mxu3 %v805_v60  ;;  %v2487_v60 = vld [vmem:[%s5257_s2 + $0x420] sm:$0xff]  ;;  %v2488_v61 = vld [vmem:[%s5257_s2 + $0x428] sm:$0xff] }
 0x372   :  { %1973 = vmatpush.msrb.mxu2 %v1354_v54  ;;  %2140 = vmatpush.xpose.msrb.mxu1 %v4507_v56  ;;  %v1403_v56 = vadd.f32 %v1402_v12, %v4517_v17 }
 0x373   :  { %2073 = vmatpush.msra.mxu3 %v2497_v14  ;;  %2096 = vmatpush.msrb.mxu0 %v2498_v15  ;;  %v2548_v14 = vld [vmem:[%s5257_s2 + $0x5f8] sm:$0xff]  ;;  %v2543_v15 = vld [vmem:[%s5257_s2 + $0x5d0] sm:$0xff] }
 0x374   :  { %v1426_v20 = vadd.f32 %v1425_v19, %v1403_v56  ;;  %v2493_v19 = vld [vmem:[%s5257_s2 + $0x450] sm:$0xff]  ;;  %v2482_v56 = vld [vmem:[%s5257_s2 + $0x3f8] sm:$0xff] }
 0x375   :  { %2074 = vmatpush.msra.mxu3 %v2494_v18  ;;  %v2545_v18 = vld [vmem:[%s5257_s2 + $0x5e0] sm:$0xff] }
 0x377   :  { %v1701_v25 = vpop.f32.mrf.mxu3  ;;  %2075 = vmatpush.msra.mxu3 %v2491_v21  ;;  %v2542_v21 = vld [vmem:[%s5257_s2 + $0x5c8] sm:$0xff] }
 0x378   :  { %1772 = vmatmul.f32.gmra.mxu0 %v1701_v25  ;;  %1795 = vmatmul.f32.gmra.mxu1 %v1701_v25 }
 0x379   :  { %1818 = vmatmul.f32.gmra.mxu2 %v1701_v25  ;;  %v2489_v25 = vld [vmem:[%s5257_s2 + $0x430] sm:$0xff]  ;;  %2076 = vmatpush.msra.mxu3 %v2488_v61 }
 0x37a   :  { %v2539_v61 = vld [vmem:[%s5257_s2 + $0x5b0] sm:$0xff] }
 0x380   :  { %1861 = vmatmul.f32.vlgmr.msra.gmra.mxu0 %v1520_v34  ;;  %1884 = vmatmul.f32.vlgmr.msra.gmra.mxu1 %v1520_v34  ;;  %v2495_v34 = vld [vmem:[%s5257_s2 + $0x460] sm:$0xff] }
 0x381   :  { %1907 = vmatmul.f32.vlgmr.msra.gmra.mxu2 %v802_v0  ;;  %2160 = vmatpush.xpose.msra.mxu1 %v4513_v22  ;;  %v2485_v0 = vld [vmem:[%s5257_s2 + $0x410] sm:$0xff] }
 0x382   :  { %2050 = vmatpush.msra.mxu2 %v2496_v35  ;;  %2097 = vmatpush.msrb.mxu0 %v2495_v34  ;;  %v2547_v35 = vld [vmem:[%s5257_s2 + $0x5f0] sm:$0xff]  ;;  %v2540_v34 = vld [vmem:[%s5257_s2 + $0x5b8] sm:$0xff] }
 0x383   :  { %2077 = vmatpush.msra.mxu3 %v2485_v0  ;;  %v2531_v0 = vld [vmem:[%s5257_s2 + $0x570] sm:$0xff] }
 0x384   :  { %2051 = vmatpush.msra.mxu2 %v2493_v19  ;;  %2098 = vmatpush.msrb.mxu0 %v2492_v11  ;;  %v2544_v19 = vld [vmem:[%s5257_s2 + $0x5d8] sm:$0xff]  ;;  %v2537_v11 = vld [vmem:[%s5257_s2 + $0x5a0] sm:$0xff] }
 0x385   :  { %2078 = vmatpush.msra.mxu3 %v2482_v56  ;;  %v2528_v56 = vld [vmem:[%s5257_s2 + $0x558] sm:$0xff] }
 0x386   :  { %2099 = vmatpush.msrb.mxu0 %v2489_v25  ;;  %v2535_v25 = vld [vmem:[%s5257_s2 + $0x590] sm:$0xff] }
 0x388   :  { %1864 = vmatmul.f32.gmra.mxu0 %v1543_v31  ;;  %1887 = vmatmul.f32.gmra.mxu1 %v1543_v31  ;;  %v2490_v31 = vld [vmem:[%s5257_s2 + $0x438] sm:$0xff] }
 0x389   :  { %2052 = vmatpush.msra.mxu2 %v2490_v31  ;;  %2100 = vmatpush.msrb.mxu0 %v2486_v49  ;;  %v2541_v31 = vld [vmem:[%s5257_s2 + $0x5c0] sm:$0xff]  ;;  %v2532_v49 = vld [vmem:[%s5257_s2 + $0x578] sm:$0xff] }
 0x38b   :  { %2053 = vmatpush.msra.mxu2 %v2487_v60  ;;  %v2538_v60 = vld [vmem:[%s5257_s2 + $0x5a8] sm:$0xff] }
 0x38d   :  { %2054 = vmatpush.msra.mxu2 %v2484_v52  ;;  %v2536_v52 = vld [vmem:[%s5257_s2 + $0x598] sm:$0xff] }
 0x390   :  { %2141 = vmatmul.f32.vlgmr.msrb.gmra.mxu1 %v4231_v32 }
 0x391   :  { %2207 = vmatpush.msrb.mxu1 %v1423_v28  ;;  %v2481_v28 = vld [vmem:[%s5257_s2 + $0x3f0] sm:$0xff] }
 0x392   :  { %2055 = vmatpush.msra.mxu2 %v2481_v28  ;;  %v2533_v28 = vld [vmem:[%s5257_s2 + $0x580] sm:$0xff] }
 0x398   :  { %2161 = vmatmul.f32.vlgmr.msra.gmra.mxu1 %v4345_v27 }
 0x399   :  { %2230 = vmatpush.msra.mxu1 %v1426_v20  ;;  %v2483_v20 = vld [vmem:[%s5257_s2 + $0x400] sm:$0xff] }
 0x39a   :  { %2101 = vmatpush.msrb.mxu0 %v2483_v20  ;;  %v2529_v20 = vld [vmem:[%s5257_s2 + $0x560] sm:$0xff] }
 0x3e3   :  { %v4911_v24 = vpop.f32.mrf.mxu3 }
 0x3eb   :  { %v4913_v30 = vpop.f32.mrf.mxu3 }
 0x3ed   :  { %v4915_v16 = vpop.f32.mrf.mxu1 }
 0x3f4   :  { %v1816_v22 = vpop.f32.mrf.mxu2  ;;  %v1928_v29 = vpop.f32.mrf.mxu3 }
 0x3f5   :  { %v1932_v42 = vsel %vm4519_vm0, %v1928_v29, -1e+30  ;;  %v4919_v33 = vpop.f32.mrf.mxu1  ;;  %v2479_v29 = vld [vmem:[%s5257_s2 + $0x3e0] sm:$0xff] }
 0x3f6   :  { %v1936_v32 = vsel %vm1477_vm1, %v1932_v42, -inf  ;;  %2079 = vmatpush.msra.mxu3 %v2479_v29  ;;  %v2525_v29 = vld [vmem:[%s5257_s2 + $0x540] sm:$0xff] }
 0x3f7   :  { %1937 = vmax.xlane.f32.xlu0 %v1936_v32 }
 0x3fc   :  { %v1819_v17 = vpop.f32.mrf.mxu2 }
 0x3fd   :  { %v1885_v36 = vpop.f32.mrf.mxu1 }
 0x3fe   :  { %v4922_v27 = vadd.f32 %v1885_v36, %v1816_v22  ;;  %v2478_v22 = vld [vmem:[%s5257_s2 + $0x3d8] sm:$0xff] }
 0x3ff   :  { %2056 = vmatpush.msra.mxu2 %v2478_v22  ;;  %v2530_v22 = vld [vmem:[%s5257_s2 + $0x568] sm:$0xff] }
 0x404   :  { %v1908_v37 = vpop.f32.mrf.mxu2 }
 0x405   :  { %v1931_v38 = vsel %vm4519_vm0, %v1908_v37, -1e+30  ;;  %v1888_v39 = vpop.f32.mrf.mxu1  ;;  %v2475_v37 = vld [vmem:[%s5257_s2 + $0x3c0] sm:$0xff] }
 0x406   :  { %v4926_v41 = vadd.f32 %v1888_v39, %v1819_v17  ;;  %v1933_v43 = vsel %vm1477_vm1, %v1931_v38, -inf  ;;  %v2476_v17 = vld [vmem:[%s5257_s2 + $0x3c8] sm:$0xff]  ;;  %2057 = vmatpush.msra.mxu2 %v2475_v37  ;;  %v2524_v37 = vld [vmem:[%s5257_s2 + $0x538] sm:$0xff] }
 0x407   :  { %1934 = vmax.xlane.f32.xlu2 %v1933_v43  ;;  %v2473_v43 = vld [vmem:[%s5257_s2 + $0x3b0] sm:$0xff]  ;;  %2080 = vmatpush.msra.mxu3 %v2476_v17  ;;  %v2522_v17 = vld [vmem:[%s5257_s2 + $0x528] sm:$0xff] }
 0x409   :  { %2081 = vmatpush.msra.mxu3 %v2473_v43  ;;  %v2521_v43 = vld [vmem:[%s5257_s2 + $0x520] sm:$0xff] }
 0x40d   :  { %v2142_v44 = vpop.f32.mrf.mxu1 }
 0x40e   :  { %v2165_v47 = vsel %vm4519_vm0, %v2142_v44, -1e+30  ;;  %v2472_v44 = vld [vmem:[%s5257_s2 + $0x3a8] sm:$0xff] }
 0x40f   :  { %v2167_v48 = vsel %vm1477_vm1, %v2165_v47, -inf  ;;  %2058 = vmatpush.msra.mxu2 %v2472_v44  ;;  %v2516_v44 = vld [vmem:[%s5257_s2 + $0x4f8] sm:$0xff] }
 0x410   :  { %2168 = vmax.xlane.f32.xlu1 %v2167_v48  ;;  %v2470_v48 = vld [vmem:[%s5257_s2 + $0x398] sm:$0xff] }
 0x411   :  { %2082 = vmatpush.msra.mxu3 %v2470_v48  ;;  %v2518_v48 = vld [vmem:[%s5257_s2 + $0x508] sm:$0xff] }
 0x415   :  { %v2162_v50 = vpop.f32.mrf.mxu1 }
 0x416   :  { %v2166_v53 = vsel %vm4519_vm0, %v2162_v50, -1e+30  ;;  %v2469_v50 = vld [vmem:[%s5257_s2 + $0x390] sm:$0xff] }
 0x417   :  { %v2170_v55 = vsel %vm1477_vm1, %v2166_v53, -inf  ;;  %2059 = vmatpush.msra.mxu2 %v2469_v50  ;;  %v2513_v50 = vld [vmem:[%s5257_s2 + $0x4e0] sm:$0xff] }
 0x418   :  { %2171 = vmax.xlane.f32.xlu2 %v2170_v55  ;;  %v2467_v55 = vld [vmem:[%s5257_s2 + $0x380] sm:$0xff] }
 0x419   :  { %2083 = vmatpush.msra.mxu3 %v2467_v55  ;;  %v2515_v55 = vld [vmem:[%s5257_s2 + $0x4f0] sm:$0xff] }
 0x46a   :  { %v1938_v59 = vpop.xlane.xlu0 %1937 }
 0x46b   :  { %v1940_v62 = vsub.f32 %v1932_v42, %v1938_v59  ;;  %v2480_v42 = vld [vmem:[%s5257_s2 + $0x3e8] sm:$0xff]  ;;  %v2466_v59 = vld [vmem:[%s5257_s2 + $0x378] sm:$0xff] }
 0x46c   :  { %2102 = vmatpush.msrb.mxu0 %v2480_v42  ;;  %2060 = vmatpush.msra.mxu2 %v2466_v59  ;;  %v2526_v42 = vld [vmem:[%s5257_s2 + $0x548] sm:$0xff] }
 0x46d   :  { %v1943_v40 = vmul.f32 1.442695, %v1940_v62  ;;  %v2468_v62 = vld [vmem:[%s5257_s2 + $0x388] sm:$0xff] }
 0x46e   :  { %v2510_v59 = vld [vmem:[%s5257_s2 + $0x4c8] sm:$0xff] }
 0x46f   :  { %2568 = vpow2.f32 %v1943_v40  ;;  %v2464_v40 = vld [vmem:[%s5257_s2 + $0x368] sm:$0xff] }
 0x470   :  { %2084 = vmatpush.msra.mxu3 %v2464_v40  ;;  %v2512_v40 = vld [vmem:[%s5257_s2 + $0x4d8] sm:$0xff] }
 0x475   :  { %v2569_v1 = vpop.eup %2568 }
 0x476   :  { %v1948_v2 = vsel %vm1477_vm1, %v2569_v1, 0.0 }
 0x477   :  { %1949 = vadd.xlane.f32.xlu1 %v1948_v2  ;;  %v2463_v2 = vld [vmem:[%s5257_s2 + $0x360] sm:$0xff] }
 0x478   :  { %2061 = vmatpush.msra.mxu2 %v2463_v2  ;;  %v2508_v2 = vld [vmem:[%s5257_s2 + $0x4b8] sm:$0xff] }
 0x47a   :  { %v1935_v58 = vpop.xlane.xlu2 %1934 }
 0x47b   :  { %v1939_v23 = vsub.f32 %v1931_v38, %v1935_v58  ;;  %v2477_v38 = vld [vmem:[%s5257_s2 + $0x3d0] sm:$0xff] }
 0x47c   :  { %2103 = vmatpush.msrb.mxu0 %v2477_v38  ;;  %v2519_v38 = vld [vmem:[%s5257_s2 + $0x510] sm:$0xff] }
 0x47d   :  { %v1941_v63 = vmul.f32 1.442695, %v1939_v23 }
 0x47f   :  { %2570 = vpow2.f32 %v1941_v63  ;;  %v2465_v63 = vld [vmem:[%s5257_s2 + $0x370] sm:$0xff] }
 0x483   :  { %v2169_v5 = vpop.xlane.xlu1 %2168 }
 0x484   :  { %v2173_v3 = vsub.f32 %v2165_v47, %v2169_v5  ;;  %v2474_v47 = vld [vmem:[%s5257_s2 + $0x3b8] sm:$0xff]  ;;  %v2461_v5 = vld [vmem:[%s5257_s2 + $0x350] sm:$0xff] }
 0x485   :  { %v4936_v7 = vpop.eup %2570  ;;  %2104 = vmatpush.msrb.mxu0 %v2474_v47  ;;  %2085 = vmatpush.msra.mxu3 %v2461_v5  ;;  %v2517_v47 = vld [vmem:[%s5257_s2 + $0x500] sm:$0xff]  ;;  %v2506_v5 = vld [vmem:[%s5257_s2 + $0x4a8] sm:$0xff] }
 0x486   :  { %v2175_v4 = vmul.f32 1.442695, %v2173_v3  ;;  %v1945_v57 = vsel %vm1477_vm1, %v4936_v7, 0.0  ;;  %v2460_v3 = vld [vmem:[%s5257_s2 + $0x348] sm:$0xff] }
 0x487   :  { %1946 = vadd.xlane.f32.xlu0 %v1945_v57  ;;  %v2457_v57 = vld [vmem:[%s5257_s2 + $0x330] sm:$0xff]  ;;  %2062 = vmatpush.msra.mxu2 %v2460_v3  ;;  %v2501_v3 = vld [vmem:[%s5257_s2 + $0x480] sm:$0xff] }
 0x488   :  { %2572 = vpow2.f32 %v2175_v4  ;;  %v2458_v4 = vld [vmem:[%s5257_s2 + $0x338] sm:$0xff] }
 0x489   :  { %2086 = vmatpush.msra.mxu3 %v2458_v4  ;;  %2063 = vmatpush.msra.mxu2 %v2457_v57  ;;  %v2503_v4 = vld [vmem:[%s5257_s2 + $0x490] sm:$0xff] }
 0x48b   :  { %v2172_v45 = vpop.xlane.xlu2 %2171 }
 0x48c   :  { %v2174_v26 = vsub.f32 %v2166_v53, %v2172_v45  ;;  %v2471_v53 = vld [vmem:[%s5257_s2 + $0x3a0] sm:$0xff] }
 0x48d   :  { %2105 = vmatpush.msrb.mxu0 %v2471_v53  ;;  %v2459_v45 = vld [vmem:[%s5257_s2 + $0x340] sm:$0xff]  ;;  %v2514_v53 = vld [vmem:[%s5257_s2 + $0x4e8] sm:$0xff] }
 0x48e   :  { %v4940_v9 = vpop.eup %2572  ;;  %v2177_v51 = vmul.f32 1.442695, %v2174_v26  ;;  %v2455_v26 = vld [vmem:[%s5257_s2 + $0x320] sm:$0xff] }
 0x48f   :  { %v2179_v10 = vsel %vm1477_vm1, %v4940_v9, 0.0  ;;  %2106 = vmatpush.msrb.mxu0 %v2468_v62  ;;  %2087 = vmatpush.msra.mxu3 %v2455_v26  ;;  %v2511_v62 = vld [vmem:[%s5257_s2 + $0x4d0] sm:$0xff] }
 0x490   :  { %2574 = vpow2.f32 %v2177_v51  ;;  %2180 = vadd.xlane.f32.xlu2 %v2179_v10  ;;  %v2456_v51 = vld [vmem:[%s5257_s2 + $0x328] sm:$0xff] }
 0x491   :  { %2107 = vmatpush.msrb.mxu0 %v2465_v63  ;;  %v2505_v63 = vld [vmem:[%s5257_s2 + $0x4a0] sm:$0xff] }
 0x496   :  { %v4944_v12 = vpop.eup %2574 }
 0x497   :  { %v2182_v46 = vsel %vm1477_vm1, %v4944_v12, 0.0 }
 0x498   :  { %2183 = vadd.xlane.f32.xlu0 %v2182_v46 }
 0x4ea   :  { %v1950_v6 = vpop.xlane.xlu1 %1949 }
 0x4eb   :  { %2576 = vrcp.f32 %v1950_v6  ;;  %v2451_v6 = vld [vmem:[%s5257_s2 + $0x300] sm:$0xff] }
 0x4f1   :  { %v2577_v13 = vpop.eup %2576 }
 0x4f2   :  { %v1954_v8 = vmul.f32 %v2577_v13, %v2569_v1  ;;  %v2452_v13 = vld [vmem:[%s5257_s2 + $0x308] sm:$0xff] }
 0x4f3   :  { %2088 = vmatpush.msra.mxu3 %v2452_v13 }
 0x4f4   :  { %2450 = vmatmul.msk.f32.vlgmr.msrb.gmra.mxu3 %vm1477_vm1, %v1954_v8  ;;  %v2453_v8 = vld [vmem:[%s5257_s2 + $0x310] sm:$0xff] }
 0x4f5   :  { %2307 = vmatpush.msrb.mxu3 %v2547_v35 }
 0x4f7   :  { %2308 = vmatpush.msrb.mxu3 %v2544_v19 }
 0x4f9   :  { %2309 = vmatpush.msrb.mxu3 %v2541_v31 }
 0x4fa   :  { %v1947_v54 = vpop.xlane.xlu0 %1946 }
 0x4fb   :  { %2578 = vrcp.f32 %v1947_v54  ;;  %v2534_v54 = vld [vmem:[%s5257_s2 + $0x588] sm:$0xff]  ;;  %2310 = vmatpush.msrb.mxu3 %v2538_v60 }
 0x4fd   :  { %2311 = vmatpush.msrb.mxu3 %v2535_v25 }
 0x4ff   :  { %2312 = vmatpush.msrb.mxu3 %v2532_v49 }
 0x501   :  { %v2579_v32 = vpop.eup %2578  ;;  %2313 = vmatpush.msrb.mxu3 %v2529_v20 }
 0x502   :  { %v1953_v36 = vmul.f32 %v2579_v32, %v4936_v7  ;;  %v2462_v7 = vld [vmem:[%s5257_s2 + $0x358] sm:$0xff]  ;;  %v2527_v32 = vld [vmem:[%s5257_s2 + $0x550] sm:$0xff] }
 0x503   :  { %v2181_v39 = vpop.xlane.xlu2 %2180  ;;  %2108 = vmatpush.msrb.mxu0 %v2462_v7  ;;  %2314 = vmatpush.msrb.mxu3 %v2526_v42  ;;  %v2502_v7 = vld [vmem:[%s5257_s2 + $0x488] sm:$0xff] }
 0x504   :  { %2580 = vrcp.f32 %v2181_v39  ;;  %2449 = vmatmul.msk.f32.vlgmr.msrb.gmra.mxu2 %vm1477_vm1, %v1953_v36  ;;  %v2523_v36 = vld [vmem:[%s5257_s2 + $0x530] sm:$0xff]  ;;  %v2520_v39 = vld [vmem:[%s5257_s2 + $0x518] sm:$0xff] }
 0x505   :  { %2109 = vmatpush.msrb.mxu0 %v2459_v45  ;;  %2315 = vmatpush.msrb.mxu3 %v2523_v36 }
 0x507   :  { %2110 = vmatpush.msrb.mxu0 %v2456_v51  ;;  %2316 = vmatpush.msrb.mxu3 %v2520_v39  ;;  %v1770_v51 = vpop.f32.mrf.mxu0 }
 0x509   :  { %2111 = vmatpush.msrb.mxu0 %v2453_v8  ;;  %2317 = vmatpush.msrb.mxu3 %v2517_v47 }
 0x50a   :  { %v2581_v1 = vpop.eup %2580 }
 0x50b   :  { %v2187_v58 = vmul.f32 %v2581_v1, %v4940_v9  ;;  %v2184_v23 = vpop.xlane.xlu0 %2183  ;;  %v2454_v9 = vld [vmem:[%s5257_s2 + $0x318] sm:$0xff]  ;;  %2330 = vmatpush.msra.mxu0 %v2548_v14  ;;  %2318 = vmatpush.msrb.mxu3 %v2514_v53  ;;  %v2507_v1 = vld [vmem:[%s5257_s2 + $0x4b0] sm:$0xff]  ;;  %v2359_v14 = vld [vmem:[%s5258_s3] sm:$0x7]  ;;  %s2617_s3 = smov [#allocation2]  }
 0x50c   :  { %2582 = vrcp.f32 %v2184_v23  ;;  %2064 = vmatpush.msra.mxu2 %v2454_v9  ;;  %v2504_v23 = vld [vmem:[%s5257_s2 + $0x498] sm:$0xff]  ;;  %s2383_s16 = sshll.u32 %s2617_s3, 4  ;;  %s2384_s16 = int_to_ptr.vmem [resolvable:$true] %s2383_s16 }
 0x50d   :  { %2499 = vmatmul.msk.f32.vlgmr.msrb.gmra.mxu1 %vm1477_vm1, %v2187_v58  ;;  %2331 = vmatpush.msra.mxu0 %v2545_v18  ;;  %v2509_v58 = vld [vmem:[%s5257_s2 + $0x4c0] sm:$0xff] }
 0x50e   :  { %2065 = vmatpush.msra.mxu2 %v2451_v6  ;;  %2319 = vmatpush.msrb.mxu3 %v2511_v62 }
 0x50f   :  { %2332 = vmatpush.msra.mxu0 %v2542_v21 }
 0x510   :  { %2320 = vmatpush.msrb.mxu3 %v2508_v2 }
 0x511   :  { %2333 = vmatpush.msra.mxu0 %v2539_v61 }
 0x512   :  { %v2583_v10 = vpop.eup %2582  ;;  %2321 = vmatpush.msrb.mxu3 %v2505_v63 }
 0x513   :  { %v2188_v46 = vmul.f32 %v2583_v10, %v4944_v12  ;;  %v2546_v12 = vld [vmem:[%s5257_s2 + $0x5e8] sm:$0xff]  ;;  %2334 = vmatpush.msra.mxu0 %v2536_v52  ;;  %v1773_v10 = vpop.f32.mrf.mxu0  ;;  %v2361_v52 = vperm.slane %v2359_v14, 0 }
 0x514   :  { %2284 = vmatpush.msrb.mxu2 %v2546_v12  ;;  %2322 = vmatpush.msrb.mxu3 %v2502_v7 }
 0x515   :  { %2500 = vmatmul.msk.f32.vlgmr.msra.gmra.mxu1 %vm1477_vm1, %v2188_v46  ;;  %2335 = vmatpush.msra.mxu0 %v2533_v28 }
 0x516   :  { %2285 = vmatpush.msrb.mxu2 %v2543_v15 }
 0x517   :  { %2336 = vmatpush.msra.mxu0 %v2530_v22 }
 0x518   :  { %2286 = vmatpush.msrb.mxu2 %v2540_v34  ;;  %v2363_v34 = vperm.slane %v2359_v14, 2 }
 0x519   :  { %2337 = vmatpush.msra.mxu0 %v2527_v32 }
 0x51a   :  { %2287 = vmatpush.msrb.mxu2 %v2537_v11  ;;  %v1840_v11 = vadd.f32 %v4911_v24, %v1770_v51  ;;  %v1843_v24 = vadd.f32 %v4913_v30, %v1773_v10 }
 0x51b   :  { %2338 = vmatpush.msra.mxu0 %v2524_v37  ;;  %v1862_v46 = vpop.f32.mrf.mxu0 }
 0x51c   :  { %2288 = vmatpush.msrb.mxu2 %v2534_v54  ;;  %v1863_v60 = vadd.f32 %v1862_v46, %v4915_v16 }
 0x51d   :  { %2339 = vmatpush.msra.mxu0 %v2521_v43 }
 0x51e   :  { %2289 = vmatpush.msrb.mxu2 %v2531_v0  ;;  %v2362_v0 = vperm.slane %v2359_v14, 1 }
 0x51f   :  { %2340 = vmatpush.msra.mxu0 %v2518_v48 }
 0x520   :  { %2290 = vmatpush.msrb.mxu2 %v2528_v56 }
 0x521   :  { %2341 = vmatpush.msra.mxu0 %v2515_v55 }
 0x522   :  { %2291 = vmatpush.msrb.mxu2 %v2525_v29 }
 0x523   :  { %2342 = vmatpush.msra.mxu0 %v2512_v40  ;;  %v1865_v6 = vpop.f32.mrf.mxu0 }
 0x524   :  { %2292 = vmatpush.msrb.mxu2 %v2522_v17  ;;  %v1866_v16 = vadd.f32 %v1865_v6, %v4919_v33 }
 0x525   :  { %2343 = vmatpush.msra.mxu0 %v2509_v58 }
 0x526   :  { %2293 = vmatpush.msrb.mxu2 %v2519_v38 }
 0x527   :  { %2344 = vmatpush.msra.mxu0 %v2506_v5 }
 0x528   :  { %2294 = vmatpush.msrb.mxu2 %v2516_v44 }
 0x529   :  { %2345 = vmatpush.msra.mxu0 %v2503_v4 }
 0x52a   :  { %2295 = vmatpush.msrb.mxu2 %v2513_v50 }
 0x52c   :  { %2296 = vmatpush.msrb.mxu2 %v2510_v59 }
 0x52e   :  { %2297 = vmatpush.msrb.mxu2 %v2507_v1 }
 0x530   :  { %2298 = vmatpush.msrb.mxu2 %v2504_v23 }
 0x532   :  { %2299 = vmatpush.msrb.mxu2 %v2501_v3 }
 0x577   :  { %v1998_v45 = vpop.f32.mrf.mxu3 }
 0x587   :  { %v1975_v57 = vpop.f32.mrf.mxu2 }
 0x588   :  { %2066 = vmatmul.f32.vlgmr.msra.gmra.mxu2 %v1975_v57  ;;  %2089 = vmatmul.f32.vlgmr.msra.gmra.mxu3 %v1975_v57 }
 0x589   :  { %2112 = vmatmul.f32.vlgmr.msrb.gmra.mxu0 %v1975_v57 }
 0x58a   :  { %v2209_v26 = vpop.f32.mrf.mxu1 }
 0x590   :  { %2069 = vmatmul.f32.gmra.mxu2 %v1998_v45  ;;  %2092 = vmatmul.f32.gmra.mxu3 %v1998_v45 }
 0x591   :  { %2115 = vmatmul.f32.gmra.mxu0 %v1998_v45 }
 0x592   :  { %v2232_v9 = vpop.f32.mrf.mxu1 }
 0x598   :  { %2300 = vmatmul.f32.vlgmr.msrb.gmra.mxu2 %v2209_v26  ;;  %2323 = vmatmul.f32.vlgmr.msrb.gmra.mxu3 %v2209_v26 }
 0x599   :  { %2346 = vmatmul.f32.vlgmr.msra.gmra.mxu0 %v2209_v26 }
 0x5a0   :  { %2303 = vmatmul.f32.gmra.mxu2 %v2232_v9  ;;  %2326 = vmatmul.f32.gmra.mxu3 %v2232_v9 }
 0x5a1   :  { %2349 = vmatmul.f32.gmra.mxu0 %v2232_v9 }
 0x606   :  { %v2113_v13 = vpop.f32.mrf.mxu0 }
 0x607   :  { %v2121_v18 = vadd.f32 %v2113_v13, %v4922_v27 }
 0x60b   :  { %v2067_v8 = vpop.f32.mrf.mxu2  ;;  %v2090_v12 = vpop.f32.mrf.mxu3 }
 0x60c   :  { %v2119_v54 = vadd.f32 %v2067_v8, %v1840_v11  ;;  %v2120_v25 = vadd.f32 %v2090_v12, %v1863_v60 }
 0x60e   :  { %v2116_v35 = vpop.f32.mrf.mxu0 }
 0x60f   :  { %v2124_v22 = vadd.f32 %v2116_v35, %v4926_v41 }
 0x613   :  { %v2070_v15 = vpop.f32.mrf.mxu2  ;;  %v2093_v19 = vpop.f32.mrf.mxu3 }
 0x614   :  { %v2122_v36 = vadd.f32 %v2070_v15, %v1843_v24  ;;  %v2123_v37 = vadd.f32 %v2093_v19, %v1866_v16 }
 0x616   :  { %v2347_v31 = vpop.f32.mrf.mxu0 }
 0x617   :  { %v2355_v21 = vadd.f32 %v2347_v31, %v2121_v18 }
 0x619   :  { %v2369_v61 = vadd.f32 %v2363_v34, %v2355_v21 }
 0x61b   :  { %2375 = vst [vmem:[#allocation2 + $0x10] sm:$0xff] %v2369_v61  ;;  %v2301_v49 = vpop.f32.mrf.mxu2  ;;  %v2324_v28 = vpop.f32.mrf.mxu3 }
 0x61c   :  { %v2353_v56 = vadd.f32 %v2301_v49, %v2119_v54  ;;  %v2354_v20 = vadd.f32 %v2324_v28, %v2120_v25 }
 0x61e   :  { %v2367_v27 = vadd.f32 %v2361_v52, %v2353_v56  ;;  %v2368_v29 = vadd.f32 %v2362_v0, %v2354_v20  ;;  %v2350_v42 = vpop.f32.mrf.mxu0 }
 0x61f   :  { %v2358_v32 = vadd.f32 %v2350_v42, %v2124_v22 }
 0x620   :  { %2373 = vst [vmem:[#allocation2] sm:$0xff] %v2367_v27 }
 0x621   :  { %2374 = vst [vmem:[#allocation2 + $0x8] sm:$0xff] %v2368_v29  ;;  %v2372_v17 = vadd.f32 %v2363_v34, %v2358_v32 }
 0x623   :  { %2378 = vst [vmem:[#allocation2 + $0x28] sm:$0xff] %v2372_v17  ;;  %v2304_v38 = vpop.f32.mrf.mxu2  ;;  %v2327_v39 = vpop.f32.mrf.mxu3 }
 0x624   :  { %v2356_v41 = vadd.f32 %v2304_v38, %v2122_v36  ;;  %v2357_v43 = vadd.f32 %v2327_v39, %v2123_v37 }
 0x626   :  { %v2370_v44 = vadd.f32 %v2361_v52, %v2356_v41  ;;  %v2371_v30 = vadd.f32 %v2362_v0, %v2357_v43 }
 0x628   :  { %2376 = vst [vmem:[#allocation2 + $0x18] sm:$0xff] %v2370_v44 }
 0x629   :  { %2377 = vst [vmem:[#allocation2 + $0x20] sm:$0xff] %v2371_v30 }
 0x62a   :  { %2391 = dma.vmem_to_hbm [thread:$0]  %s2384_s16, 768, %s2386_s19, [#allocation3], %s2618_s20, %s2618_s20, %s2619_s21  }
 0x62b   :  { %2615 = dma.done.wait [#allocation3], 768  }
 0x62c   :  { %2616 = vsyncadd [#allocation3], 4294966528 }
 0x62d   :  { %2396 = vsyncpa [#allocation3], 1 }

</bundles_post_ra>
